<compile_context>
chip_gen: v5e
topology: v5e:2x2
jax: 0.10.0
libtpu: 0.0.40
codegen_flags: <defaults>
</compile_context>

<pallas_src>
import functools

import jax
import jax.numpy as jnp
import numpy as np
from jax.experimental import pallas as pl
from jax.experimental.pallas import tpu as pltpu


def _fused_attn_kernel(xq_ref, xkv_ref,
                       wq_ref, bq_ref,
                       wk_ref, bk_ref,
                       wv_ref, bv_ref,
                       wfin_ref, bfin_ref,
                       o_ref,
                       q_s, k_s, v_s, m_s, l_s, acc_s,
                       *, heads, tk, use_bf16_exp):
    """grid = (batch, q_tile, kv_tile); the kv axis (last) is the reduction axis.

    Layout convention: features on sublanes, sequence on lanes everywhere.
      q_s, acc_s : (heads, dh, tq)
      k_s, v_s   : (heads, dh, S)   per-batch K/V cache (filled once per batch)
      m_s, l_s   : (heads, 1,  tq)
      scores     : (heads, tk, tq)
    """
    qi = pl.program_id(1)
    ki = pl.program_id(2)
    last_k = pl.num_programs(2) - 1

    D = wq_ref.shape[0]
    dh = D // heads
    S = k_s.shape[-1]
    tq = q_s.shape[-1]

    # ---- once per batch: fill the K/V cache for the full sequence ----------
    # (adapter folded into wk/wv -> one (D,C)@(C,S) matmul each; never redone
    #  for other q-tiles of the same batch.)
    @pl.when((qi == 0) & (ki == 0))
    def _fill_kv_cache():
        x_all = xkv_ref[0]                                                    # (C, S) bf16
        k = jnp.dot(wk_ref[...], x_all,
                    preferred_element_type=jnp.float32) + bk_ref[...]         # (D, S)
        v = jnp.dot(wv_ref[...], x_all,
                    preferred_element_type=jnp.float32) + bv_ref[...]         # (D, S)
        k_s[...] = k.reshape(heads, dh, S).astype(jnp.bfloat16)
        v_s[...] = v.reshape(heads, dh, S).astype(jnp.bfloat16)

    # ---- once per (batch, q-tile): project Q (scale pre-folded) + init state
    @pl.when(ki == 0)
    def _init_q():
        xq = xq_ref[0]                                                        # (C, tq) bf16
        q = jnp.dot(wq_ref[...], xq,
                    preferred_element_type=jnp.float32) + bq_ref[...]         # (D, tq)
        q_s[...] = q.reshape(heads, dh, tq).astype(jnp.bfloat16)              # lane-dense
        m_s[...] = jnp.full(m_s.shape, -jnp.inf, dtype=m_s.dtype)
        l_s[...] = jnp.zeros(l_s.shape, dtype=l_s.dtype)
        acc_s[...] = jnp.zeros(acc_s.shape, dtype=acc_s.dtype)

    # ---- every step: online-softmax update over the ki-th KV tile ----------
    start = pl.multiple_of(ki * tk, tk)
    k_t = k_s[:, :, pl.ds(start, tk)]                                         # (H, dh, tk) bf16
    v_t = v_s[:, :, pl.ds(start, tk)]                                         # (H, dh, tk) bf16
    q3 = q_s[...]                                                             # (H, dh, tq) bf16

    # Scores with q on the lane axis (no transposes of stored state needed).
    s = jnp.einsum("hdk,hdq->hkq", k_t, q3,
                   preferred_element_type=jnp.float32)                        # (H, tk, tq) f32

    m_prev = m_s[...]                                                         # (H, 1, tq)
    m_new = jnp.maximum(m_prev, jnp.max(s, axis=1, keepdims=True))
    alpha = jnp.exp(m_prev - m_new)                                           # f32
    s_shift = s - m_new
    if use_bf16_exp:
        # v6e/v7x: EUP handles bf16 (halves transcendental cost); the PV matmul
        # consumes bf16 p anyway.  m/l accumulation stays in f32.
        p = jnp.exp(s_shift.astype(jnp.bfloat16))                             # (H, tk, tq) bf16
    else:
        p = jnp.exp(s_shift)                                                  # f32 (v5e: no bf16 EUP)
    l_s[...] = alpha * l_s[...] + jnp.sum(p, axis=1, keepdims=True,
                                          dtype=jnp.float32)
    acc_s[...] = alpha * acc_s[...] + jnp.einsum(
        "hdk,hkq->hdq", v_t, p.astype(jnp.bfloat16),
        preferred_element_type=jnp.float32)                                   # (H, dh, tq)
    m_s[...] = m_new

    # ---- once per (batch, q-tile): normalize + fused output projection -----
    @pl.when(ki == last_k)
    def _finalize():
        inv_l = pl.reciprocal(l_s[...], approx=True)                          # (H, 1, tq)
        # (H, dh, tq) -> (D, tq): head-major merge, transpose-free.
        attn = (acc_s[...] * inv_l).reshape(D, tq).astype(jnp.bfloat16)
        out = jnp.dot(wfin_ref[...], attn,
                      preferred_element_type=jnp.float32) + bfin_ref[...]     # (Cout, tq)
        o_ref[0] = out.astype(o_ref.dtype)       # lane-dense store (tq on lanes)


def _largest_tile(S, target):
    """Largest multiple of 128 that divides S and is <= target (else S itself)."""
    if S <= target:
        return S
    t = (target // 128) * 128
    while t >= 128:
        if S % t == 0:
            return t
        t -= 128
    return S


def _pick_tiles(S):
    if S <= 512:
        return S, S                        # whole attention in one step per batch
    if S <= 1024:
        return _largest_tile(S, 256), S    # collapse the kv axis only
    return _largest_tile(S, 256), _largest_tile(S, 512)


def _supports_bf16_eup():
    try:
        kind = jax.devices()[0].device_kind.lower()
    except Exception:
        return False
    return ("v6" in kind) or ("v7" in kind) or ("7x" in kind)


def inflated_self_attention(x_nchw, params, *, heads, scale, tq=None, tk=None):
    """Pallas-backed forward of InflatedSelfAttention on 4D NCHW input."""
    B, C, H, W = x_nchw.shape
    S = H * W
    D = params["wq"].shape[0]
    Cout = params["w_out"].shape[0]
    dh = D // heads
    assert D % heads == 0

    # ---- fold the 1x1 adapters into the projections (inference algebra) ----
    #   q = scale*Wq(Win x + bin) = (scale*Wq@Win) x + scale*Wq@bin
    #   k/v analogous (no scale);  out = (Wout@Wo) a + (Wout@bo + bout)
    w_in, b_in = params["w_in"], params["b_in"]
    wq_f = (scale * (params["wq"] @ w_in)).astype(jnp.bfloat16)
    bq_f = (scale * (params["wq"] @ b_in)).astype(jnp.float32)
    wk_f = (params["wk"] @ w_in).astype(jnp.bfloat16)
    bk_f = (params["wk"] @ b_in).astype(jnp.float32)
    wv_f = (params["wv"] @ w_in).astype(jnp.bfloat16)
    bv_f = (params["wv"] @ b_in).astype(jnp.float32)
    w_fin = (params["w_out"] @ params["wo"]).astype(jnp.bfloat16)
    b_fin = (params["w_out"] @ params["bo"] + params["b_out"]).astype(jnp.float32)

    if tq is None or tk is None:
        tq_d, tk_d = _pick_tiles(S)
        tq = tq if tq is not None else tq_d
        tk = tk if tk is not None else tk_d
    assert S % tq == 0 and S % tk == 0
    n_q, n_k = S // tq, S // tk

    # NCHW -> (B, C, S): pure reshape (channels on sublanes, positions on the
    # lane axis); pre-cast activations to bf16 once.
    x_bcs = x_nchw.reshape(B, C, S).astype(jnp.bfloat16)

    kernel = functools.partial(_fused_attn_kernel, heads=heads, tk=tk,
                               use_bf16_exp=_supports_bf16_eup())

    def const_spec(shape):
        nd = len(shape)
        # NOTE: could add pipeline_mode=pl.Buffered(1); negligible at these sizes.
        return pl.BlockSpec(shape, lambda b, qi, ki, _n=nd: (0,) * _n)

    out_bcs = pl.pallas_call(
        kernel,
        out_shape=jax.ShapeDtypeStruct((B, Cout, S), x_nchw.dtype),
        grid_spec=pltpu.PrefetchScalarGridSpec(
            num_scalar_prefetch=0,
            grid=(B, n_q, n_k),
            in_specs=[
                pl.BlockSpec((1, C, tq), lambda b, qi, ki: (b, 0, qi)),  # x (query tile)
                pl.BlockSpec((1, C, S), lambda b, qi, ki: (b, 0, 0)),    # x (full seq, per batch)
                const_spec((D, C)), const_spec((D, 1)),                  # wq_f, bq_f
                const_spec((D, C)), const_spec((D, 1)),                  # wk_f, bk_f
                const_spec((D, C)), const_spec((D, 1)),                  # wv_f, bv_f
                const_spec((Cout, D)), const_spec((Cout, 1)),            # w_fin, b_fin
            ],
            out_specs=pl.BlockSpec((1, Cout, tq), lambda b, qi, ki: (b, 0, qi)),
            scratch_shapes=[
                pltpu.VMEM((heads, dh, tq), jnp.bfloat16),   # q tile (scale folded)
                pltpu.VMEM((heads, dh, S), jnp.bfloat16),    # K cache (whole seq of batch)
                pltpu.VMEM((heads, dh, S), jnp.bfloat16),    # V cache
                pltpu.VMEM((heads, 1, tq), jnp.float32),     # running max m
                pltpu.VMEM((heads, 1, tq), jnp.float32),     # running denom l
                pltpu.VMEM((heads, dh, tq), jnp.float32),    # output accumulator
            ],
        ),
        compiler_params=pltpu.CompilerParams(
            # Only the batch axis is "parallel": the K/V-cache fill is guarded on
            # (qi==0, ki==0), which is only valid if a single core owns all q/kv
            # tiles of a batch (v7x megacore safety).
            dimension_semantics=("parallel", "arbitrary", "arbitrary"),
            vmem_limit_bytes=48 * 1024 * 1024,
        ),
    )(x_bcs, x_bcs, wq_f, bq_f, wk_f, bk_f, wv_f, bv_f, w_fin, b_fin)

    # (B, Cout, S) -> NCHW: pure reshape, no transpose.
    return out_bcs.reshape(B, Cout, H, W)


def reference_forward(x_nchw, params, *, heads, scale):
    """Pure-JAX f32 reference with identical math (mirrors the PyTorch forward,
    using the UNFUSED parameters to also validate the wrapper-time folding)."""
    B, C, H, W = x_nchw.shape
    S = H * W
    x = jnp.transpose(x_nchw.reshape(B, C, S), (0, 2, 1)).astype(jnp.float32)  # (B,S,C)
    h = x @ params["w_in"].T + params["b_in"][:, 0]
    q = h @ params["wq"].T
    k = h @ params["wk"].T
    v = h @ params["wv"].T
    D = q.shape[-1]
    dh = D // heads
    q = q.reshape(B, S, heads, dh).transpose(0, 2, 1, 3)
    k = k.reshape(B, S, heads, dh).transpose(0, 2, 1, 3)
    v = v.reshape(B, S, heads, dh).transpose(0, 2, 1, 3)
    s = jnp.einsum("bhqd,bhkd->bhqk", q, k) * scale
    p = jax.nn.softmax(s, axis=-1)
    a = jnp.einsum("bhqk,bhkd->bhqd", p, v)
    a = a.transpose(0, 2, 1, 3).reshape(B, S, D)
    proj = a @ params["wo"].T + params["bo"][:, 0]
    out = proj @ params["w_out"].T + params["b_out"][:, 0]
    return jnp.transpose(out, (0, 2, 1)).reshape(B, -1, H, W)


def make_params(key, c_in, d):
    """Deterministic synthetic parameters in PyTorch (out, in) orientation.

    Conv2d 1x1 weight (out, in, 1, 1) is stored squeezed as (out, in); Linear
    weight is its native (out, in).  Biases stored as column vectors (out, 1).
    """
    ks = jax.random.split(key, 9)
    s = 0.1
    return {
        "w_in":  s * jax.random.normal(ks[0], (d, c_in), jnp.float32),   # in_adapter conv
        "b_in":  s * jax.random.normal(ks[1], (d, 1), jnp.float32),
        "wq":    s * jax.random.normal(ks[2], (d, d), jnp.float32),      # to_q (no bias)
        "wk":    s * jax.random.normal(ks[3], (d, d), jnp.float32),      # to_k
        "wv":    s * jax.random.normal(ks[4], (d, d), jnp.float32),      # to_v
        "wo":    s * jax.random.normal(ks[5], (d, d), jnp.float32),      # to_out[0]
        "bo":    s * jax.random.normal(ks[6], (d, 1), jnp.float32),
        "w_out": s * jax.random.normal(ks[7], (c_in, d), jnp.float32),   # out_adapter conv
        "b_out": s * jax.random.normal(ks[8], (c_in, 1), jnp.float32),
    }


if __name__ == "__main__":
    # Latent-like NCHW input whose channel count (4) differs from the attention
    # dim (32) -> both adapters are used (the interesting module path).
    B, C_in, H, W = 2, 4, 16, 16          # S = 256 -> collapsed grid (B, 1, 1)
    expected_dim = 32
    heads = 4
    head_dim = expected_dim // heads
    scale = head_dim ** (-0.5)

    key = jax.random.PRNGKey(0)
    k_x, k_p = jax.random.split(key)
    x = jax.random.normal(k_x, (B, C_in, H, W), jnp.float32)
    params = make_params(k_p, C_in, expected_dim)

    fwd = jax.jit(functools.partial(inflated_self_attention, heads=heads, scale=scale))
    out = jax.block_until_ready(fwd(x, params))

    ref = reference_forward(x, params, heads=heads, scale=scale)
    # bf16 operands + approx reciprocal (+ bf16 exp on v6e/v7x) -> loose tolerance.
    np.testing.assert_allclose(np.asarray(out), np.asarray(ref), rtol=1e-2, atol=1e-2)
    assert out.shape == (B, C_in, H, W)

    print("KERNEL_OK")
</pallas_src>

<mosaic_0001>
module attributes {stable_mosaic.version = 11 : i64} {
  func.func @_fused_attn_kernel(%arg0: i32, %arg1: i32, %arg2: i32, %arg3: memref<1x4x256xbf16, #tpu.memory_space<vmem>>, %arg4: memref<1x4x256xbf16, #tpu.memory_space<vmem>>, %arg5: memref<32x4xbf16, #tpu.memory_space<vmem>>, %arg6: memref<32x1xf32, #tpu.memory_space<vmem>>, %arg7: memref<32x4xbf16, #tpu.memory_space<vmem>>, %arg8: memref<32x1xf32, #tpu.memory_space<vmem>>, %arg9: memref<32x4xbf16, #tpu.memory_space<vmem>>, %arg10: memref<32x1xf32, #tpu.memory_space<vmem>>, %arg11: memref<4x32xbf16, #tpu.memory_space<vmem>>, %arg12: memref<4x1xf32, #tpu.memory_space<vmem>>, %arg13: memref<1x4x256xf32, #tpu.memory_space<vmem>>, %arg14: memref<4x8x256xbf16, #tpu.memory_space<vmem>>, %arg15: memref<4x8x256xbf16, #tpu.memory_space<vmem>>, %arg16: memref<4x8x256xbf16, #tpu.memory_space<vmem>>, %arg17: memref<4x1x256xf32, #tpu.memory_space<vmem>>, %arg18: memref<4x1x256xf32, #tpu.memory_space<vmem>>, %arg19: memref<4x8x256xf32, #tpu.memory_space<vmem>>) attributes {dimension_semantics = [#tpu.dimension_semantics<parallel>, #tpu.dimension_semantics<arbitrary>, #tpu.dimension_semantics<arbitrary>], iteration_bounds = array<i64: 2, 1, 1>, scalar_prefetch = 0 : i64, scratch_operands = 6 : i64, tpu.core_type = #tpu.core_type<tc>, window_params = [{transform_indices = @transform_0, window_bounds = array<i64: 1, 4, 256>}, {transform_indices = @transform_1, window_bounds = array<i64: 1, 4, 256>}, {pipeline_mode = #tpu.pipeline_mode<synchronous>, transform_indices = @transform_2, window_bounds = array<i64: 32, 4>}, {pipeline_mode = #tpu.pipeline_mode<synchronous>, transform_indices = @transform_3, window_bounds = array<i64: 32, 1>}, {pipeline_mode = #tpu.pipeline_mode<synchronous>, transform_indices = @transform_4, window_bounds = array<i64: 32, 4>}, {pipeline_mode = #tpu.pipeline_mode<synchronous>, transform_indices = @transform_5, window_bounds = array<i64: 32, 1>}, {pipeline_mode = #tpu.pipeline_mode<synchronous>, transform_indices = @transform_6, window_bounds = array<i64: 32, 4>}, {pipeline_mode = #tpu.pipeline_mode<synchronous>, transform_indices = @transform_7, window_bounds = array<i64: 32, 1>}, {pipeline_mode = #tpu.pipeline_mode<synchronous>, transform_indices = @transform_8, window_bounds = array<i64: 4, 32>}, {pipeline_mode = #tpu.pipeline_mode<synchronous>, transform_indices = @transform_9, window_bounds = array<i64: 4, 1>}, {transform_indices = @transform_10, window_bounds = array<i64: 1, 4, 256>}]} {
    %c0_i32 = arith.constant 0 : i32
    %0 = arith.cmpi eq, %arg1, %c0_i32 : i32
    %c0_i32_0 = arith.constant 0 : i32
    %1 = arith.cmpi eq, %arg2, %c0_i32_0 : i32
    %2 = arith.andi %0, %1 : i1
    %3 = arith.extui %2 : i1 to i32
    %c0_i32_1 = arith.constant 0 : i32
    %4 = arith.cmpi ne, %3, %c0_i32_1 : i32
    scf.if %4 {
      %c0_33 = arith.constant 0 : index
      %c0_34 = arith.constant 0 : index
      %c0_35 = arith.constant 0 : index
      %42 = vector.load %arg4[%c0_33, %c0_34, %c0_35] : memref<1x4x256xbf16, #tpu.memory_space<vmem>>, vector<1x4x256xbf16>
      %43 = vector.shape_cast %42 : vector<1x4x256xbf16> to vector<4x256xbf16>
      %c0_36 = arith.constant 0 : index
      %c0_37 = arith.constant 0 : index
      %44 = vector.load %arg7[%c0_36, %c0_37] : memref<32x4xbf16, #tpu.memory_space<vmem>>, vector<32x4xbf16>
      %cst_38 = arith.constant dense<0.000000e+00> : vector<32x256xf32>
      %45 = tpu.matmul %44, %43, %cst_38 {dimension_numbers = #tpu.dot_dimension_numbers<[1], [0], [0], [1], [0, 0, 1, 1], [], []>} : vector<32x4xbf16>, vector<4x256xbf16>, vector<32x256xf32> -> vector<32x256xf32>
      %c0_39 = arith.constant 0 : index
      %c0_40 = arith.constant 0 : index
      %46 = vector.load %arg8[%c0_39, %c0_40] : memref<32x1xf32, #tpu.memory_space<vmem>>, vector<32x1xf32>
      %47 = vector.broadcast %46 : vector<32x1xf32> to vector<32x256xf32>
      %48 = arith.addf %45, %47 : vector<32x256xf32>
      %c0_41 = arith.constant 0 : index
      %c0_42 = arith.constant 0 : index
      %49 = vector.load %arg9[%c0_41, %c0_42] : memref<32x4xbf16, #tpu.memory_space<vmem>>, vector<32x4xbf16>
      %cst_43 = arith.constant dense<0.000000e+00> : vector<32x256xf32>
      %50 = tpu.matmul %49, %43, %cst_43 {dimension_numbers = #tpu.dot_dimension_numbers<[1], [0], [0], [1], [0, 0, 1, 1], [], []>} : vector<32x4xbf16>, vector<4x256xbf16>, vector<32x256xf32> -> vector<32x256xf32>
      %c0_44 = arith.constant 0 : index
      %c0_45 = arith.constant 0 : index
      %51 = vector.load %arg10[%c0_44, %c0_45] : memref<32x1xf32, #tpu.memory_space<vmem>>, vector<32x1xf32>
      %52 = vector.broadcast %51 : vector<32x1xf32> to vector<32x256xf32>
      %53 = arith.addf %50, %52 : vector<32x256xf32>
      %54 = vector.shape_cast %48 : vector<32x256xf32> to vector<4x8x256xf32>
      %55 = arith.truncf %54 : vector<4x8x256xf32> to vector<4x8x256xbf16>
      %c0_46 = arith.constant 0 : index
      %c0_47 = arith.constant 0 : index
      %c0_48 = arith.constant 0 : index
      %56 = vector.load %arg15[%c0_46, %c0_47, %c0_48] : memref<4x8x256xbf16, #tpu.memory_space<vmem>>, vector<4x8x256xbf16>
      tpu.vector_store %arg15[%c0_46, %c0_47, %c0_48], %55 {strides = array<i32>} : memref<4x8x256xbf16, #tpu.memory_space<vmem>>, vector<4x8x256xbf16>,
      %57 = vector.shape_cast %53 : vector<32x256xf32> to vector<4x8x256xf32>
      %58 = arith.truncf %57 : vector<4x8x256xf32> to vector<4x8x256xbf16>
      %c0_49 = arith.constant 0 : index
      %c0_50 = arith.constant 0 : index
      %c0_51 = arith.constant 0 : index
      %59 = vector.load %arg16[%c0_49, %c0_50, %c0_51] : memref<4x8x256xbf16, #tpu.memory_space<vmem>>, vector<4x8x256xbf16>
      tpu.vector_store %arg16[%c0_49, %c0_50, %c0_51], %58 {strides = array<i32>} : memref<4x8x256xbf16, #tpu.memory_space<vmem>>, vector<4x8x256xbf16>,
    } else {
    }
    %c0_i32_2 = arith.constant 0 : i32
    %5 = arith.cmpi eq, %arg2, %c0_i32_2 : i32
    %6 = arith.extui %5 : i1 to i32
    %c0_i32_3 = arith.constant 0 : i32
    %7 = arith.cmpi ne, %6, %c0_i32_3 : i32
    scf.if %7 {
      %c0_33 = arith.constant 0 : index
      %c0_34 = arith.constant 0 : index
      %c0_35 = arith.constant 0 : index
      %42 = vector.load %arg3[%c0_33, %c0_34, %c0_35] : memref<1x4x256xbf16, #tpu.memory_space<vmem>>, vector<1x4x256xbf16>
      %43 = vector.shape_cast %42 : vector<1x4x256xbf16> to vector<4x256xbf16>
      %c0_36 = arith.constant 0 : index
      %c0_37 = arith.constant 0 : index
      %44 = vector.load %arg5[%c0_36, %c0_37] : memref<32x4xbf16, #tpu.memory_space<vmem>>, vector<32x4xbf16>
      %cst_38 = arith.constant dense<0.000000e+00> : vector<32x256xf32>
      %45 = tpu.matmul %44, %43, %cst_38 {dimension_numbers = #tpu.dot_dimension_numbers<[1], [0], [0], [1], [0, 0, 1, 1], [], []>} : vector<32x4xbf16>, vector<4x256xbf16>, vector<32x256xf32> -> vector<32x256xf32>
      %c0_39 = arith.constant 0 : index
      %c0_40 = arith.constant 0 : index
      %46 = vector.load %arg6[%c0_39, %c0_40] : memref<32x1xf32, #tpu.memory_space<vmem>>, vector<32x1xf32>
      %47 = vector.broadcast %46 : vector<32x1xf32> to vector<32x256xf32>
      %48 = arith.addf %45, %47 : vector<32x256xf32>
      %49 = vector.shape_cast %48 : vector<32x256xf32> to vector<4x8x256xf32>
      %50 = arith.truncf %49 : vector<4x8x256xf32> to vector<4x8x256xbf16>
      %c0_41 = arith.constant 0 : index
      %c0_42 = arith.constant 0 : index
      %c0_43 = arith.constant 0 : index
      %51 = vector.load %arg14[%c0_41, %c0_42, %c0_43] : memref<4x8x256xbf16, #tpu.memory_space<vmem>>, vector<4x8x256xbf16>
      tpu.vector_store %arg14[%c0_41, %c0_42, %c0_43], %50 {strides = array<i32>} : memref<4x8x256xbf16, #tpu.memory_space<vmem>>, vector<4x8x256xbf16>,
      %cst_44 = arith.constant 0xFF800000 : f32
      %52 = vector.broadcast %cst_44 : f32 to vector<4x1x256xf32>
      %c0_45 = arith.constant 0 : index
      %c0_46 = arith.constant 0 : index
      %c0_47 = arith.constant 0 : index
      %53 = vector.load %arg17[%c0_45, %c0_46, %c0_47] : memref<4x1x256xf32, #tpu.memory_space<vmem>>, vector<4x1x256xf32>
      tpu.vector_store %arg17[%c0_45, %c0_46, %c0_47], %52 {strides = array<i32>} : memref<4x1x256xf32, #tpu.memory_space<vmem>>, vector<4x1x256xf32>,
      %cst_48 = arith.constant 0.000000e+00 : f32
      %54 = vector.broadcast %cst_48 : f32 to vector<4x1x256xf32>
      %c0_49 = arith.constant 0 : index
      %c0_50 = arith.constant 0 : index
      %c0_51 = arith.constant 0 : index
      %55 = vector.load %arg18[%c0_49, %c0_50, %c0_51] : memref<4x1x256xf32, #tpu.memory_space<vmem>>, vector<4x1x256xf32>
      tpu.vector_store %arg18[%c0_49, %c0_50, %c0_51], %54 {strides = array<i32>} : memref<4x1x256xf32, #tpu.memory_space<vmem>>, vector<4x1x256xf32>,
      %cst_52 = arith.constant 0.000000e+00 : f32
      %56 = vector.broadcast %cst_52 : f32 to vector<4x8x256xf32>
      %c0_53 = arith.constant 0 : index
      %c0_54 = arith.constant 0 : index
      %c0_55 = arith.constant 0 : index
      %57 = vector.load %arg19[%c0_53, %c0_54, %c0_55] : memref<4x8x256xf32, #tpu.memory_space<vmem>>, vector<4x8x256xf32>
      tpu.vector_store %arg19[%c0_53, %c0_54, %c0_55], %56 {strides = array<i32>} : memref<4x8x256xf32, #tpu.memory_space<vmem>>, vector<4x8x256xf32>,
    } else {
    }
    %c256_i32 = arith.constant 256 : i32
    %8 = arith.muli %arg2, %c256_i32 : i32
    %9 = tpu.assume_multiple %8, 256 : i32
    %c0 = arith.constant 0 : index
    %c0_4 = arith.constant 0 : index
    %10 = arith.index_cast %9 : i32 to index
    %11 = vector.load %arg15[%c0, %c0_4, %10] : memref<4x8x256xbf16, #tpu.memory_space<vmem>>, vector<4x8x256xbf16>
    %c0_5 = arith.constant 0 : index
    %c0_6 = arith.constant 0 : index
    %12 = arith.index_cast %9 : i32 to index
    %13 = vector.load %arg16[%c0_5, %c0_6, %12] : memref<4x8x256xbf16, #tpu.memory_space<vmem>>, vector<4x8x256xbf16>
    %c0_7 = arith.constant 0 : index
    %c0_8 = arith.constant 0 : index
    %c0_9 = arith.constant 0 : index
    %14 = vector.load %arg14[%c0_7, %c0_8, %c0_9] : memref<4x8x256xbf16, #tpu.memory_space<vmem>>, vector<4x8x256xbf16>
    "tpu.trace_start"() <{level = 10 : i32, message = "hdk,hdq->hkq"}> : () -> ()
    %cst = arith.constant dense<0.000000e+00> : vector<4x256x256xf32>
    %15 = tpu.matmul %11, %14, %cst {dimension_numbers = #tpu.dot_dimension_numbers<[1], [1], [2], [2], [0, 0, 0, 2, 1, 2], [0], [0]>} : vector<4x8x256xbf16>, vector<4x8x256xbf16>, vector<4x256x256xf32> -> vector<4x256x256xf32>
    "tpu.trace_stop"() : () -> ()
    %c0_10 = arith.constant 0 : index
    %c0_11 = arith.constant 0 : index
    %c0_12 = arith.constant 0 : index
    %16 = vector.load %arg17[%c0_10, %c0_11, %c0_12] : memref<4x1x256xf32, #tpu.memory_space<vmem>>, vector<4x1x256xf32>
    %cst_13 = arith.constant dense<0xFF800000> : vector<4x256xf32>
    %17 = vector.multi_reduction <maximumf>, %15, %cst_13 [1] : vector<4x256x256xf32> to vector<4x256xf32>
    %18 = vector.shape_cast %17 : vector<4x256xf32> to vector<4x1x256xf32>
    %19 = arith.maximumf %16, %18 : vector<4x1x256xf32>
    %20 = arith.subf %16, %19 : vector<4x1x256xf32>
    %21 = math.exp %20 : vector<4x1x256xf32>
    %22 = vector.broadcast %19 : vector<4x1x256xf32> to vector<4x256x256xf32>
    %23 = arith.subf %15, %22 : vector<4x256x256xf32>
    %24 = math.exp %23 : vector<4x256x256xf32>
    %c0_14 = arith.constant 0 : index
    %c0_15 = arith.constant 0 : index
    %c0_16 = arith.constant 0 : index
    %25 = vector.load %arg18[%c0_14, %c0_15, %c0_16] : memref<4x1x256xf32, #tpu.memory_space<vmem>>, vector<4x1x256xf32>
    %26 = arith.mulf %21, %25 : vector<4x1x256xf32>
    %cst_17 = arith.constant dense<0.000000e+00> : vector<4x256xf32>
    %27 = vector.multi_reduction <add>, %24, %cst_17 [1] : vector<4x256x256xf32> to vector<4x256xf32>
    %28 = vector.shape_cast %27 : vector<4x256xf32> to vector<4x1x256xf32>
    %29 = arith.addf %26, %28 : vector<4x1x256xf32>
    %c0_18 = arith.constant 0 : index
    %c0_19 = arith.constant 0 : index
    %c0_20 = arith.constant 0 : index
    %30 = vector.load %arg18[%c0_18, %c0_19, %c0_20] : memref<4x1x256xf32, #tpu.memory_space<vmem>>, vector<4x1x256xf32>
    tpu.vector_store %arg18[%c0_18, %c0_19, %c0_20], %29 {strides = array<i32>} : memref<4x1x256xf32, #tpu.memory_space<vmem>>, vector<4x1x256xf32>,
    %c0_21 = arith.constant 0 : index
    %c0_22 = arith.constant 0 : index
    %c0_23 = arith.constant 0 : index
    %31 = vector.load %arg19[%c0_21, %c0_22, %c0_23] : memref<4x8x256xf32, #tpu.memory_space<vmem>>, vector<4x8x256xf32>
    %32 = vector.broadcast %21 : vector<4x1x256xf32> to vector<4x8x256xf32>
    %33 = arith.mulf %32, %31 : vector<4x8x256xf32>
    %34 = arith.truncf %24 : vector<4x256x256xf32> to vector<4x256x256xbf16>
    "tpu.trace_start"() <{level = 10 : i32, message = "hdk,hkq->hdq"}> : () -> ()
    %cst_24 = arith.constant dense<0.000000e+00> : vector<4x8x256xf32>
    %35 = tpu.matmul %13, %34, %cst_24 {dimension_numbers = #tpu.dot_dimension_numbers<[2], [1], [1], [2], [0, 0, 0, 1, 1, 2], [0], [0]>} : vector<4x8x256xbf16>, vector<4x256x256xbf16>, vector<4x8x256xf32> -> vector<4x8x256xf32>
    "tpu.trace_stop"() : () -> ()
    %36 = arith.addf %33, %35 : vector<4x8x256xf32>
    %c0_25 = arith.constant 0 : index
    %c0_26 = arith.constant 0 : index
    %c0_27 = arith.constant 0 : index
    %37 = vector.load %arg19[%c0_25, %c0_26, %c0_27] : memref<4x8x256xf32, #tpu.memory_space<vmem>>, vector<4x8x256xf32>
    tpu.vector_store %arg19[%c0_25, %c0_26, %c0_27], %36 {strides = array<i32>} : memref<4x8x256xf32, #tpu.memory_space<vmem>>, vector<4x8x256xf32>,
    %c0_28 = arith.constant 0 : index
    %c0_29 = arith.constant 0 : index
    %c0_30 = arith.constant 0 : index
    %38 = vector.load %arg17[%c0_28, %c0_29, %c0_30] : memref<4x1x256xf32, #tpu.memory_space<vmem>>, vector<4x1x256xf32>
    tpu.vector_store %arg17[%c0_28, %c0_29, %c0_30], %19 {strides = array<i32>} : memref<4x1x256xf32, #tpu.memory_space<vmem>>, vector<4x1x256xf32>,
    %c0_i32_31 = arith.constant 0 : i32
    %39 = arith.cmpi eq, %arg2, %c0_i32_31 : i32
    %40 = arith.extui %39 : i1 to i32
    %c0_i32_32 = arith.constant 0 : i32
    %41 = arith.cmpi ne, %40, %c0_i32_32 : i32
    scf.if %41 {
      %c0_33 = arith.constant 0 : index
      %c0_34 = arith.constant 0 : index
      %c0_35 = arith.constant 0 : index
      %42 = vector.load %arg18[%c0_33, %c0_34, %c0_35] : memref<4x1x256xf32, #tpu.memory_space<vmem>>, vector<4x1x256xf32>
      %43 = tpu.reciprocal %42 {approx = true} : vector<4x1x256xf32> -> vector<4x1x256xf32>
      %c0_36 = arith.constant 0 : index
      %c0_37 = arith.constant 0 : index
      %c0_38 = arith.constant 0 : index
      %44 = vector.load %arg19[%c0_36, %c0_37, %c0_38] : memref<4x8x256xf32, #tpu.memory_space<vmem>>, vector<4x8x256xf32>
      %45 = vector.broadcast %43 : vector<4x1x256xf32> to vector<4x8x256xf32>
      %46 = arith.mulf %44, %45 : vector<4x8x256xf32>
      %47 = vector.shape_cast %46 : vector<4x8x256xf32> to vector<32x256xf32>
      %48 = arith.truncf %47 : vector<32x256xf32> to vector<32x256xbf16>
      %c0_39 = arith.constant 0 : index
      %c0_40 = arith.constant 0 : index
      %49 = vector.load %arg11[%c0_39, %c0_40] : memref<4x32xbf16, #tpu.memory_space<vmem>>, vector<4x32xbf16>
      %cst_41 = arith.constant dense<0.000000e+00> : vector<4x256xf32>
      %50 = tpu.matmul %49, %48, %cst_41 {dimension_numbers = #tpu.dot_dimension_numbers<[1], [0], [0], [1], [0, 0, 1, 1], [], []>} : vector<4x32xbf16>, vector<32x256xbf16>, vector<4x256xf32> -> vector<4x256xf32>
      %c0_42 = arith.constant 0 : index
      %c0_43 = arith.constant 0 : index
      %51 = vector.load %arg12[%c0_42, %c0_43] : memref<4x1xf32, #tpu.memory_space<vmem>>, vector<4x1xf32>
      %52 = vector.broadcast %51 : vector<4x1xf32> to vector<4x256xf32>
      %53 = arith.addf %50, %52 : vector<4x256xf32>
      %c0_44 = arith.constant 0 : index
      %c0_45 = arith.constant 0 : index
      %c0_46 = arith.constant 0 : index
      %54 = vector.load %arg13[%c0_44, %c0_45, %c0_46] : memref<1x4x256xf32, #tpu.memory_space<vmem>>, vector<1x4x256xf32>
      %55 = vector.shape_cast %54 : vector<1x4x256xf32> to vector<4x256xf32>
      %56 = vector.shape_cast %53 : vector<4x256xf32> to vector<1x4x256xf32>
      tpu.vector_store %arg13[%c0_44, %c0_45, %c0_46], %56 {strides = array<i32>} : memref<1x4x256xf32, #tpu.memory_space<vmem>>, vector<1x4x256xf32>,
    } else {
    }
    return
  }
  func.func @transform_0(%arg0: i32, %arg1: i32, %arg2: i32) -> (i32, i32, i32) {
    %c0_i32 = arith.constant 0 : i32
    %c0_i32_0 = arith.constant 0 : i32
    return %arg0, %c0_i32, %arg1 : i32, i32, i32
  }
  func.func @transform_1(%arg0: i32, %arg1: i32, %arg2: i32) -> (i32, i32, i32) {
    %c0_i32 = arith.constant 0 : i32
    %c0_i32_0 = arith.constant 0 : i32
    %c0_i32_1 = arith.constant 0 : i32
    return %arg0, %c0_i32, %c0_i32_0 : i32, i32, i32
  }
  func.func @transform_2(%arg0: i32, %arg1: i32, %arg2: i32) -> (i32, i32) {
    %c0_i32 = arith.constant 0 : i32
    %c0_i32_0 = arith.constant 0 : i32
    %c0_i32_1 = arith.constant 0 : i32
    return %c0_i32, %c0_i32_0 : i32, i32
  }
  func.func @transform_3(%arg0: i32, %arg1: i32, %arg2: i32) -> (i32, i32) {
    %c0_i32 = arith.constant 0 : i32
    %c0_i32_0 = arith.constant 0 : i32
    %c0_i32_1 = arith.constant 0 : i32
    return %c0_i32, %c0_i32_0 : i32, i32
  }
  func.func @transform_4(%arg0: i32, %arg1: i32, %arg2: i32) -> (i32, i32) {
    %c0_i32 = arith.constant 0 : i32
    %c0_i32_0 = arith.constant 0 : i32
    %c0_i32_1 = arith.constant 0 : i32
    return %c0_i32, %c0_i32_0 : i32, i32
  }
  func.func @transform_5(%arg0: i32, %arg1: i32, %arg2: i32) -> (i32, i32) {
    %c0_i32 = arith.constant 0 : i32
    %c0_i32_0 = arith.constant 0 : i32
    %c0_i32_1 = arith.constant 0 : i32
    return %c0_i32, %c0_i32_0 : i32, i32
  }
  func.func @transform_6(%arg0: i32, %arg1: i32, %arg2: i32) -> (i32, i32) {
    %c0_i32 = arith.constant 0 : i32
    %c0_i32_0 = arith.constant 0 : i32
    %c0_i32_1 = arith.constant 0 : i32
    return %c0_i32, %c0_i32_0 : i32, i32
  }
  func.func @transform_7(%arg0: i32, %arg1: i32, %arg2: i32) -> (i32, i32) {
    %c0_i32 = arith.constant 0 : i32
    %c0_i32_0 = arith.constant 0 : i32
    %c0_i32_1 = arith.constant 0 : i32
    return %c0_i32, %c0_i32_0 : i32, i32
  }
  func.func @transform_8(%arg0: i32, %arg1: i32, %arg2: i32) -> (i32, i32) {
    %c0_i32 = arith.constant 0 : i32
    %c0_i32_0 = arith.constant 0 : i32
    %c0_i32_1 = arith.constant 0 : i32
    return %c0_i32, %c0_i32_0 : i32, i32
  }
  func.func @transform_9(%arg0: i32, %arg1: i32, %arg2: i32) -> (i32, i32) {
    %c0_i32 = arith.constant 0 : i32
    %c0_i32_0 = arith.constant 0 : i32
    %c0_i32_1 = arith.constant 0 : i32
    return %c0_i32, %c0_i32_0 : i32, i32
  }
  func.func @transform_10(%arg0: i32, %arg1: i32, %arg2: i32) -> (i32, i32, i32) {
    %c0_i32 = arith.constant 0 : i32
    %c0_i32_0 = arith.constant 0 : i32
    return %arg0, %c0_i32, %arg1 : i32, i32, i32
  }
}

</mosaic_0001>

<bundles_post_ra>
// kernel: inflated_self_attention.1
= control target key start
LH: loop header
LB: loop body
LE: loop exit
PB: predicated region body
PF: predicated region fallthrough
CT: control target
= control target key end

     0   :  { %s5397_s13 = smov 0   ;;  %s5399_s14 = smov 0   ;;  %s8919_s0 = inlined_call_operand.vmem [shape: bf16[2,4,256], index: 0, kind: input, shape index: {}, may-alias: {0,1}]   ;;  %s8920_s1 = inlined_call_operand.vmem [shape: bf16[2,4,256], index: 1, kind: input, shape index: {}, may-alias: {0,1}]   ;;  %s8921_s2 = inlined_call_operand.vmem [shape: bf16[32,4], index: 2, kind: input, shape index: {}]   ;;  %s8922_s3 = inlined_call_operand.vmem [shape: f32[32,1], index: 3, kind: input, shape index: {}]   ;;  %s8923_s4 = inlined_call_operand.vmem [shape: bf16[32,4], index: 4, kind: input, shape index: {}]   ;;  %s8924_s5 = inlined_call_operand.vmem [shape: f32[32,1], index: 5, kind: input, shape index: {}]   ;;  %s8925_s6 = inlined_call_operand.vmem [shape: bf16[32,4], index: 6, kind: input, shape index: {}]   ;;  %s8926_s7 = inlined_call_operand.vmem [shape: f32[32,1], index: 7, kind: input, shape index: {}]   ;;  %s8927_s8 = inlined_call_operand.vmem [shape: bf16[4,32], index: 8, kind: input, shape index: {}]   ;;  %s8928_s9 = inlined_call_operand.vmem [shape: f32[4,1], index: 9, kind: input, shape index: {}]   ;;  %s8929_s10 = inlined_call_operand.vmem [shape: f32[2,4,256], index: 10, kind: output, shape index: {}]  }
   0x1   :  { %s5401_s15 = smov 0  }
   0x2 LB: > { %s39_s16 = sadd.s32 1, %s5333_s14  ;;  %p4573_p0 = scmp.ge.s32.totalorder %s5337_s15, 1  ;;  %s5337_s15 = sphi %s5401_s15, %s20_s15   ;;  %s5333_s14 = sphi %s5399_s14, %s10132_s14   ;;  %s5329_s13 = sphi %s5397_s13, %s10131_s13  }
   0x3   : > { %p41_p1 = scmp.ge.s32.totalorder %s39_s16, 2  ;;  %p350_p2 = scmp.lt.s32.totalorder %s5337_s15, 3 }
   0x5   : > { %s10134_s16 = smov (%p41_p1, %s39_s16), 0  ;;  %p351_p3 = pnand %p4573_p0, %p350_p2 }
   0x7   : > { %354 = sbr.rel (%p351_p3) target bundleno = 1657 (0x679), region = 60 }
   0xc   : > { %v438_v0 = vld [vmem:[%s8924_s5] sm:$0xff]  ;;  %p402_p4 = scmp.lt.s32.totalorder %s5329_s13, 1  ;;  %v5339_v1 = vmov 0   ;;  %v439_v2 = vld [vmem:[%s8924_s5 + $0x8] sm:$0xff]  ;;  %vm483_vm0 = vcmask 1041408   ;;  %v440_v10 = vld [vmem:[%s8924_s5 + $0x10] sm:$0xff] }
   0xd   : > { %4784 = vset.pattern.permute.xlu0 %v5339_v1  ;;  %4785 = vset.pattern.permute.xlu1 %v5339_v1  ;;  %v639_v4 = vld [vmem:[%s8922_s3] sm:$0xff]  ;;  %vm476_vm1 = vcmask 31744   ;;  %v640_v11 = vld [vmem:[%s8922_s3 + $0x8] sm:$0xff]  ;;  %v441_v15 = vld [vmem:[%s8924_s5 + $0x18] sm:$0xff]  ;;  %vm859_vm2 = vcmask 1043456   ;;  %vm810_vm3 = vcmask 64512  }
   0xe   : > { %444 = vperm.xlu0 %4784, %v438_v0   ;;  %s10136_s13 = smov (!%p402_p4, %s5329_s13), 1  ;;  %449 = vperm.xlu1 %4785, %v439_v2   ;;  %v4751_v9 = vld [vmem:[%s8923_s4] sm:$0xff]  ;;  %v641_v16 = vld [vmem:[%s8922_s3 + $0x10] sm:$0xff]  ;;  %v4752_v19 = vld [vmem:[%s8923_s4 + $0x8] sm:$0xff]  ;;  %vm2160_vm5 = vcmask 1040384   ;;  %vm4427_vm6 = vcmask 261120  }
   0xf   : > { %s4748_s21 = sshll.u32 %s10136_s13, 2  ;;  %v4755_v22 = vld [vmem:[%s8921_s2] sm:$0xff]  ;;  %v642_v23 = vld [vmem:[%s8922_s3 + $0x18] sm:$0xff]  ;;  %v4756_v24 = vld [vmem:[%s8921_s2 + $0x8] sm:$0xff]  ;;  %s4750_s12 = sshll.u32 %s10136_s13, 3 }
  0x10   : > { %s415_s24 = scalar_lea.vmem %s8920_s1, %s4748_s21  ;;  %s409_s17 = scalar_lea.vmem %s8919_s0, %s4748_s21 }
  0x11   : > { %v433_v3 = vld [vmem:[%s415_s24] sm:$0xf]  ;;  %s424_s19 = scalar_lea.vmem %s8929_s10, %s4750_s12 }
  0x12   : > { %473 = vst [vmem:[#allocation1] ss:$4 sm:$0xff] %v433_v3  ;;  %v634_v12 = vld [vmem:[%s409_s17] sm:$0xf] }
  0x16   : > { %645 = vperm.xlu0 %4784, %v639_v4   ;;  %650 = vperm.xlu1 %4785, %v640_v11  }
  0x19   : > { %v474_v5 = vld.sshfl [vmem:[#allocation1] sm:$0xff pattern:$0x73625140]  ;;  %v475_v6 = vld.sshfl [vmem:[#allocation1 + $0x8] sm:$0xff pattern:$0x73625140] }
  0x1a   : > { %v484_v7 = vsel %vm483_vm0, %v474_v5, 0  ;;  %v486_v8 = vsel %vm483_vm0, %v475_v6, 0  ;;  %564 = vst [vmem:[#allocation1] ss:$4 sm:$0xff] %v433_v3 }
  0x1b   : > { %495 = vmatpush.bf16.msra.mxu0 %v484_v7  ;;  %514 = vmatpush.bf16.msra.mxu1 %v486_v8 }
  0x1e   : > { %454 = vperm.xlu0 %4784, %v440_v10   ;;  %4588 = vmatmul.msk.bf16.vlgmr.msra.gmra.mxu0 %vm476_vm1, %v4751_v9 }
  0x1f   : > { %4590 = vmatmul.msk.bf16.vlgmr.msra.gmra.mxu1 %vm476_vm1, %v4751_v9  ;;  %655 = vperm.xlu1 %4785, %v641_v16  }
  0x21   : > { %v565_v13 = vld.sshfl [vmem:[#allocation1] sm:$0xff pattern:$0x73625140]  ;;  %v566_v14 = vld.sshfl [vmem:[#allocation1 + $0x8] sm:$0xff pattern:$0x73625140] }
  0x22   : > { %674 = vst [vmem:[#allocation1] ss:$4 sm:$0xff] %v634_v12  ;;  %v573_v32 = vsel %vm483_vm0, %v565_v13, 0  ;;  %v575_v33 = vsel %vm483_vm0, %v566_v14, 0 }
  0x23   : > { %584 = vmatpush.bf16.msra.mxu2 %v573_v32  ;;  %603 = vmatpush.bf16.msra.mxu3 %v575_v33 }
  0x26   : > { %459 = vperm.xlu0 %4784, %v441_v15  }
  0x27   : > { %660 = vperm.xlu1 %4785, %v642_v23  }
  0x29   : > { %v675_v17 = vld.sshfl [vmem:[#allocation1] sm:$0xff pattern:$0x73625140]  ;;  %v676_v18 = vld.sshfl [vmem:[#allocation1 + $0x8] sm:$0xff pattern:$0x73625140] }
  0x2a   : > { %v685_v20 = vsel %vm483_vm0, %v675_v17, 0  ;;  %v687_v21 = vsel %vm483_vm0, %v676_v18, 0 }
  0x2b   : > { %696 = vmatpush.bf16.msrb.mxu0 %v685_v20  ;;  %715 = vmatpush.bf16.msrb.mxu1 %v687_v21 }
  0x2e   : > { %4589 = vmatmul.msk.bf16.gmra.mxu0 %vm476_vm1, %v4752_v19 }
  0x2f   : > { %4591 = vmatmul.msk.bf16.gmra.mxu1 %vm476_vm1, %v4752_v19 }
  0x3e   : > { %4612 = vmatmul.msk.bf16.vlgmr.msrb.gmra.mxu0 %vm476_vm1, %v4755_v22 }
  0x3f   : > { %4614 = vmatmul.msk.bf16.vlgmr.msrb.gmra.mxu1 %vm476_vm1, %v4755_v22 }
  0x4e   : > { %4613 = vmatmul.msk.bf16.gmra.mxu0 %vm476_vm1, %v4756_v24 }
  0x4f   : > { %4615 = vmatmul.msk.bf16.gmra.mxu1 %vm476_vm1, %v4756_v24 }
  0x80   : > { %v445_v25 = vpop.permute.xlu0 %444  ;;  %v450_v8 = vpop.permute.xlu1 %449 }
  0x88   : > { %v646_v30 = vpop.permute.xlu0 %645  ;;  %v651_v9 = vpop.permute.xlu1 %650 }
  0x90   : > { %v455_v40 = vpop.permute.xlu0 %454 }
  0x91   : > { %v656_v12 = vpop.permute.xlu1 %655 }
  0x98   : > { %v460_v48 = vpop.permute.xlu0 %459 }
  0x99   : > { %v661_v17 = vpop.permute.xlu1 %660 }
  0x9b   : > { %v497_v26 = vpop.f32.mrf.mxu0 }
  0x9c   : > { %v516_v27 = vpop.f32.mrf.mxu1  ;;  %v498_v28 = vadd.f32 %v497_v26, %v445_v25 }
  0x9d   : > { %v517_v29 = vadd.f32 %v516_v27, %v445_v25 }
  0x9f   : > { %v615_v31 = vpack.c.bf16 %v517_v29, %v498_v28 }
  0xa1   : > { %v775_v34 = vunpack.c.l.b16 %v615_v31  ;;  %v776_v35 = vunpack.c.h.b16 %v615_v31 }
  0xa3   : > { %v777_v36 = vpack.c.b16 %v775_v34, %v775_v34  ;;  %v778_v37 = vpack.c.b16 %v776_v35, %v776_v35  ;;  %v5476_v38 = vpop.f32.mrf.mxu0 }
  0xa4   : > { %v5478_v39 = vpop.f32.mrf.mxu1 }
  0xa5   : > { %781 = vxpose.binary.xlu2.c.b16.start.end [1/2] (short) %v778_v37, %v777_v36, 128 }
  0xab   : > { %v502_v41 = vpop.f32.mrf.mxu0 }
  0xac   : > { %v521_v42 = vpop.f32.mrf.mxu1  ;;  %v503_v43 = vadd.f32 %v502_v41, %v455_v40 }
  0xad   : > { %v522_v44 = vadd.f32 %v521_v42, %v455_v40 }
  0xaf   : > { %v617_v45 = vpack.c.bf16 %v522_v44, %v503_v43  ;;  %v4753_v43 = vld [vmem:[%s8925_s6] sm:$0xff] }
  0xb0   : > { %4600 = vmatmul.msk.bf16.vlgmr.msra.gmra.mxu2 %vm476_vm1, %v4753_v43  ;;  %4602 = vmatmul.msk.bf16.vlgmr.msra.gmra.mxu3 %vm476_vm1, %v4753_v43 }
  0xb1   : > { %v1313_v46 = vunpack.c.l.b16 %v617_v45  ;;  %v1314_v47 = vunpack.c.h.b16 %v617_v45 }
  0xb3   : > { %v1315_v49 = vpack.c.b16 %v1313_v46, %v1313_v46  ;;  %v1316_v50 = vpack.c.b16 %v1314_v47, %v1314_v47  ;;  %v504_v51 = vpop.f32.mrf.mxu0 }
  0xb4   : > { %v523_v52 = vpop.f32.mrf.mxu1  ;;  %v505_v53 = vadd.f32 %v504_v51, %v460_v48 }
  0xb5   : > { %v524_v54 = vadd.f32 %v523_v52, %v460_v48  ;;  %1319 = vxpose.binary.xlu0.c.b16.start.end [1/2] (short) %v1316_v50, %v1315_v49, 128  ;;  %v4754_v48 = vld [vmem:[%s8925_s6 + $0x8] sm:$0xff]  ;;  %v500_v49 = vadd.f32 %v5476_v38, %v450_v8  ;;  %v519_v50 = vadd.f32 %v5478_v39, %v450_v8  ;;  %v530_v8 = vld [vmem:[%s8926_s7] sm:$0xff] }
  0xb7   : > { %v618_v55 = vpack.c.bf16 %v524_v54, %v505_v53  ;;  %v616_v51 = vpack.c.bf16 %v519_v50, %v500_v49 }
  0xb9   : > { %v1581_v56 = vunpack.c.l.b16 %v618_v55  ;;  %v1582_v57 = vunpack.c.h.b16 %v618_v55  ;;  %v1045_v52 = vunpack.c.l.b16 %v616_v51  ;;  %v1046_v53 = vunpack.c.h.b16 %v616_v51 }
  0xbb   : > { %v1583_v58 = vpack.c.b16 %v1581_v56, %v1581_v56  ;;  %v1584_v59 = vpack.c.b16 %v1582_v57, %v1582_v57  ;;  %v698_v60 = vpop.f32.mrf.mxu0  ;;  %v1047_v54 = vpack.c.b16 %v1045_v52, %v1045_v52  ;;  %v1048_v55 = vpack.c.b16 %v1046_v53, %v1046_v53 }
  0xbc   : > { %v717_v61 = vpop.f32.mrf.mxu1  ;;  %v699_v62 = vadd.f32 %v698_v60, %v646_v30 }
  0xbd   : > { %v718_v63 = vadd.f32 %v717_v61, %v646_v30  ;;  %1587 = vxpose.binary.xlu1.c.b16.start.end [1/2] (short) %v1584_v59, %v1583_v58, 128 }
  0xbf   : > { %v727_v0 = vpack.c.bf16 %v718_v63, %v699_v62 }
  0xc0   : > { %4601 = vmatmul.msk.bf16.gmra.mxu2 %vm476_vm1, %v4754_v48  ;;  %4603 = vmatmul.msk.bf16.gmra.mxu3 %vm476_vm1, %v4754_v48 }
  0xc1   : > { %v806_v2 = vunpack.c.l.b16 %v727_v0  ;;  %v807_v3 = vunpack.c.h.b16 %v727_v0 }
  0xc3   : > { %v808_v4 = vpack.c.b16 %v806_v2, %v806_v2  ;;  %v809_v5 = vpack.c.b16 %v807_v3, %v807_v3  ;;  %v700_v10 = vpop.f32.mrf.mxu0  ;;  %v531_v3 = vld [vmem:[%s8926_s7 + $0x8] sm:$0xff] }
  0xc4   : > { %v719_v11 = vpop.f32.mrf.mxu1  ;;  %v701_v18 = vadd.f32 %v700_v10, %v651_v9 }
  0xc5   : > { %v861_v6 = vsel %vm859_vm2, %v808_v4, 0  ;;  %v864_v7 = vsel %vm859_vm2, %v809_v5, 0  ;;  %v720_v19 = vadd.f32 %v719_v11, %v651_v9 }
  0xc6   : > { %873 = vmatpush.bf16.msrb.mxu2 %v861_v6  ;;  %962 = vmatpush.bf16.msrb.mxu3 %v864_v7  ;;  %v533_v6 = vld [vmem:[%s8926_s7 + $0x18] sm:$0xff] }
  0xc7   : > { %v728_v25 = vpack.c.bf16 %v720_v19, %v701_v18 }
  0xc9   : > { %v1076_v29 = vunpack.c.l.b16 %v728_v25  ;;  %v1077_v30 = vunpack.c.h.b16 %v728_v25 }
  0xcb   : > { %v703_v13 = vpop.f32.mrf.mxu0  ;;  %v1078_v35 = vpack.c.b16 %v1076_v29, %v1076_v29  ;;  %v1079_v36 = vpack.c.b16 %v1077_v30, %v1077_v30 }
  0xcc   : > { %v722_v14 = vpop.f32.mrf.mxu1  ;;  %v704_v15 = vadd.f32 %v703_v13, %v656_v12 }
  0xcd   : > { %v723_v16 = vadd.f32 %v722_v14, %v656_v12  ;;  %v1129_v41 = vsel %vm859_vm2, %v1078_v35, 0  ;;  %v1132_v42 = vsel %vm859_vm2, %v1079_v36, 0 }
  0xce   : > { %1141 = vmatpush.bf16.msra.mxu0 %v1129_v41  ;;  %1230 = vmatpush.bf16.msra.mxu1 %v1132_v42 }
  0xcf   : > { %v729_v24 = vpack.c.bf16 %v723_v16, %v704_v15 }
  0xd1   : > { %v1344_v27 = vunpack.c.l.b16 %v729_v24  ;;  %v1345_v28 = vunpack.c.h.b16 %v729_v24 }
  0xd3   : > { %v705_v20 = vpop.f32.mrf.mxu0  ;;  %v1346_v33 = vpack.c.b16 %v1344_v27, %v1344_v27  ;;  %v1347_v34 = vpack.c.b16 %v1345_v28, %v1345_v28 }
  0xd4   : > { %v724_v21 = vpop.f32.mrf.mxu1  ;;  %v706_v22 = vadd.f32 %v705_v20, %v661_v17 }
  0xd5   : > { %v725_v23 = vadd.f32 %v724_v21, %v661_v17  ;;  %v1397_v44 = vsel %vm859_vm2, %v1346_v33, 0  ;;  %v1400_v45 = vsel %vm859_vm2, %v1347_v34, 0 }
  0xd6   : > { %1409 = vmatpush.bf16.msra.mxu2 %v1397_v44  ;;  %1498 = vmatpush.bf16.msra.mxu3 %v1400_v45 }
  0xd7   : > { %v730_v26 = vpack.c.bf16 %v725_v23, %v706_v22 }
  0xd9   : > { %v1612_v31 = vunpack.c.l.b16 %v730_v26  ;;  %v1613_v32 = vunpack.c.h.b16 %v730_v26 }
  0xdb   : > { %v1614_v37 = vpack.c.b16 %v1612_v31, %v1612_v31  ;;  %v1615_v40 = vpack.c.b16 %v1613_v32, %v1613_v32 }
  0xdd   : > { %v1665_v46 = vsel %vm859_vm2, %v1614_v37, 0  ;;  %v1668_v47 = vsel %vm859_vm2, %v1615_v40, 0 }
  0xde   : > { %1677 = vmatpush.bf16.msrb.mxu0 %v1665_v46  ;;  %1766 = vmatpush.bf16.msrb.mxu1 %v1668_v47 }
 0x125   : > { %1051 = vxpose.binary.xlu2.c.b16.start.end [1/2] (short) %v1048_v55, %v1047_v54, 128 }
 0x133   : > { %v5549_v13 = vpop.f32.mrf.mxu2  ;;  %v5553_v15 = vpop.f32.mrf.mxu3 }
 0x134   : > { %9293 = vst [vmem:[#allocation13_spill] sm:$0xff] %v5549_v13 }
 0x135   : > { %9295 = vst [vmem:[#allocation15_spill] sm:$0xff] %v5553_v15 }
 0x13b   : > { %v5559_v18 = vpop.f32.mrf.mxu2  ;;  %v5561_v19 = vpop.f32.mrf.mxu3 }
 0x13c   : > { %9297 = vst [vmem:[#allocation17_spill] sm:$0xff] %v5559_v18 }
 0x13d   : > { %9298 = vst [vmem:[#allocation18_spill] sm:$0xff] %v5561_v19 }
 0x143   : > { %v5567_v22 = vpop.f32.mrf.mxu2  ;;  %v5569_v24 = vpop.f32.mrf.mxu3 }
 0x144   : > { %9300 = vst [vmem:[#allocation20_spill] sm:$0xff] %v5567_v22 }
 0x145   : > { %9301 = vst [vmem:[#allocation21_spill] sm:$0xff] %v5569_v24 }
 0x146   : > { %v789_v56 = vpop.trf.xlu2 }
 0x147   : > { %4616 = vmatmul.msk.bf16.vlgmr.msrb.gmra.mxu2 %vm810_vm3, %v789_v56  ;;  %4632 = vmatmul.msk.bf16.vlgmr.msrb.gmra.mxu3 %vm810_vm3, %v789_v56 }
 0x14b   : > { %v593_v27 = vpop.f32.mrf.mxu2  ;;  %v612_v28 = vpop.f32.mrf.mxu3 }
 0x14e   : > { %v790_v57 = vpop.trf.xlu2 }
 0x156   : > { %v791_v58 = vpop.trf.xlu2 }
 0x157   : > { %4617 = vmatmul.msk.bf16.gmra.mxu2 %vm810_vm3, %v791_v58  ;;  %4633 = vmatmul.msk.bf16.gmra.mxu3 %vm810_vm3, %v791_v58  ;;  %v532_v58 = vld [vmem:[%s8926_s7 + $0x10] sm:$0xff] }
 0x15e   : > { %v5504_v38 = vpop.trf.xlu2 }
 0x166   : > { %v793_v39 = vpop.trf.xlu2 }
 0x167   : > { %4618 = vmatmul.msk.bf16.gmra.mxu2 %vm810_vm3, %v793_v39  ;;  %4634 = vmatmul.msk.bf16.gmra.mxu3 %vm810_vm3, %v793_v39 }
 0x169   : > { %v5508_v59 = vpop.trf.xlu1 }
 0x16e   : > { %v5510_v60 = vpop.trf.xlu2 }
 0x171   : > { %v5512_v61 = vpop.trf.xlu1 }
 0x172   : > { %9288 = vst [vmem:[#allocation8_spill] sm:$0xff] %v5512_v61 }
 0x176   : > { %v795_v62 = vpop.trf.xlu2 }
 0x177   : > { %4619 = vmatmul.msk.bf16.gmra.mxu2 %vm810_vm3, %v795_v62  ;;  %4635 = vmatmul.msk.bf16.gmra.mxu3 %vm810_vm3, %v795_v62 }
 0x179   : > { %v5516_v63 = vpop.trf.xlu1 }
 0x17e   : > { %v5518_v0 = vpop.trf.xlu2 }
 0x181   : > { %v5520_v2 = vpop.trf.xlu1 }
 0x182   : > { %9289 = vst [vmem:[#allocation9_spill] sm:$0xff] %v5520_v2 }
 0x186   : > { %v797_v4 = vpop.trf.xlu2 }
 0x187   : > { %541 = vperm.xlu1 %4785, %v531_v3   ;;  %4620 = vmatmul.msk.bf16.gmra.mxu2 %vm810_vm3, %v797_v4 }
 0x188   : > { %4636 = vmatmul.msk.bf16.gmra.mxu3 %vm810_vm3, %v797_v4  ;;  %4786 = vset.pattern.permute.xlu2 %v5339_v1  ;;  %v4421_v1 = vld [vmem:[%s8928_s9] sm:$0xf] }
 0x189   : > { %v5528_v5 = vpop.trf.xlu1 }
 0x18a   : > { %9290 = vst [vmem:[#allocation10_spill] sm:$0xff] %v5528_v5 }
 0x18e   : > { %v5533_v7 = vpop.trf.xlu2 }
 0x18f   : > { %551 = vperm.xlu1 %4785, %v533_v6  }
 0x191   : > { %v5538_v9 = vpop.trf.xlu1 }
 0x192   : > { %9291 = vst [vmem:[#allocation11_spill] sm:$0xff] %v5538_v9 }
 0x193   : > { %536 = vperm.xlu0 %4784, %v530_v8  }
 0x196   : > { %v799_v10 = vpop.trf.xlu2 }
 0x197   : > { %4621 = vmatmul.msk.bf16.gmra.mxu2 %vm810_vm3, %v799_v10 }
 0x198   : > { %4637 = vmatmul.msk.bf16.gmra.mxu3 %vm810_vm3, %v799_v10 }
 0x199   : > { %v5545_v11 = vpop.trf.xlu1 }
 0x19a   : > { %9292 = vst [vmem:[#allocation12_spill] sm:$0xff] %v5545_v11 }
 0x19b   : > { %4424 = vperm.xlu0 %4784, %v4421_v1  }
 0x19e   : > { %v5547_v12 = vpop.trf.xlu2 }
 0x1a1   : > { %v5551_v14 = vpop.trf.xlu1 }
 0x1a2   : > { %9294 = vst [vmem:[#allocation14_spill] sm:$0xff] %v5551_v14 }
 0x1a6   : > { %v801_v16 = vpop.trf.xlu2 }
 0x1a7   : > { %4622 = vmatmul.msk.bf16.gmra.mxu2 %vm810_vm3, %v801_v16 }
 0x1a8   : > { %4638 = vmatmul.msk.bf16.gmra.mxu3 %vm810_vm3, %v801_v16 }
 0x1a9   : > { %v5557_v17 = vpop.trf.xlu1 }
 0x1aa   : > { %9296 = vst [vmem:[#allocation16_spill] sm:$0xff] %v5557_v17 }
 0x1ae   : > { %v5563_v20 = vpop.trf.xlu2 }
 0x1b1   : > { %v5565_v21 = vpop.trf.xlu1 }
 0x1b2   : > { %9299 = vst [vmem:[#allocation19_spill] sm:$0xff] %v5565_v21 }
 0x1b6   : > { %v803_v23 = vpop.trf.xlu2 }
 0x1b7   : > { %4623 = vmatmul.msk.bf16.gmra.mxu2 %vm810_vm3, %v803_v23 }
 0x1b8   : > { %4639 = vmatmul.msk.bf16.gmra.mxu3 %vm810_vm3, %v803_v23 }
 0x1b9   : > { %v5573_v25 = vpop.trf.xlu1 }
 0x1ba   : > { %9302 = vst [vmem:[#allocation22_spill] sm:$0xff] %v5573_v25 }
 0x1be   : > { %v5575_v26 = vpop.trf.xlu2 }
 0x1c1   : > { %v5579_v30 = vpop.trf.xlu1 }
 0x1c2   : > { %9303 = vst [vmem:[#allocation23_spill] sm:$0xff] %v5579_v30 }
 0x1c6   : > { %v1059_v29 = vpop.trf.xlu2 }
 0x1c7   : > { %4624 = vmatmul.msk.bf16.gmra.mxu2 %vm810_vm3, %v790_v57  ;;  %4648 = vmatmul.msk.bf16.vlgmr.msra.gmra.mxu0 %vm810_vm3, %v1059_v29 }
 0x1c8   : > { %4640 = vmatmul.msk.bf16.gmra.mxu3 %vm810_vm3, %v790_v57  ;;  %4664 = vmatmul.msk.bf16.vlgmr.msra.gmra.mxu1 %vm810_vm3, %v1059_v29 }
 0x1c9   : > { %v5589_v34 = vpop.trf.xlu1 }
 0x1ca   : > { %v5583_v31 = vpop.f32.mrf.mxu2  ;;  %v5585_v32 = vpop.f32.mrf.mxu3  ;;  %9305 = vst [vmem:[#allocation25_spill] sm:$0xff] %v5589_v34 }
 0x1cb   : > { %9304 = vst [vmem:[#allocation24_spill] sm:$0xff] %v5585_v32 }
 0x1ce   : > { %v5587_v33 = vpop.trf.xlu2 }
 0x1d1   : > { %v5605_v42 = vpop.trf.xlu1 }
 0x1d2   : > { %v5591_v35 = vpop.f32.mrf.mxu2  ;;  %v5593_v36 = vpop.f32.mrf.mxu3  ;;  %9309 = vst [vmem:[#allocation29_spill] sm:$0xff] %v5605_v42 }
 0x1d3   : > { %9306 = vst [vmem:[#allocation26_spill] sm:$0xff] %v5591_v35 }
 0x1d4   : > { %9307 = vst [vmem:[#allocation27_spill] sm:$0xff] %v5593_v36 }
 0x1d6   : > { %v1061_v37 = vpop.trf.xlu2 }
 0x1d7   : > { %4625 = vmatmul.msk.bf16.gmra.mxu2 %vm810_vm3, %v5504_v38  ;;  %4649 = vmatmul.msk.bf16.gmra.mxu0 %vm810_vm3, %v1061_v37 }
 0x1d8   : > { %4641 = vmatmul.msk.bf16.gmra.mxu3 %vm810_vm3, %v5504_v38  ;;  %4665 = vmatmul.msk.bf16.gmra.mxu1 %vm810_vm3, %v1061_v37 }
 0x1d9   : > { %v5613_v46 = vpop.trf.xlu1 }
 0x1da   : > { %v5601_v40 = vpop.f32.mrf.mxu2  ;;  %v5603_v41 = vpop.f32.mrf.mxu3  ;;  %9312 = vst [vmem:[#allocation32_spill] sm:$0xff] %v5613_v46 }
 0x1db   : > { %9308 = vst [vmem:[#allocation28_spill] sm:$0xff] %v5603_v41 }
 0x1de   : > { %v5607_v43 = vpop.trf.xlu2 }
 0x1e1   : > { %v5627_v51 = vpop.trf.xlu1 }
 0x1e2   : > { %v5609_v44 = vpop.f32.mrf.mxu2  ;;  %v5611_v45 = vpop.f32.mrf.mxu3  ;;  %9313 = vst [vmem:[#allocation33_spill] sm:$0xff] %v5627_v51 }
 0x1e3   : > { %9310 = vst [vmem:[#allocation30_spill] sm:$0xff] %v5609_v44 }
 0x1e4   : > { %9311 = vst [vmem:[#allocation31_spill] sm:$0xff] %v5611_v45 }
 0x1e6   : > { %v1063_v47 = vpop.trf.xlu2 }
 0x1e7   : > { %4626 = vmatmul.msk.bf16.gmra.mxu2 %vm810_vm3, %v5510_v60  ;;  %4650 = vmatmul.msk.bf16.gmra.mxu0 %vm810_vm3, %v1063_v47 }
 0x1e8   : > { %4642 = vmatmul.msk.bf16.gmra.mxu3 %vm810_vm3, %v5510_v60  ;;  %4666 = vmatmul.msk.bf16.gmra.mxu1 %vm810_vm3, %v1063_v47 }
 0x1ea   : > { %v5621_v48 = vpop.f32.mrf.mxu2  ;;  %v5623_v49 = vpop.f32.mrf.mxu3 }
 0x1ee   : > { %v5625_v50 = vpop.trf.xlu2 }
 0x1f2   : > { %v5629_v52 = vpop.f32.mrf.mxu2  ;;  %v5631_v53 = vpop.f32.mrf.mxu3 }
 0x1f6   : > { %v1065_v54 = vpop.trf.xlu2 }
 0x1f7   : > { %4627 = vmatmul.msk.bf16.gmra.mxu2 %vm810_vm3, %v5518_v0  ;;  %4651 = vmatmul.msk.bf16.gmra.mxu0 %vm810_vm3, %v1065_v54 }
 0x1f8   : > { %4643 = vmatmul.msk.bf16.gmra.mxu3 %vm810_vm3, %v5518_v0  ;;  %4667 = vmatmul.msk.bf16.gmra.mxu1 %vm810_vm3, %v1065_v54 }
 0x1f9   : > { %v5639_v55 = vpop.permute.xlu1 %541 }
 0x1fa   : > { %9314 = vst [vmem:[#allocation34_spill] sm:$0xff] %v5639_v55  ;;  %v5641_v56 = vpop.f32.mrf.mxu2  ;;  %v5643_v57 = vpop.f32.mrf.mxu3 }
 0x1fe   : > { %546 = vperm.xlu2 %4786, %v532_v58   ;;  %v5648_v38 = vpop.trf.xlu2  ;;  %v1327_v58 = vpop.trf.xlu0 }
 0x201   : > { %v552_v39 = vpop.permute.xlu1 %551 }
 0x202   : > { %v594_v60 = vadd.f32 %v593_v27, %v552_v39  ;;  %v613_v62 = vadd.f32 %v612_v28, %v552_v39  ;;  %v5650_v3 = vpop.f32.mrf.mxu2  ;;  %v5652_v0 = vpop.f32.mrf.mxu3 }
 0x204   : > { %v5654_v4 = vpack.c.bf16 %v613_v62, %v594_v60 }
 0x206   : > { %9315 = vst [vmem:[#allocation35_spill] sm:$0xff] %v5654_v4  ;;  %v1067_v6 = vpop.trf.xlu2  ;;  %v5700_v62 = vpop.trf.xlu0 }
 0x207   : > { %4628 = vmatmul.msk.bf16.gmra.mxu2 %vm810_vm3, %v5533_v7  ;;  %4652 = vmatmul.msk.bf16.gmra.mxu0 %vm810_vm3, %v1067_v6 }
 0x208   : > { %4644 = vmatmul.msk.bf16.gmra.mxu3 %vm810_vm3, %v5533_v7  ;;  %4668 = vmatmul.msk.bf16.gmra.mxu1 %vm810_vm3, %v1067_v6 }
 0x20a   : > { %v5662_v8 = vpop.f32.mrf.mxu2 }
 0x20b   : > { %v5664_v10 = vpop.f32.mrf.mxu3 }
 0x20e   : > { %v5666_v1 = vpop.trf.xlu2  ;;  %v1329_v24 = vpop.trf.xlu0 }
 0x212   : > { %v5668_v16 = vpop.f32.mrf.mxu2 }
 0x213   : > { %v5670_v23 = vpop.f32.mrf.mxu3 }
 0x216   : > { %v1069_v27 = vpop.trf.xlu2  ;;  %v5720_v42 = vpop.trf.xlu0 }
 0x217   : > { %4629 = vmatmul.msk.bf16.gmra.mxu2 %vm810_vm3, %v5547_v12  ;;  %4653 = vmatmul.msk.bf16.gmra.mxu0 %vm810_vm3, %v1069_v27 }
 0x218   : > { %4645 = vmatmul.msk.bf16.gmra.mxu3 %vm810_vm3, %v5547_v12  ;;  %4669 = vmatmul.msk.bf16.gmra.mxu1 %vm810_vm3, %v1069_v27 }
 0x21a   : > { %v5678_v7 = vpop.f32.mrf.mxu2 }
 0x21b   : > { %v5680_v28 = vpop.f32.mrf.mxu3 }
 0x21c   : > { %9316 = vst [vmem:[#allocation36_spill] sm:$0xff] %v5680_v28 }
 0x21e   : > { %v5682_v29 = vpop.trf.xlu2  ;;  %v1331_v30 = vpop.trf.xlu0 }
 0x222   : > { %v5684_v37 = vpop.f32.mrf.mxu2 }
 0x223   : > { %9317 = vst [vmem:[#allocation37_spill] sm:$0xff] %v5684_v37  ;;  %v5686_v47 = vpop.f32.mrf.mxu3 }
 0x226   : > { %v1071_v54 = vpop.trf.xlu2 }
 0x227   : > { %4630 = vmatmul.msk.bf16.gmra.mxu2 %vm810_vm3, %v5563_v20  ;;  %4654 = vmatmul.msk.bf16.gmra.mxu0 %vm810_vm3, %v1071_v54 }
 0x228   : > { %4646 = vmatmul.msk.bf16.gmra.mxu3 %vm810_vm3, %v5563_v20  ;;  %4670 = vmatmul.msk.bf16.gmra.mxu1 %vm810_vm3, %v1071_v54 }
 0x22a   : > { %v5694_v12 = vpop.f32.mrf.mxu2 }
 0x22b   : > { %v5696_v39 = vpop.f32.mrf.mxu3 }
 0x22e   : > { %v5698_v60 = vpop.trf.xlu2 }
 0x232   : > { %v5702_v6 = vpop.f32.mrf.mxu2 }
 0x233   : > { %v5704_v27 = vpop.f32.mrf.mxu3 }
 0x236   : > { %v1073_v4 = vpop.trf.xlu2 }
 0x237   : > { %4631 = vmatmul.msk.bf16.gmra.mxu2 %vm810_vm3, %v5575_v26  ;;  %4655 = vmatmul.msk.bf16.gmra.mxu0 %vm810_vm3, %v1073_v4 }
 0x238   : > { %4647 = vmatmul.msk.bf16.gmra.mxu3 %vm810_vm3, %v5575_v26  ;;  %4671 = vmatmul.msk.bf16.gmra.mxu1 %vm810_vm3, %v1073_v4 }
 0x23a   : > { %v5712_v20 = vpop.f32.mrf.mxu2 }
 0x23b   : > { %v5714_v54 = vpop.f32.mrf.mxu3 }
 0x242   : > { %v5716_v22 = vpop.f32.mrf.mxu2 }
 0x243   : > { %v5718_v51 = vpop.f32.mrf.mxu3 }
 0x244   : > { %v5732_v21 = vpop.f32.mrf.mxu0 }
 0x245   : > { %9318 = vst [vmem:[#allocation38_spill] sm:$0xff] %v5732_v21  ;;  %v5734_v19 = vpop.f32.mrf.mxu1 }
 0x246   : > { %9319 = vst [vmem:[#allocation39_spill] sm:$0xff] %v5734_v19 }
 0x247   : > { %4656 = vmatmul.msk.bf16.gmra.mxu0 %vm810_vm3, %v5587_v33  ;;  %4680 = vmatmul.msk.bf16.vlgmr.msra.gmra.mxu2 %vm810_vm3, %v1327_v58 }
 0x248   : > { %4672 = vmatmul.msk.bf16.gmra.mxu1 %vm810_vm3, %v5587_v33  ;;  %4696 = vmatmul.msk.bf16.vlgmr.msra.gmra.mxu3 %vm810_vm3, %v1327_v58  ;;  %v5746_v33 = vpop.trf.xlu0 }
 0x249   : > { %9321 = vst [vmem:[#allocation41_spill] sm:$0xff] %v5746_v33 }
 0x24a   : > { %v5728_v26 = vpop.f32.mrf.mxu2 }
 0x24b   : > { %v5730_v4 = vpop.f32.mrf.mxu3 }
 0x24c   : > { %v5750_v14 = vpop.f32.mrf.mxu0 }
 0x24d   : > { %9322 = vst [vmem:[#allocation42_spill] sm:$0xff] %v5750_v14  ;;  %v5754_v2 = vpop.f32.mrf.mxu1 }
 0x24e   : > { %9323 = vst [vmem:[#allocation43_spill] sm:$0xff] %v5754_v2 }
 0x250   : > { %v1333_v34 = vpop.trf.xlu0 }
 0x252   : > { %v5736_v18 = vpop.f32.mrf.mxu2 }
 0x253   : > { %v5738_v55 = vpop.f32.mrf.mxu3 }
 0x254   : > { %9320 = vst [vmem:[#allocation40_spill] sm:$0xff] %v5738_v55  ;;  %v5760_v25 = vpop.f32.mrf.mxu0 }
 0x255   : > { %9324 = vst [vmem:[#allocation44_spill] sm:$0xff] %v5760_v25 }
 0x257   : > { %4657 = vmatmul.msk.bf16.gmra.mxu0 %vm810_vm3, %v5607_v43  ;;  %4681 = vmatmul.msk.bf16.gmra.mxu2 %vm810_vm3, %v1329_v24 }
 0x258   : > { %4673 = vmatmul.msk.bf16.gmra.mxu1 %vm810_vm3, %v5607_v43  ;;  %4697 = vmatmul.msk.bf16.gmra.mxu3 %vm810_vm3, %v1329_v24  ;;  %v5762_v43 = vpop.f32.mrf.mxu1  ;;  %v5774_v11 = vpop.trf.xlu0 }
 0x259   : > { %9325 = vst [vmem:[#allocation45_spill] sm:$0xff] %v5762_v43 }
 0x25a   : > { %v5748_v58 = vpop.f32.mrf.mxu2  ;;  %9328 = vst [vmem:[#allocation48_spill] sm:$0xff] %v5774_v11 }
 0x25b   : > { %v5752_v9 = vpop.f32.mrf.mxu3 }
 0x25c   : > { %v5776_v15 = vpop.f32.mrf.mxu0 }
 0x25d   : > { %9329 = vst [vmem:[#allocation49_spill] sm:$0xff] %v5776_v15 }
 0x260   : > { %v5778_v25 = vpop.f32.mrf.mxu1 }
 0x261   : > { %9330 = vst [vmem:[#allocation50_spill] sm:$0xff] %v5778_v25 }
 0x262   : > { %v5756_v61 = vpop.f32.mrf.mxu2 }
 0x263   : > { %v5758_v46 = vpop.f32.mrf.mxu3 }
 0x267   : > { %4658 = vmatmul.msk.bf16.gmra.mxu0 %vm810_vm3, %v5625_v50  ;;  %4682 = vmatmul.msk.bf16.gmra.mxu2 %vm810_vm3, %v1331_v30 }
 0x268   : > { %4674 = vmatmul.msk.bf16.gmra.mxu1 %vm810_vm3, %v5625_v50  ;;  %4698 = vmatmul.msk.bf16.gmra.mxu3 %vm810_vm3, %v1331_v30  ;;  %v1335_v30 = vpop.trf.xlu0  ;;  %v5790_v50 = vpop.f32.mrf.mxu0 }
 0x269   : > { %9333 = vst [vmem:[#allocation53_spill] sm:$0xff] %v5790_v50  ;;  %v5792_v11 = vpop.f32.mrf.mxu1 }
 0x26a   : > { %v5770_v24 = vpop.f32.mrf.mxu2  ;;  %9334 = vst [vmem:[#allocation54_spill] sm:$0xff] %v5792_v11 }
 0x26b   : > { %9326 = vst [vmem:[#allocation46_spill] sm:$0xff] %v5770_v24  ;;  %v5772_v17 = vpop.f32.mrf.mxu3 }
 0x26c   : > { %9327 = vst [vmem:[#allocation47_spill] sm:$0xff] %v5772_v17 }
 0x270   : > { %v5798_v19 = vpop.trf.xlu0  ;;  %v5802_v5 = vpop.f32.mrf.mxu0 }
 0x271   : > { %9335 = vst [vmem:[#allocation55_spill] sm:$0xff] %v5798_v19  ;;  %v5806_v14 = vpop.f32.mrf.mxu1 }
 0x272   : > { %v5780_v43 = vpop.f32.mrf.mxu2  ;;  %9337 = vst [vmem:[#allocation57_spill] sm:$0xff] %v5802_v5 }
 0x273   : > { %9331 = vst [vmem:[#allocation51_spill] sm:$0xff] %v5780_v43  ;;  %v5782_v13 = vpop.f32.mrf.mxu3 }
 0x274   : > { %9332 = vst [vmem:[#allocation52_spill] sm:$0xff] %v5782_v13 }
 0x275   : > { %9339 = vst [vmem:[#allocation59_spill] sm:$0xff] %v5806_v14 }
 0x277   : > { %4659 = vmatmul.msk.bf16.gmra.mxu0 %vm810_vm3, %v5648_v38  ;;  %4683 = vmatmul.msk.bf16.gmra.mxu2 %vm810_vm3, %v1333_v34 }
 0x278   : > { %4675 = vmatmul.msk.bf16.gmra.mxu1 %vm810_vm3, %v5648_v38  ;;  %4699 = vmatmul.msk.bf16.gmra.mxu3 %vm810_vm3, %v1333_v34  ;;  %v1852_v34 = vmax.f32 %v5583_v31, %v5591_v35  ;;  %v1889_v38 = vmax.f32 %v5585_v32, %v5593_v36  ;;  %v1337_v35 = vpop.trf.xlu0  ;;  %v5827_v32 = vpop.f32.mrf.mxu0 }
 0x279   : > { %9340 = vst [vmem:[#allocation60_spill] sm:$0xff] %v5827_v32 }
 0x27a   : > { %v5794_v25 = vpop.f32.mrf.mxu2  ;;  %v1853_v5 = vmax.f32 %v1852_v34, %v5601_v40  ;;  %v1890_v14 = vmax.f32 %v1889_v38, %v5603_v41 }
 0x27b   : > { %v5796_v15 = vpop.f32.mrf.mxu3 }
 0x27c   : > { %v1854_v19 = vmax.f32 %v1853_v5, %v5609_v44  ;;  %v1891_v33 = vmax.f32 %v1890_v14, %v5611_v45 }
 0x27e   : > { %v1855_v36 = vmax.f32 %v1854_v19, %v5621_v48 }
 0x280   : > { %v1856_v34 = vmax.f32 %v1855_v36, %v5629_v52  ;;  %v5844_v32 = vpop.trf.xlu0 }
 0x281   : > { %9343 = vst [vmem:[#allocation63_spill] sm:$0xff] %v5844_v32 }
 0x282   : > { %v5800_v2 = vpop.f32.mrf.mxu2  ;;  %v1857_v41 = vmax.f32 %v1856_v34, %v5641_v56 }
 0x283   : > { %9336 = vst [vmem:[#allocation56_spill] sm:$0xff] %v5800_v2  ;;  %v5804_v21 = vpop.f32.mrf.mxu3 }
 0x284   : > { %9338 = vst [vmem:[#allocation58_spill] sm:$0xff] %v5804_v21  ;;  %v1858_v14 = vmax.f32 %v1857_v41, %v5650_v3 }
 0x287   : > { %4660 = vmatmul.msk.bf16.gmra.mxu0 %vm810_vm3, %v5666_v1  ;;  %4684 = vmatmul.msk.bf16.gmra.mxu2 %vm810_vm3, %v1335_v30 }
 0x288   : > { %4676 = vmatmul.msk.bf16.gmra.mxu1 %vm810_vm3, %v5666_v1  ;;  %4700 = vmatmul.msk.bf16.gmra.mxu3 %vm810_vm3, %v1335_v30  ;;  %v1892_v1 = vmax.f32 %v1891_v33, %v5623_v49  ;;  %v5830_v30 = vpop.f32.mrf.mxu1  ;;  %v1859_v33 = vmax.f32 %v1858_v14, %v5662_v8  ;;  %v1339_v32 = vpop.trf.xlu0 }
 0x289   : > { %9341 = vst [vmem:[#allocation61_spill] sm:$0xff] %v5830_v30 }
 0x28a   : > { %v5820_v11 = vpop.f32.mrf.mxu2  ;;  %v1893_v38 = vmax.f32 %v1892_v1, %v5631_v53  ;;  %v1860_v36 = vmax.f32 %v1859_v33, %v5668_v16  ;;  %v5847_v1 = vpop.f32.mrf.mxu0 }
 0x28b   : > { %v5823_v50 = vpop.f32.mrf.mxu3  ;;  %9344 = vst [vmem:[#allocation64_spill] sm:$0xff] %v5847_v1 }
 0x28c   : > { %v1894_v5 = vmax.f32 %v1893_v38, %v5643_v57  ;;  %v1861_v38 = vmax.f32 %v1860_v36, %v5678_v7 }
 0x28e   : > { %v1895_v19 = vmax.f32 %v1894_v5, %v5652_v0 }
 0x290   : > { %v1896_v30 = vmax.f32 %v1895_v19, %v5664_v10  ;;  %v5853_v34 = vpop.f32.mrf.mxu1  ;;  %v1862_v19 = vmax.f32 %v1861_v38, %v5684_v37 }
 0x291   : > { %9345 = vst [vmem:[#allocation65_spill] sm:$0xff] %v5853_v34 }
 0x292   : > { %v5836_v44 = vpop.f32.mrf.mxu2  ;;  %v1897_v41 = vmax.f32 %v1896_v30, %v5670_v23  ;;  %v1863_v30 = vmax.f32 %v1862_v19, %v5694_v12 }
 0x293   : > { %v5839_v45 = vpop.f32.mrf.mxu3 }
 0x294   : > { %9342 = vst [vmem:[#allocation62_spill] sm:$0xff] %v5839_v45  ;;  %v1898_v5 = vmax.f32 %v1897_v41, %v5680_v28  ;;  %v5871_v41 = vpop.f32.mrf.mxu0 }
 0x295   : > { %9347 = vst [vmem:[#allocation67_spill] sm:$0xff] %v5871_v41 }
 0x296   : > { %v1899_v1 = vmax.f32 %v1898_v5, %v5686_v47 }
 0x297   : > { %4661 = vmatmul.msk.bf16.gmra.mxu0 %vm810_vm3, %v5682_v29  ;;  %4685 = vmatmul.msk.bf16.gmra.mxu2 %vm810_vm3, %v1337_v35 }
 0x298   : > { %4677 = vmatmul.msk.bf16.gmra.mxu1 %vm810_vm3, %v5682_v29  ;;  %4701 = vmatmul.msk.bf16.gmra.mxu3 %vm810_vm3, %v1337_v35  ;;  %v1900_v34 = vmax.f32 %v1899_v1, %v5696_v39  ;;  %v1864_v29 = vmax.f32 %v1863_v30, %v5702_v6  ;;  %v5874_v38 = vpop.f32.mrf.mxu1 }
 0x299   : > { %9348 = vst [vmem:[#allocation68_spill] sm:$0xff] %v5874_v38 }
 0x29a   : > { %v5860_v14 = vpop.f32.mrf.mxu2  ;;  %v1901_v35 = vmax.f32 %v1900_v34, %v5704_v27  ;;  %v1865_v36 = vmax.f32 %v1864_v29, %v5712_v20 }
 0x29b   : > { %v5863_v33 = vpop.f32.mrf.mxu3 }
 0x29c   : > { %9346 = vst [vmem:[#allocation66_spill] sm:$0xff] %v5863_v33  ;;  %v1902_v28 = vmax.f32 %v1901_v35, %v5714_v54  ;;  %v1866_v5 = vmax.f32 %v1865_v36, %v5716_v22 }
 0x29e   : > { %v1903_v1 = vmax.f32 %v1902_v28, %v5718_v51  ;;  %v1867_v30 = vmax.f32 %v1866_v5, %v5728_v26 }
 0x2a0   : > { %v1904_v34 = vmax.f32 %v1903_v1, %v5730_v4  ;;  %v1868_v29 = vmax.f32 %v1867_v30, %v5736_v18  ;;  %v735_v1 = vlaneseq  ;;  %v5896_v30 = vpop.trf.xlu0 }
 0x2a1   : > { %9352 = vst [vmem:[#allocation72_spill] sm:$0xff] %v5896_v30 }
 0x2a2   : > { %v5876_v37 = vpop.f32.mrf.mxu2  ;;  %v1905_v35 = vmax.f32 %v1904_v34, %v5738_v55  ;;  %v1869_v28 = vmax.f32 %v1868_v29, %v5748_v58  ;;  %v5902_v55 = vpop.f32.mrf.mxu0  ;;  %vm5906_vm4 = vcmp.lt.s32.totalorder %v735_v1, 256 }
 0x2a3   : > { %9349 = vst [vmem:[#allocation69_spill] sm:$0xff] %v5876_v37  ;;  %v5879_v19 = vpop.f32.mrf.mxu3 }
 0x2a4   : > { %9350 = vst [vmem:[#allocation70_spill] sm:$0xff] %v5879_v19  ;;  %v1906_v36 = vmax.f32 %v1905_v35, %v5752_v9  ;;  %v1870_v38 = vmax.f32 %v1869_v28, %v5756_v61  ;;  %v5340_v35 = vmov -inf  }
 0x2a5   : > { %9354 = vst [vmem:[#allocation74_spill] sm:$0xff] %v5902_v55 }
 0x2a6   : > { %v1907_v34 = vmax.f32 %v1906_v36, %v5758_v46  ;;  %v1871_v29 = vmax.f32 %v1870_v38, %v5770_v24  ;;  %739 = vst.msk [vmem:[#allocation5] sm:$0x3] %vm5906_vm4, %v5340_v35 }
 0x2a7   : > { %4662 = vmatmul.msk.bf16.gmra.mxu0 %vm810_vm3, %v5698_v60  ;;  %4686 = vmatmul.msk.bf16.gmra.mxu2 %vm810_vm3, %v1339_v32  ;;  %740 = vst.msk [vmem:[#allocation5 + $0x2] sm:$0x3] %vm5906_vm4, %v5340_v35 }
 0x2a8   : > { %4678 = vmatmul.msk.bf16.gmra.mxu1 %vm810_vm3, %v5698_v60  ;;  %4702 = vmatmul.msk.bf16.gmra.mxu3 %vm810_vm3, %v1339_v32  ;;  %v5904_v60 = vpop.f32.mrf.mxu1  ;;  %v9356_v32 = vmov 0  ;;  %v1908_v28 = vmax.f32 %v1907_v34, %v5772_v17  ;;  %v1872_v36 = vmax.f32 %v1871_v29, %v5780_v43  ;;  %741 = vst.msk [vmem:[#allocation5 + $0x4] sm:$0x3] %vm5906_vm4, %v5340_v35  ;;  %v1341_v43 = vpop.trf.xlu0 }
 0x2a9   : > { %9355 = vst [vmem:[#allocation75_spill] sm:$0xff] %v5904_v60  ;;  %v9357_v32 = vsel %vm5906_vm4, 4294967295, %v9356_v32  ;;  %v1074_v17 = vpop.trf.xlu2 }
 0x2aa   : > { %v5894_v5 = vpop.f32.mrf.mxu2  ;;  %9358 = vst [vmem:[#allocation76_spill] sm:$0xff] %v9357_v32  ;;  %v1909_v1 = vmax.f32 %v1908_v28, %v5782_v13  ;;  %v1873_v38 = vmax.f32 %v1872_v36, %v5794_v25  ;;  %v5932_v13 = vpop.f32.mrf.mxu0  ;;  %v9385_v32 = vld [vmem:[#allocation38_spill] sm:$0xff] }
 0x2ab   : > { %9351 = vst [vmem:[#allocation71_spill] sm:$0xff] %v5894_v5  ;;  %v5899_v41 = vpop.f32.mrf.mxu3 }
 0x2ac   : > { %9353 = vst [vmem:[#allocation73_spill] sm:$0xff] %v5899_v41  ;;  %v1910_v60 = vmax.f32 %v1909_v1, %v5796_v15  ;;  %v1874_v34 = vmax.f32 %v1873_v38, %v5800_v2 }
 0x2ad   : > { %742 = vst.msk [vmem:[#allocation5 + $0x6] sm:$0x3] %vm5906_vm4, %v5340_v35 }
 0x2ae   : > { %v1911_v29 = vmax.f32 %v1910_v60, %v5804_v21  ;;  %v1875_v24 = vmax.f32 %v1874_v34, %v5820_v11  ;;  %9361 = vst [vmem:[#allocation79_spill] sm:$0xff] %v5932_v13 }
 0x2b0   : > { %v1912_v28 = vmax.f32 %v1911_v29, %v5823_v50  ;;  %v5934_v35 = vpop.f32.mrf.mxu1  ;;  %v1876_v36 = vmax.f32 %v1875_v24, %v5836_v44 }
 0x2b1   : > { %9362 = vst [vmem:[#allocation80_spill] sm:$0xff] %v5934_v35 }
 0x2b2   : > { %v5924_v55 = vpop.f32.mrf.mxu2  ;;  %v1913_v1 = vmax.f32 %v1912_v28, %v5839_v45  ;;  %v1877_v60 = vmax.f32 %v1876_v36, %v5860_v14  ;;  %v5953_v45 = vpop.f32.mrf.mxu0 }
 0x2b3   : > { %9359 = vst [vmem:[#allocation77_spill] sm:$0xff] %v5924_v55  ;;  %v5927_v30 = vpop.f32.mrf.mxu3 }
 0x2b4   : > { %9360 = vst [vmem:[#allocation78_spill] sm:$0xff] %v5927_v30  ;;  %v1914_v38 = vmax.f32 %v1913_v1, %v5863_v33  ;;  %v1878_v29 = vmax.f32 %v1877_v60, %v5876_v37 }
 0x2b5   : > { %9365 = vst [vmem:[#allocation83_spill] sm:$0xff] %v5953_v45 }
 0x2b6   : > { %v1915_v24 = vmax.f32 %v1914_v38, %v5879_v19  ;;  %v1879_v13 = vmax.f32 %v1878_v29, %v5894_v5 }
 0x2b7   : > { %4663 = vmatmul.msk.bf16.gmra.mxu0 %vm810_vm3, %v1074_v17  ;;  %4687 = vmatmul.msk.bf16.gmra.mxu2 %vm810_vm3, %v1341_v43 }
 0x2b8   : > { %4679 = vmatmul.msk.bf16.gmra.mxu1 %vm810_vm3, %v1074_v17  ;;  %4703 = vmatmul.msk.bf16.gmra.mxu3 %vm810_vm3, %v1341_v43  ;;  %v1916_v28 = vmax.f32 %v1915_v24, %v5899_v41  ;;  %v1880_v17 = vmax.f32 %v1879_v13, %v5924_v55  ;;  %v5955_v43 = vpop.f32.mrf.mxu1 }
 0x2b9   : > { %9366 = vst [vmem:[#allocation84_spill] sm:$0xff] %v5955_v43 }
 0x2ba   : > { %v5944_v34 = vpop.f32.mrf.mxu2  ;;  %v1917_v36 = vmax.f32 %v1916_v28, %v5927_v30  ;;  %v9394_v30 = vld [vmem:[#allocation15_spill] sm:$0xff] }
 0x2bb   : > { %9363 = vst [vmem:[#allocation81_spill] sm:$0xff] %v5944_v34  ;;  %v5947_v35 = vpop.f32.mrf.mxu3  ;;  %v1881_v1 = vmax.f32 %v1880_v17, %v5944_v34 }
 0x2bc   : > { %9364 = vst [vmem:[#allocation82_spill] sm:$0xff] %v5947_v35  ;;  %v1918_v60 = vmax.f32 %v1917_v36, %v5947_v35  ;;  %v5974_v36 = vpop.f32.mrf.mxu0 }
 0x2bd   : > { %9369 = vst [vmem:[#allocation87_spill] sm:$0xff] %v5974_v36 }
 0x2c2   : > { %v5960_v37 = vpop.f32.mrf.mxu2 }
 0x2c3   : > { %9367 = vst [vmem:[#allocation85_spill] sm:$0xff] %v5960_v37  ;;  %v1882_v38 = vmax.f32 %v1881_v1, %v5960_v37  ;;  %v5963_v19 = vpop.f32.mrf.mxu3  ;;  %v5976_v1 = vpop.f32.mrf.mxu1 }
 0x2c4   : > { %9368 = vst [vmem:[#allocation86_spill] sm:$0xff] %v5963_v19  ;;  %v1919_v29 = vmax.f32 %v1918_v60, %v5963_v19 }
 0x2c5   : > { %v1883_v24 = vrot.slane %v1882_v38, 4  ;;  %9370 = vst [vmem:[#allocation88_spill] sm:$0xff] %v5976_v1  ;;  %v9390_v1 = vld [vmem:[#allocation13_spill] sm:$0xff] }
 0x2c6   : > { %v1920_v13 = vrot.slane %v1919_v29, 4 }
 0x2c7   : > { %v1884_v55 = vmax.f32 %v1882_v38, %v1883_v24  ;;  %4688 = vmatmul.msk.bf16.gmra.mxu2 %vm810_vm3, %v5700_v62  ;;  %4712 = vmatmul.msk.bf16.vlgmr.msrb.gmra.mxu0 %vm810_vm3, %v5508_v59 }
 0x2c8   : > { %v1921_v28 = vmax.f32 %v1919_v29, %v1920_v13  ;;  %4704 = vmatmul.msk.bf16.gmra.mxu3 %vm810_vm3, %v5700_v62  ;;  %4728 = vmatmul.msk.bf16.vlgmr.msrb.gmra.mxu1 %vm810_vm3, %v5508_v59  ;;  %v5978_v29 = vld [vmem:[#allocation5] sm:$0x3]  ;;  %v5980_v62 = vpop.f32.mrf.mxu0 }
 0x2c9   : > { %v1885_v17 = vrot.slane %v1884_v55, 2  ;;  %9371 = vst [vmem:[#allocation89_spill] sm:$0xff] %v5978_v29 }
 0x2ca   : > { %v1922_v60 = vrot.slane %v1921_v28, 2  ;;  %9372 = vst [vmem:[#allocation90_spill] sm:$0xff] %v5980_v62 }
 0x2cb   : > { %v1886_v38 = vmax.f32 %v1884_v55, %v1885_v17  ;;  %v5982_v35 = vpop.f32.mrf.mxu1 }
 0x2cc   : > { %v1923_v24 = vmax.f32 %v1921_v28, %v1922_v60  ;;  %9373 = vst [vmem:[#allocation91_spill] sm:$0xff] %v5982_v35 }
 0x2cd   : > { %v1887_v43 = vrot.slane %v1886_v38, 1 }
 0x2ce   : > { %v1924_v45 = vrot.slane %v1923_v24, 1 }
 0x2cf   : > { %v1888_v37 = vmax.f32 %v1886_v38, %v1887_v43 }
 0x2d0   : > { %v1925_v19 = vmax.f32 %v1923_v24, %v1924_v45  ;;  %v6001_v45 = vpop.trf.xlu0 }
 0x2d1   : > { %9375 = vst [vmem:[#allocation93_spill] sm:$0xff] %v6001_v45 }
 0x2d2   : > { %v2156_v13 = vrot.slane %v1925_v19, 7 }
 0x2d3   : > { %v6005_v19 = vpop.f32.mrf.mxu1 }
 0x2d4   : > { %v2161_v59 = vsel %vm2160_vm5, %v1888_v37, %v2156_v13  ;;  %v6003_v37 = vpop.f32.mrf.mxu0  ;;  %9377 = vst [vmem:[#allocation95_spill] sm:$0xff] %v6005_v19  ;;  %v9380_v13 = vld [vmem:[#allocation41_spill] sm:$0xff] }
 0x2d5   : > { %v5986_v36 = vmax.f32 %v5978_v29, %v2161_v59  ;;  %9376 = vst [vmem:[#allocation94_spill] sm:$0xff] %v6003_v37  ;;  %v9386_v37 = vld [vmem:[#allocation10_spill] sm:$0xff] }
 0x2d7   : > { %9374 = vst [vmem:[#allocation92_spill] sm:$0xff] %v5986_v36  ;;  %4689 = vmatmul.msk.bf16.gmra.mxu2 %vm810_vm3, %v5720_v42  ;;  %4713 = vmatmul.msk.bf16.gmra.mxu0 %vm810_vm3, %v5516_v63  ;;  %v6008_v43 = vperm.slane %v5986_v36, 0  ;;  %v6011_v28 = vperm.slane %v5986_v36, 1 }
 0x2d8   : > { %4365 = vst.msk [vmem:[#allocation5] sm:$0x3] %vm5906_vm4, %v5986_v36  ;;  %4705 = vmatmul.msk.bf16.gmra.mxu3 %vm810_vm3, %v5720_v42  ;;  %4729 = vmatmul.msk.bf16.gmra.mxu1 %vm810_vm3, %v5516_v63  ;;  %v9378_v42 = vld [vmem:[#allocation24_spill] sm:$0xff]  ;;  %v537_v38 = vpop.permute.xlu0 %536  ;;  %v9379_v63 = vld [vmem:[#allocation26_spill] sm:$0xff]  ;;  %v9383_v36 = vld [vmem:[#allocation27_spill] sm:$0xff] }
 0x2d9   : > { %v2205_v17 = vsub.f32 %v5583_v31, %v6008_v43  ;;  %v2206_v60 = vsub.f32 %v9378_v42, %v6011_v28  ;;  %v2207_v24 = vsub.f32 %v9379_v63, %v6008_v43  ;;  %v2208_v29 = vsub.f32 %v9383_v36, %v6011_v28  ;;  %v9384_v31 = vld [vmem:[#allocation42_spill] sm:$0xff]  ;;  %v9389_v36 = vld [vmem:[#allocation28_spill] sm:$0xff] }
 0x2da   : > { %v1926_v42 = vmax.f32 %v9385_v32, %v9384_v31  ;;  %v2209_v19 = vsub.f32 %v5601_v40, %v6008_v43  ;;  %v2210_v62 = vsub.f32 %v9389_v36, %v6011_v28  ;;  %v6042_v45 = vadd.f32 %v9390_v1, %v537_v38  ;;  %v9392_v31 = vld [vmem:[#allocation44_spill] sm:$0xff]  ;;  %v9393_v40 = vld [vmem:[#allocation30_spill] sm:$0xff] }
 0x2db   : > { %v6023_v55 = vpop.f32.mrf.mxu1  ;;  %v2461_v63 = vmul.f32 1.442695, %v2205_v17  ;;  %v2211_v17 = vsub.f32 %v9393_v40, %v6008_v43  ;;  %v2465_v34 = vmul.f32 1.442695, %v2207_v24  ;;  %v6048_v41 = vadd.f32 %v9394_v30, %v537_v38  ;;  %v9401_v38 = vld [vmem:[#allocation53_spill] sm:$0xff] }
 0x2dc   : > { %v6021_v59 = vpop.f32.mrf.mxu0  ;;  %9382 = vst [vmem:[#allocation26_spill] sm:$0xff] %v6023_v55  ;;  %v9387_v55 = vld [vmem:[#allocation43_spill] sm:$0xff]  ;;  %v1927_v32 = vmax.f32 %v1926_v42, %v9392_v31  ;;  %v2467_v36 = vmul.f32 1.442695, %v2208_v29  ;;  %v2213_v1 = vsub.f32 %v5621_v48, %v6008_v43  ;;  %v2469_v42 = vmul.f32 1.442695, %v2209_v19 }
 0x2dd   : > { %9381 = vst [vmem:[#allocation24_spill] sm:$0xff] %v6021_v59  ;;  %v9388_v59 = vld [vmem:[#allocation39_spill] sm:$0xff]  ;;  %4787 = vpow2.f32 %v2461_v63  ;;  %v2214_v30 = vsub.f32 %v5623_v49, %v6011_v28  ;;  %v2215_v29 = vsub.f32 %v5629_v52, %v6008_v43  ;;  %v2216_v48 = vsub.f32 %v5631_v53, %v6011_v28 }
 0x2de   : > { %v1963_v35 = vmax.f32 %v9388_v59, %v9387_v55  ;;  %9391 = vst [vmem:[#allocation41_spill] sm:$0xff] %v6042_v45  ;;  %v9398_v55 = vld [vmem:[#allocation31_spill] sm:$0xff]  ;;  %v2218_v49 = vsub.f32 %v5643_v57, %v6011_v28  ;;  %v2220_v52 = vsub.f32 %v5652_v0, %v6011_v28  ;;  %v2222_v57 = vsub.f32 %v5664_v10, %v6011_v28 }
 0x2df   : > { %9395 = vst [vmem:[#allocation27_spill] sm:$0xff] %v6048_v41  ;;  %v2212_v59 = vsub.f32 %v9398_v55, %v6011_v28  ;;  %v2217_v55 = vsub.f32 %v5641_v56, %v6008_v43  ;;  %v2479_v53 = vmul.f32 1.442695, %v2214_v30  ;;  %v9409_v30 = vld [vmem:[#allocation37_spill] sm:$0xff]  ;;  %v9443_v31 = vld [vmem:[#allocation55_spill] sm:$0xff] }
 0x2e0   : > { %v9442_v2 = vsub.f32 %v9409_v30, %v6008_v43  ;;  %v9447_v30 = vld [vmem:[#allocation85_spill] sm:$0xff] }
 0x2e1   : > { %v2475_v19 = vmul.f32 1.442695, %v2212_v59 }
 0x2e3   : > { %v6081_v56 = vpop.f32.mrf.mxu1  ;;  %v6083_v59 = vpop.eup %4787 }
 0x2e4   : > { %v6079_v63 = vpop.f32.mrf.mxu0  ;;  %9404 = vst [vmem:[#allocation30_spill] sm:$0xff] %v6081_v56 }
 0x2e5   : > { %9403 = vst [vmem:[#allocation13_spill] sm:$0xff] %v6079_v63 }
 0x2e6   : > { %9405 = vst [vmem:[#allocation15_spill] sm:$0xff] %v6083_v59 }
 0x2e7   : > { %4690 = vmatmul.msk.bf16.gmra.mxu2 %vm810_vm3, %v9380_v13  ;;  %4714 = vmatmul.msk.bf16.gmra.mxu0 %vm810_vm3, %v9386_v37 }
 0x2e8   : > { %4706 = vmatmul.msk.bf16.gmra.mxu3 %vm810_vm3, %v9380_v13  ;;  %4730 = vmatmul.msk.bf16.gmra.mxu1 %vm810_vm3, %v9386_v37  ;;  %v2463_v13 = vmul.f32 1.442695, %v2206_v60  ;;  %v9396_v37 = vld [vmem:[#allocation45_spill] sm:$0xff] }
 0x2e9   : > { %v6051_v5 = vmax.f32 %v1963_v35, %v9396_v37  ;;  %v9399_v60 = vld [vmem:[#allocation49_spill] sm:$0xff]  ;;  %v2471_v35 = vmul.f32 1.442695, %v2210_v62  ;;  %v2477_v62 = vmul.f32 1.442695, %v2213_v1 }
 0x2ea   : > { %v1928_v33 = vmax.f32 %v1927_v32, %v9399_v60  ;;  %4789 = vpow2.f32 %v2463_v13  ;;  %v2473_v32 = vmul.f32 1.442695, %v2211_v17  ;;  %v2481_v13 = vmul.f32 1.442695, %v2215_v29 }
 0x2eb   : > { %9397 = vst [vmem:[#allocation10_spill] sm:$0xff] %v6051_v5  ;;  %4791 = vpow2.f32 %v2465_v34  ;;  %v2221_v34 = vsub.f32 %v5662_v8, %v6008_v43  ;;  %v2224_v8 = vsub.f32 %v5670_v23, %v6011_v28  ;;  %v2225_v17 = vsub.f32 %v5678_v7, %v6008_v43  ;;  %v6121_v23 = vpop.f32.mrf.mxu2 }
 0x2ec   : > { %v6063_v40 = vmax.f32 %v1928_v33, %v9401_v38  ;;  %4793 = vpow2.f32 %v2467_v36  ;;  %v2219_v33 = vsub.f32 %v5650_v3, %v6008_v43  ;;  %v2223_v3 = vsub.f32 %v5668_v16, %v6008_v43  ;;  %9414 = vst [vmem:[#allocation97_spill] sm:$0xff] %v6121_v23  ;;  %v9417_v16 = vld [vmem:[#allocation12_spill] sm:$0xff]  ;;  %v9424_v23 = vld [vmem:[#allocation47_spill] sm:$0xff] }
 0x2ed   : > { %4795 = vpow2.f32 %v2469_v42  ;;  %v2483_v36 = vmul.f32 1.442695, %v2216_v48  ;;  %v9408_v42 = vld [vmem:[#allocation36_spill] sm:$0xff]  ;;  %v2229_v7 = vsub.f32 %v5694_v12, %v6008_v43  ;;  %v2232_v12 = vsub.f32 %v5704_v27, %v6011_v28 }
 0x2ee   : > { %9402 = vst [vmem:[#allocation28_spill] sm:$0xff] %v6063_v40  ;;  %4797 = vpow2.f32 %v2471_v35  ;;  %v2226_v10 = vsub.f32 %v9408_v42, %v6011_v28  ;;  %v2485_v35 = vmul.f32 1.442695, %v2217_v55  ;;  %v2231_v42 = vsub.f32 %v5702_v6, %v6008_v43 }
 0x2ef   : > { %4799 = vpow2.f32 %v2473_v32  ;;  %v2487_v32 = vmul.f32 1.442695, %v2218_v49  ;;  %v2489_v55 = vmul.f32 1.442695, %v2219_v33  ;;  %v2495_v33 = vmul.f32 1.442695, %v2222_v57  ;;  %v6143_v49 = vpop.f32.mrf.mxu0 }
 0x2f0   : > { %v6089_v0 = vpop.eup %4789  ;;  %4801 = vpow2.f32 %v2475_v19  ;;  %v2230_v19 = vsub.f32 %v5696_v39, %v6011_v28  ;;  %v6123_v39 = vpop.f32.mrf.mxu3  ;;  %9418 = vst [vmem:[#allocation12_spill] sm:$0xff] %v6143_v49  ;;  %v2497_v38 = vmul.f32 1.442695, %v2223_v3  ;;  %v2499_v60 = vmul.f32 1.442695, %v2224_v8  ;;  %v9426_v49 = vld [vmem:[#allocation52_spill] sm:$0xff] }
 0x2f1   : > { %9406 = vst [vmem:[#allocation31_spill] sm:$0xff] %v6089_v0  ;;  %v6095_v1 = vpop.eup %4791  ;;  %4803 = vpow2.f32 %v2477_v62  ;;  %v9412_v62 = vld [vmem:[#allocation48_spill] sm:$0xff]  ;;  %v2501_v3 = vmul.f32 1.442695, %v2225_v17  ;;  %v2503_v8 = vmul.f32 1.442695, %v2226_v10  ;;  %v9449_v5 = vsub.f32 %v5730_v4, %v6011_v28 }
 0x2f2   : > { %9407 = vst [vmem:[#allocation96_spill] sm:$0xff] %v6095_v1  ;;  %v6101_v29 = vpop.eup %4793  ;;  %4805 = vpow2.f32 %v2479_v53  ;;  %v2491_v53 = vmul.f32 1.442695, %v2220_v52  ;;  %v2509_v17 = vmul.f32 1.442695, %v2229_v7 }
 0x2f3   : > { %9410 = vst [vmem:[#allocation36_spill] sm:$0xff] %v6101_v29  ;;  %v6107_v48 = vpop.eup %4795  ;;  %4807 = vpow2.f32 %v2481_v13  ;;  %v2493_v13 = vmul.f32 1.442695, %v2221_v34  ;;  %v2511_v10 = vmul.f32 1.442695, %v2230_v19 }
 0x2f4   : > { %9411 = vst [vmem:[#allocation37_spill] sm:$0xff] %v6107_v48  ;;  %v6115_v24 = vpop.eup %4797  ;;  %4809 = vpow2.f32 %v2483_v36  ;;  %v2515_v57 = vmul.f32 1.442695, %v2232_v12  ;;  %v9432_v12 = vld [vmem:[#allocation62_spill] sm:$0xff] }
 0x2f5   : > { %9413 = vst [vmem:[#allocation48_spill] sm:$0xff] %v6115_v24  ;;  %v6127_v6 = vpop.eup %4799  ;;  %4811 = vpow2.f32 %v2485_v35  ;;  %v6145_v35 = vpop.f32.mrf.mxu1 }
 0x2f6   : > { %9415 = vst [vmem:[#allocation98_spill] sm:$0xff] %v6123_v39  ;;  %v6137_v52 = vpop.eup %4801  ;;  %4813 = vpow2.f32 %v2487_v32  ;;  %v9423_v39 = vld [vmem:[#allocation46_spill] sm:$0xff] }
 0x2f7   : > { %4691 = vmatmul.msk.bf16.gmra.mxu2 %vm810_vm3, %v9412_v62  ;;  %9416 = vst [vmem:[#allocation99_spill] sm:$0xff] %v6127_v6  ;;  %4715 = vmatmul.msk.bf16.gmra.mxu0 %vm810_vm3, %v9417_v16  ;;  %v6147_v34 = vpop.eup %4803  ;;  %4815 = vpow2.f32 %v2489_v55 }
 0x2f8   : > { %4707 = vmatmul.msk.bf16.gmra.mxu3 %vm810_vm3, %v9412_v62  ;;  %4731 = vmatmul.msk.bf16.gmra.mxu1 %vm810_vm3, %v9417_v16  ;;  %9419 = vst [vmem:[#allocation100_spill] sm:$0xff] %v6145_v35  ;;  %v6153_v36 = vpop.eup %4805  ;;  %v9421_v62 = vld [vmem:[#allocation40_spill] sm:$0xff]  ;;  %4817 = vpow2.f32 %v2491_v53  ;;  %v9425_v35 = vld [vmem:[#allocation51_spill] sm:$0xff]  ;;  %v6185_v56 = vpop.f32.mrf.mxu3  ;;  %v2513_v16 = vmul.f32 1.442695, %v2231_v42  ;;  %v9439_v42 = vsub.f32 %v5718_v51, %v6011_v28 }
 0x2f9   : > { %9420 = vst [vmem:[#allocation101_spill] sm:$0xff] %v6147_v34  ;;  %v6159_v37 = vpop.eup %4807  ;;  %4819 = vpow2.f32 %v2493_v13 }
 0x2fa   : > { %9422 = vst [vmem:[#allocation40_spill] sm:$0xff] %v6159_v37  ;;  %v6165_v55 = vpop.eup %4809  ;;  %4821 = vpow2.f32 %v2495_v33  ;;  %v6183_v33 = vpop.f32.mrf.mxu2  ;;  %v2523_v21 = vmul.f32 1.442695, %v9439_v42  ;;  %v9448_v42 = vsub.f32 %v5728_v26, %v6008_v43 }
 0x2fb   : > { %v6171_v53 = vpop.eup %4811  ;;  %4823 = vpow2.f32 %v2497_v38  ;;  %9427 = vst [vmem:[#allocation46_spill] sm:$0xff] %v6183_v33 }
 0x2fc   : > { %v6177_v13 = vpop.eup %4813  ;;  %4825 = vpow2.f32 %v2499_v60  ;;  %9428 = vst [vmem:[#allocation47_spill] sm:$0xff] %v6185_v56  ;;  %v6199_v56 = vpop.f32.mrf.mxu0  ;;  %v9431_v60 = vsub.f32 %v5712_v20, %v6008_v43  ;;  %v9435_v20 = vld [vmem:[#allocation69_spill] sm:$0xff]  ;;  %v2525_v51 = vmul.f32 1.442695, %v9448_v42 }
 0x2fd   : > { %v6187_v27 = vpop.eup %4815  ;;  %4827 = vpow2.f32 %v2501_v3  ;;  %9429 = vst [vmem:[#allocation51_spill] sm:$0xff] %v6199_v56  ;;  %v6201_v33 = vpop.f32.mrf.mxu1  ;;  %v9433_v3 = vsub.f32 %v5714_v54, %v6011_v28  ;;  %v9438_v54 = vld [vmem:[#allocation73_spill] sm:$0xff] }
 0x2fe   : > { %v6193_v32 = vpop.eup %4817  ;;  %4829 = vpow2.f32 %v2503_v8  ;;  %9430 = vst [vmem:[#allocation52_spill] sm:$0xff] %v6201_v33  ;;  %v2517_v7 = vmul.f32 1.442695, %v9431_v60  ;;  %v9436_v8 = vsub.f32 %v5716_v22, %v6008_v43  ;;  %v9441_v22 = vld [vmem:[#allocation78_spill] sm:$0xff]  ;;  %v2505_v33 = vmul.f32 1.442695, %v9442_v2 }
 0x2ff   : > { %v6203_v38 = vpop.eup %4819  ;;  %4831 = vpow2.f32 %v2509_v17  ;;  %v2519_v56 = vmul.f32 1.442695, %v9433_v3  ;;  %v9434_v17 = vld [vmem:[#allocation66_spill] sm:$0xff]  ;;  %v9446_v60 = vsub.f32 %v5686_v47, %v6011_v28  ;;  %v2527_v3 = vmul.f32 1.442695, %v9449_v5 }
 0x300   : > { %v6212_v19 = vpop.eup %4821  ;;  %4833 = vpow2.f32 %v2511_v10  ;;  %v2521_v41 = vmul.f32 1.442695, %v9436_v8  ;;  %v9437_v10 = vld [vmem:[#allocation71_spill] sm:$0xff]  ;;  %v2981_v5 = vadd.f32 %v6095_v1, %v6083_v59  ;;  %v6287_v42 = vpop.f32.mrf.mxu3 }
 0x301   : > { %v6221_v63 = vpop.eup %4823  ;;  %4835 = vpow2.f32 %v2513_v16  ;;  %v9440_v16 = vld [vmem:[#allocation77_spill] sm:$0xff]  ;;  %v2507_v8 = vmul.f32 1.442695, %v9446_v60  ;;  %v9453_v60 = vsub.f32 %v9421_v62, %v6011_v28  ;;  %9454 = vst [vmem:[#allocation66_spill] sm:$0xff] %v6287_v42  ;;  %v9457_v62 = vsub.f32 %v5756_v61, %v6008_v43 }
 0x302   : > { %v6230_v45 = vpop.eup %4825  ;;  %4837 = vpow2.f32 %v2515_v57  ;;  %v6271_v47 = vpop.f32.mrf.mxu2  ;;  %v9458_v42 = vsub.f32 %v5758_v46, %v6011_v28  ;;  %v9462_v61 = vsub.f32 %v9424_v23, %v6011_v28  ;;  %v9463_v46 = vsub.f32 %v9425_v35, %v6008_v43 }
 0x303   : > { %v6239_v40 = vpop.eup %4827  ;;  %4839 = vpow2.f32 %v2517_v7  ;;  %9450 = vst [vmem:[#allocation62_spill] sm:$0xff] %v6271_v47  ;;  %v2531_v4 = vmul.f32 1.442695, %v9453_v60  ;;  %v2537_v60 = vmul.f32 1.442695, %v9457_v62 }
 0x304   : > { %v6250_v57 = vpop.eup %4829  ;;  %4841 = vpow2.f32 %v2519_v56  ;;  %v9451_v56 = vld [vmem:[#allocation16_spill] sm:$0xff]  ;;  %v2539_v1 = vmul.f32 1.442695, %v9458_v42  ;;  %v6309_v59 = vpop.f32.mrf.mxu0  ;;  %v2545_v42 = vmul.f32 1.442695, %v9463_v46 }
 0x305   : > { %v6261_v2 = vpop.eup %4831  ;;  %4843 = vpow2.f32 %v2521_v41  ;;  %v9452_v41 = vsub.f32 %v5736_v18, %v6008_v43  ;;  %v9456_v18 = vsub.f32 %v5752_v9, %v6011_v28  ;;  %9460 = vst [vmem:[#allocation69_spill] sm:$0xff] %v6309_v59  ;;  %v6311_v9 = vpop.f32.mrf.mxu1 }
 0x306   : > { %4845 = vpow2.f32 %v2523_v21  ;;  %9461 = vst [vmem:[#allocation71_spill] sm:$0xff] %v6311_v9 }
 0x307   : > { %4692 = vmatmul.msk.bf16.gmra.mxu2 %vm810_vm3, %v9443_v31  ;;  %4716 = vmatmul.msk.bf16.gmra.mxu0 %vm810_vm3, %v9451_v56  ;;  %v2529_v26 = vmul.f32 1.442695, %v9452_v41  ;;  %4847 = vpow2.f32 %v2505_v33  ;;  %v2535_v41 = vmul.f32 1.442695, %v9456_v18  ;;  %v9459_v33 = vsub.f32 %v9423_v39, %v6008_v43 }
 0x308   : > { %4708 = vmatmul.msk.bf16.gmra.mxu3 %vm810_vm3, %v9443_v31  ;;  %4732 = vmatmul.msk.bf16.gmra.mxu1 %vm810_vm3, %v9451_v56  ;;  %v6277_v31 = vpop.eup %4833  ;;  %v9455_v56 = vsub.f32 %v5748_v58, %v6008_v43  ;;  %4849 = vpow2.f32 %v2507_v8  ;;  %v2543_v8 = vmul.f32 1.442695, %v9462_v61  ;;  %v9464_v39 = vsub.f32 %v9426_v49, %v6011_v28 }
 0x309   : > { %v6289_v7 = vpop.eup %4835  ;;  %v2541_v58 = vmul.f32 1.442695, %v9459_v33  ;;  %4851 = vpow2.f32 %v2525_v51  ;;  %v9465_v33 = vsub.f32 %v5794_v25, %v6008_v43  ;;  %v9466_v51 = vsub.f32 %v5796_v15, %v6011_v28 }
 0x30a   : > { %v2533_v21 = vmul.f32 1.442695, %v9455_v56  ;;  %v6300_v47 = vpop.eup %4837  ;;  %v2982_v56 = vadd.f32 %v6107_v48, %v2981_v5  ;;  %v2547_v62 = vmul.f32 1.442695, %v9464_v39  ;;  %4853 = vpow2.f32 %v2527_v3 }
 0x30b   : > { %v6313_v18 = vpop.eup %4839  ;;  %v2549_v9 = vmul.f32 1.442695, %v9465_v33  ;;  %v6332_v23 = vmul.f32 1.442695, %v9466_v51  ;;  %4855 = vpow2.f32 %v2529_v26  ;;  %v9467_v49 = vsub.f32 %v5820_v11, %v6008_v43 }
 0x30c   : > { %v6324_v5 = vpop.eup %4841  ;;  %v2983_v61 = vadd.f32 %v6127_v6, %v2982_v56  ;;  %v9468_v3 = vsub.f32 %v5823_v50, %v6011_v28  ;;  %v9469_v15 = vsub.f32 %v5836_v44, %v6008_v43  ;;  %4857 = vpow2.f32 %v2531_v4 }
 0x30d   : > { %v6335_v35 = vpop.eup %4843  ;;  %v6340_v46 = vmul.f32 1.442695, %v9467_v49  ;;  %v9470_v26 = vsub.f32 %v9432_v12, %v6011_v28  ;;  %v9471_v11 = vsub.f32 %v5860_v14, %v6008_v43  ;;  %4859 = vpow2.f32 %v2533_v21 }
 0x30e   : > { %v6345_v25 = vmul.f32 1.442695, %v9468_v3  ;;  %v6350_v39 = vmul.f32 1.442695, %v9469_v15  ;;  %v6352_v33 = vpop.eup %4845  ;;  %v2984_v50 = vadd.f32 %v6147_v34, %v2983_v61  ;;  %v3018_v44 = vadd.f32 %v6101_v29, %v6089_v0  ;;  %v6391_v29 = vpop.f32.mrf.mxu2 }
 0x30f   : > { %v6357_v56 = vmul.f32 1.442695, %v9470_v26  ;;  %v6362_v51 = vmul.f32 1.442695, %v9471_v11  ;;  %v6365_v49 = vpop.eup %4847  ;;  %v3359_v4 = vpack.c.bf16 %v6324_v5, %v6313_v18  ;;  %v3360_v12 = vpack.c.bf16 %v6352_v33, %v6335_v35  ;;  %9474 = vst [vmem:[#allocation73_spill] sm:$0xff] %v6391_v29  ;;  %v6398_v0 = vpop.f32.mrf.mxu3 }
 0x310   : > { %v6373_v3 = vpop.eup %4849  ;;  %4861 = vpow2.f32 %v2535_v41  ;;  %v9472_v14 = vsub.f32 %v9434_v17, %v6011_v28  ;;  %v2985_v61 = vadd.f32 %v6159_v37, %v2984_v50  ;;  %v3357_v21 = vpack.c.bf16 %v6277_v31, %v6261_v2  ;;  %9476 = vst [vmem:[#allocation78_spill] sm:$0xff] %v6398_v0  ;;  %v6406_v37 = vpop.f32.mrf.mxu0 }
 0x311   : > { %v6383_v26 = vpop.eup %4851  ;;  %4863 = vpow2.f32 %v2537_v60  ;;  %v9473_v11 = vsub.f32 %v9435_v20, %v6008_v43  ;;  %v3019_v41 = vadd.f32 %v6115_v24, %v3018_v44  ;;  %v3358_v17 = vpack.c.bf16 %v6300_v47, %v6289_v7  ;;  %9477 = vst [vmem:[#allocation55_spill] sm:$0xff] %v6406_v37 }
 0x312   : > { %v6378_v15 = vmul.f32 1.442695, %v9472_v14  ;;  %v6395_v14 = vpop.eup %4853  ;;  %4865 = vpow2.f32 %v2539_v1  ;;  %v2986_v50 = vadd.f32 %v6171_v53, %v2985_v61  ;;  %v3540_v60 = vunpack.c.l.b16 %v3359_v4  ;;  %v6408_v1 = vpop.f32.mrf.mxu1 }
 0x313   : > { %v6388_v59 = vmul.f32 1.442695, %v9473_v11  ;;  %9475 = vst [vmem:[#allocation77_spill] sm:$0xff] %v6395_v14  ;;  %v3542_v6 = vunpack.c.l.b16 %v3360_v12  ;;  %v6400_v48 = vpop.eup %4855  ;;  %4867 = vpow2.f32 %v2541_v58  ;;  %v3020_v20 = vadd.f32 %v6137_v52, %v3019_v41 }
 0x314   : > { %v3541_v44 = vunpack.c.h.b16 %v3359_v4  ;;  %v3543_v11 = vunpack.c.h.b16 %v3360_v12  ;;  %v6403_v29 = vpop.eup %4857  ;;  %4869 = vpow2.f32 %v2543_v8  ;;  %v2987_v24 = vadd.f32 %v6187_v27, %v2986_v50  ;;  %9478 = vst [vmem:[#allocation85_spill] sm:$0xff] %v6408_v1  ;;  %v9479_v4 = vld [vmem:[#allocation63_spill] sm:$0xff] }
 0x315   : > { %v3590_v61 = vpack.c.b16 %v3542_v6, %v3540_v60  ;;  %v3536_v0 = vunpack.c.l.b16 %v3357_v21  ;;  %v6410_v34 = vpop.eup %4859  ;;  %4871 = vpow2.f32 %v2545_v42  ;;  %v3021_v58 = vadd.f32 %v6153_v36, %v3020_v20 }
 0x316   : > { %v3591_v14 = vpack.c.b16 %v3543_v11, %v3541_v44  ;;  %v3538_v41 = vunpack.c.l.b16 %v3358_v17  ;;  %v6415_v12 = vpop.eup %4861  ;;  %4873 = vpow2.f32 %v2547_v62  ;;  %v2988_v8 = vadd.f32 %v6203_v38, %v2987_v24  ;;  %v9481_v24 = vld [vmem:[#allocation22_spill] sm:$0xff] }
 0x317   : > { %4693 = vmatmul.msk.bf16.gmra.mxu2 %vm810_vm3, %v9479_v4  ;;  %v3537_v50 = vunpack.c.h.b16 %v3357_v21  ;;  %v3539_v1 = vunpack.c.h.b16 %v3358_v17  ;;  %v6420_v6 = vpop.eup %4863  ;;  %4875 = vpow2.f32 %v2549_v9  ;;  %v9480_v42 = vsub.f32 %v9437_v10, %v6008_v43  ;;  %4717 = vmatmul.msk.bf16.gmra.mxu0 %vm810_vm3, %v9481_v24 }
 0x318   : > { %3640 = vmatpush.bf16.msrb.mxu2 %v3590_v61  ;;  %4709 = vmatmul.msk.bf16.gmra.mxu3 %vm810_vm3, %v9479_v4  ;;  %v3022_v20 = vadd.f32 %v6165_v55, %v3021_v58  ;;  %v3355_v62 = vpack.c.bf16 %v6250_v57, %v6239_v40  ;;  %v6430_v21 = vpop.eup %4865  ;;  %4877 = vpow2.f32 %v6332_v23  ;;  %v2989_v17 = vadd.f32 %v6221_v63, %v2988_v8 }
 0x319   : > { %v2573_v60 = vmul.f32 1.442695, %v9480_v42  ;;  %3666 = vmatpush.bf16.msra.mxu0 %v3591_v14  ;;  %4733 = vmatmul.msk.bf16.gmra.mxu1 %vm810_vm3, %v9481_v24  ;;  %v3588_v9 = vpack.c.b16 %v3538_v41, %v3536_v0  ;;  %v3356_v10 = vpack.c.bf16 %v6373_v3, %v6365_v49  ;;  %v6438_v14 = vpop.eup %4867  ;;  %4879 = vpow2.f32 %v6340_v46 }
 0x31a   : > { %v9482_v44 = vsub.f32 %v9438_v54, %v6011_v28  ;;  %v3023_v61 = vadd.f32 %v6177_v13, %v3022_v20  ;;  %v3589_v23 = vpack.c.b16 %v3539_v1, %v3537_v50  ;;  %v6445_v58 = vpop.eup %4869  ;;  %4881 = vpow2.f32 %v6345_v25  ;;  %v6453_v54 = vpop.f32.mrf.mxu2 }
 0x31b   : > { %v2990_v0 = vadd.f32 %v6239_v40, %v2989_v17  ;;  %v3532_v41 = vunpack.c.l.b16 %v3355_v62  ;;  %v3534_v4 = vunpack.c.l.b16 %v3356_v10  ;;  %v6449_v8 = vpop.eup %4871  ;;  %4883 = vpow2.f32 %v6350_v39  ;;  %9483 = vst [vmem:[#allocation16_spill] sm:$0xff] %v6453_v54  ;;  %v6459_v25 = vpop.f32.mrf.mxu3 }
 0x31c   : > { %v2575_v11 = vmul.f32 1.442695, %v9482_v44  ;;  %3641 = vmatpush.bf16.msrb.mxu2 %v3588_v9  ;;  %v3024_v46 = vadd.f32 %v6193_v32, %v3023_v61  ;;  %v3533_v42 = vunpack.c.h.b16 %v3355_v62  ;;  %v3535_v1 = vunpack.c.h.b16 %v3356_v10  ;;  %v6455_v50 = vpop.eup %4873  ;;  %9484 = vst [vmem:[#allocation63_spill] sm:$0xff] %v6459_v25  ;;  %v6476_v44 = vpop.f32.mrf.mxu0 }
 0x31d   : > { %3667 = vmatpush.bf16.msra.mxu0 %v3589_v23  ;;  %4885 = vpow2.f32 %v6357_v56  ;;  %v2991_v40 = vadd.f32 %v6365_v49, %v2990_v0  ;;  %v3586_v20 = vpack.c.b16 %v3534_v4, %v3532_v41  ;;  %v3353_v24 = vpack.c.bf16 %v6212_v19, %v6203_v38  ;;  %v6463_v39 = vpop.eup %4875  ;;  %9486 = vst [vmem:[#allocation22_spill] sm:$0xff] %v6476_v44  ;;  %v6478_v61 = vpop.f32.mrf.mxu1  ;;  %v9521_v44 = vld [vmem:[#allocation27_spill] sm:$0xff] }
 0x31e   : > { %4887 = vpow2.f32 %v6362_v51  ;;  %v3025_v17 = vadd.f32 %v6212_v19, %v3024_v46  ;;  %v3587_v62 = vpack.c.b16 %v3535_v1, %v3533_v42  ;;  %v3354_v9 = vpack.c.bf16 %v6230_v45, %v6221_v63  ;;  %v6469_v10 = vpop.eup %4877  ;;  %9487 = vst [vmem:[#allocation102_spill] sm:$0xff] %v6478_v61  ;;  %v9520_v61 = vld [vmem:[#allocation41_spill] sm:$0xff] }
 0x31f   : > { %4889 = vpow2.f32 %v6378_v15  ;;  %v9485_v56 = vsub.f32 %v9440_v16, %v6008_v43  ;;  %v2992_v38 = vadd.f32 %v6261_v2, %v2991_v40  ;;  %v3528_v19 = vunpack.c.l.b16 %v3353_v24  ;;  %v6480_v51 = vpop.eup %4879  ;;  %v9488_v16 = vld [vmem:[#allocation86_spill] sm:$0xff] }
 0x320   : > { %3642 = vmatpush.bf16.msrb.mxu2 %v3586_v20  ;;  %v3026_v63 = vadd.f32 %v6230_v45, %v3025_v17  ;;  %v3530_v23 = vunpack.c.l.b16 %v3354_v9  ;;  %v3529_v0 = vunpack.c.h.b16 %v3353_v24  ;;  %v3531_v15 = vunpack.c.h.b16 %v3354_v9  ;;  %v6483_v41 = vpop.eup %4881  ;;  %v9490_v45 = vld [vmem:[#allocation70_spill] sm:$0xff]  ;;  %v9491_v20 = vld [vmem:[#allocation81_spill] sm:$0xff] }
 0x321   : > { %v2577_v49 = vmul.f32 1.442695, %v9485_v56  ;;  %3668 = vmatpush.bf16.msra.mxu0 %v3587_v62  ;;  %v2268_v4 = vsub.f32 %v9488_v16, %v6011_v28  ;;  %4891 = vpow2.f32 %v6388_v59  ;;  %v9489_v2 = vsub.f32 %v9441_v22, %v6011_v28  ;;  %v6492_v1 = vpop.eup %4883  ;;  %v9493_v59 = vld [vmem:[#allocation82_spill] sm:$0xff] }
 0x322   : > { %v2993_v42 = vadd.f32 %v6289_v7, %v2992_v38  ;;  %v2260_v40 = vsub.f32 %v9490_v45, %v6011_v28  ;;  %4893 = vpow2.f32 %v2573_v60  ;;  %v9492_v24 = vsub.f32 %v9491_v20, %v6008_v43 }
 0x323   : > { %v2579_v46 = vmul.f32 1.442695, %v9489_v2  ;;  %v3027_v62 = vadd.f32 %v6250_v57, %v3026_v63  ;;  %v6500_v9 = vpop.eup %4885  ;;  %4895 = vpow2.f32 %v2575_v11  ;;  %v9494_v22 = vsub.f32 %v9493_v59, %v6011_v28  ;;  %v9506_v59 = vld [vmem:[#allocation28_spill] sm:$0xff] }
 0x324   : > { %v2581_v17 = vmul.f32 1.442695, %v9492_v24  ;;  %v2994_v7 = vadd.f32 %v6313_v18, %v2993_v42  ;;  %v3584_v38 = vpack.c.b16 %v3530_v23, %v3528_v19  ;;  %v6506_v16 = vpop.eup %4887  ;;  %4897 = vpow2.f32 %v2577_v49  ;;  %v9496_v19 = vld [vmem:[#allocation54_spill] sm:$0xff] }
 0x325   : > { %v2583_v56 = vmul.f32 1.442695, %v9494_v22  ;;  %v9495_v60 = vsub.f32 %v9447_v30, %v6008_v43  ;;  %v3028_v45 = vadd.f32 %v6373_v3, %v3027_v62  ;;  %v3585_v57 = vpack.c.b16 %v3531_v15, %v3529_v0  ;;  %v6512_v63 = vpop.eup %4889  ;;  %v9497_v49 = vld [vmem:[#allocation10_spill] sm:$0xff]  ;;  %v6524_v0 = vpop.f32.mrf.mxu2  ;;  %v9501_v15 = vld [vmem:[#allocation72_spill] sm:$0xff] }
 0x326   : > { %4899 = vpow2.f32 %v2579_v46  ;;  %v2587_v11 = vmul.f32 1.442695, %v2268_v4  ;;  %v2995_v20 = vadd.f32 %v6335_v35, %v2994_v7  ;;  %3643 = vmatpush.bf16.msrb.mxu2 %v3584_v38  ;;  %v6517_v18 = vpack.c.bf16 %v6177_v13, %v6171_v53  ;;  %v9498_v23 = vld [vmem:[#allocation50_spill] sm:$0xff]  ;;  %9500 = vst [vmem:[#allocation86_spill] sm:$0xff] %v6524_v0  ;;  %v9502_v4 = vld [vmem:[#allocation56_spill] sm:$0xff]  ;;  %v6534_v62 = vpop.f32.mrf.mxu3 }
 0x327   : > { %v2585_v2 = vmul.f32 1.442695, %v9495_v60  ;;  %v9499_v42 = vmax.f32 %v9497_v49, %v9498_v23  ;;  %v2571_v24 = vmul.f32 1.442695, %v2260_v40  ;;  %4901 = vpow2.f32 %v2581_v17  ;;  %3669 = vmatpush.bf16.msra.mxu0 %v3585_v57  ;;  %4694 = vmatmul.msk.bf16.gmra.mxu2 %vm810_vm3, %v9501_v15  ;;  %v6528_v35 = vpop.eup %4891  ;;  %9504 = vst [vmem:[#allocation70_spill] sm:$0xff] %v6534_v62  ;;  %v9505_v17 = vld [vmem:[#allocation57_spill] sm:$0xff]  ;;  %v6558_v49 = vpop.f32.mrf.mxu1 }
 0x328   : > { %v3029_v3 = vadd.f32 %v6277_v31, %v3028_v45  ;;  %v9503_v53 = vsub.f32 %v9502_v4, %v6008_v43  ;;  %4903 = vpow2.f32 %v2583_v56  ;;  %v2996_v46 = vadd.f32 %v6383_v26, %v2995_v20  ;;  %4710 = vmatmul.msk.bf16.gmra.mxu3 %vm810_vm3, %v9501_v15  ;;  %v6542_v40 = vpop.eup %4893  ;;  %v9507_v7 = vld [vmem:[#allocation58_spill] sm:$0xff]  ;;  %v9509_v60 = vld [vmem:[#allocation25_spill] sm:$0xff]  ;;  %v6556_v20 = vpop.f32.mrf.mxu0  ;;  %9512 = vst [vmem:[#allocation82_spill] sm:$0xff] %v6558_v49 }
 0x329   : > { %v1966_v30 = vmax.f32 %v9499_v42, %v9496_v19  ;;  %v6538_v31 = vpack.c.bf16 %v6193_v32, %v6187_v27  ;;  %v1930_v22 = vmax.f32 %v9506_v59, %v9505_v17  ;;  %v9508_v43 = vsub.f32 %v9507_v7, %v6011_v28  ;;  %4734 = vmatmul.msk.bf16.gmra.mxu1 %vm810_vm3, %v9509_v60  ;;  %v6552_v27 = vpop.eup %4895  ;;  %v9510_v32 = vld [vmem:[#allocation59_spill] sm:$0xff]  ;;  %v9514_v15 = vld [vmem:[#allocation61_spill] sm:$0xff]  ;;  %v9515_v7 = vld [vmem:[#allocation64_spill] sm:$0xff] }
 0x32a   : > { %v2553_v13 = vmul.f32 1.442695, %v9503_v53  ;;  %4905 = vpow2.f32 %v2585_v2  ;;  %v3030_v38 = vadd.f32 %v6300_v47, %v3029_v3  ;;  %v2997_v57 = vadd.f32 %v6400_v48, %v2996_v46  ;;  %9511 = vst [vmem:[#allocation81_spill] sm:$0xff] %v6556_v20  ;;  %4718 = vmatmul.msk.bf16.gmra.mxu0 %vm810_vm3, %v9509_v60  ;;  %v6563_v47 = vpop.eup %4897  ;;  %v9513_v2 = vld [vmem:[#allocation60_spill] sm:$0xff] }
 0x32b   : > { %v2555_v56 = vmul.f32 1.442695, %v9508_v43  ;;  %v1967_v45 = vmax.f32 %v1966_v30, %v9510_v32  ;;  %4907 = vpow2.f32 %v2587_v11  ;;  %v3524_v28 = vunpack.c.l.b16 %v6517_v18 }
 0x32c   : > { %v1931_v42 = vmax.f32 %v1930_v22, %v9513_v2  ;;  %4909 = vpow2.f32 %v2571_v24  ;;  %v3031_v3 = vadd.f32 %v6324_v5, %v3030_v38  ;;  %v3373_v11 = vpack.c.bf16 %v6552_v27, %v6542_v40  ;;  %v6569_v30 = vpop.eup %4899 }
 0x32d   : > { %v6572_v4 = vmax.f32 %v1967_v45, %v9514_v15  ;;  %4911 = vpow2.f32 %v2553_v13  ;;  %v2998_v53 = vadd.f32 %v6410_v34, %v2997_v57  ;;  %v3526_v46 = vunpack.c.l.b16 %v6538_v31  ;;  %v6576_v59 = vpop.eup %4901  ;;  %v9517_v15 = vld [vmem:[#allocation77_spill] sm:$0xff] }
 0x32e   : > { %v1932_v22 = vmax.f32 %v1931_v42, %v9515_v7  ;;  %4913 = vpow2.f32 %v2555_v56  ;;  %v3032_v5 = vadd.f32 %v6352_v33, %v3031_v3  ;;  %v3374_v24 = vpack.c.bf16 %v6569_v30, %v6563_v47  ;;  %v6582_v43 = vpop.eup %4903 }
 0x32f   : > { %9516 = vst [vmem:[#allocation10_spill] sm:$0xff] %v6582_v43  ;;  %v2999_v38 = vadd.f32 %v6420_v6, %v2998_v53  ;;  %v3568_v60 = vunpack.c.l.b16 %v3373_v11  ;;  %v3569_v13 = vunpack.c.h.b16 %v3373_v11  ;;  %v3582_v45 = vpack.c.b16 %v3526_v46, %v3524_v28 }
 0x330   : > { %v6585_v57 = vpop.eup %4905  ;;  %v3033_v2 = vadd.f32 %v9517_v15, %v3032_v5  ;;  %v3375_v42 = vpack.c.bf16 %v6582_v43, %v6576_v59  ;;  %v3570_v56 = vunpack.c.l.b16 %v3374_v24  ;;  %v3571_v7 = vunpack.c.h.b16 %v3374_v24 }
 0x331   : > { %v6590_v33 = vpop.eup %4907  ;;  %v3000_v3 = vadd.f32 %v6438_v14, %v2999_v38  ;;  %v6595_v32 = vpack.c.bf16 %v6512_v63, %v6506_v16  ;;  %v6599_v28 = vpack.c.bf16 %v6483_v41, %v6480_v51  ;;  %v6603_v11 = vpack.c.bf16 %v6500_v9, %v6492_v1  ;;  %3644 = vmatpush.bf16.msrb.mxu2 %v3582_v45 }
 0x332   : > { %9518 = vst [vmem:[#allocation72_spill] sm:$0xff] %v6590_v33  ;;  %v6605_v53 = vpop.eup %4909  ;;  %v3034_v46 = vadd.f32 %v6403_v29, %v3033_v2  ;;  %v3376_v5 = vpack.c.bf16 %v6590_v33, %v6585_v57  ;;  %v3572_v24 = vunpack.c.l.b16 %v3375_v42  ;;  %v3573_v38 = vunpack.c.h.b16 %v3375_v42  ;;  %v6614_v2 = vpop.f32.mrf.mxu2  ;;  %v9522_v42 = vld [vmem:[#allocation65_spill] sm:$0xff] }
 0x333   : > { %v4912_v17 = vpop.eup %4911  ;;  %v3001_v19 = vadd.f32 %v6449_v8, %v3000_v3  ;;  %v3604_v23 = vpack.c.b16 %v3570_v56, %v3568_v60  ;;  %v3605_v62 = vpack.c.b16 %v3571_v7, %v3569_v13  ;;  %v3525_v0 = vunpack.c.h.b16 %v6517_v18  ;;  %9519 = vst [vmem:[#allocation56_spill] sm:$0xff] %v6614_v2  ;;  %v6625_v60 = vpop.f32.mrf.mxu0  ;;  %v9525_v56 = vld [vmem:[#allocation67_spill] sm:$0xff] }
 0x334   : > { %v4914_v25 = vpop.eup %4913  ;;  %v3035_v54 = vadd.f32 %v6415_v12, %v3034_v46  ;;  %v3574_v45 = vunpack.c.l.b16 %v3376_v5  ;;  %v3575_v49 = vunpack.c.h.b16 %v3376_v5  ;;  %v3527_v20 = vunpack.c.h.b16 %v6538_v31  ;;  %9523 = vst [vmem:[#allocation28_spill] sm:$0xff] %v6625_v60  ;;  %v6627_v13 = vpop.f32.mrf.mxu1 }
 0x335   : > { %v6618_v37 = vpack.c.bf16 %v9521_v44, %v9520_v61  ;;  %v3002_v7 = vadd.f32 %v6463_v39, %v3001_v19  ;;  %v3372_v18 = vpack.c.bf16 %v6605_v53, %v6528_v35  ;;  %9524 = vst [vmem:[#allocation58_spill] sm:$0xff] %v6627_v13  ;;  %v6630_v31 = vmax.f32 %v1932_v22, %v9525_v56  ;;  %v6635_v33 = vpop.f32.mrf.mxu3  ;;  %v9527_v22 = vld [vmem:[#allocation101_spill] sm:$0xff] }
 0x336   : > { %v3036_v46 = vadd.f32 %v6430_v21, %v3035_v54  ;;  %v3606_v5 = vpack.c.b16 %v3574_v45, %v3572_v24  ;;  %v3607_v44 = vpack.c.b16 %v3575_v49, %v3573_v38  ;;  %v3560_v2 = vunpack.c.l.b16 %v6599_v28  ;;  %9526 = vst [vmem:[#allocation25_spill] sm:$0xff] %v6635_v33  ;;  %v9528_v54 = vld [vmem:[#allocation40_spill] sm:$0xff] }
 0x337   : > { %v3003_v61 = vadd.f32 %v4912_v17, %v3002_v7  ;;  %v3562_v3 = vunpack.c.l.b16 %v6603_v11  ;;  %v3583_v19 = vpack.c.b16 %v3527_v20, %v3525_v0  ;;  %v3564_v13 = vunpack.c.l.b16 %v6595_v32 }
 0x338   : > { %v3037_v43 = vadd.f32 %v6445_v58, %v3036_v46  ;;  %3653 = vmatpush.bf16.msrb.mxu3 %v3606_v5  ;;  %3679 = vmatpush.bf16.msra.mxu1 %v3607_v44  ;;  %v3349_v56 = vpack.c.bf16 %v6153_v36, %v9527_v22  ;;  %v3350_v49 = vpack.c.bf16 %v6165_v55, %v9528_v54  ;;  %v3566_v38 = vunpack.c.l.b16 %v3372_v18  ;;  %v9529_v44 = vld [vmem:[#allocation32_spill] sm:$0xff] }
 0x339   : > { %v3004_v24 = vadd.f32 %v6480_v51, %v3003_v61  ;;  %v3565_v45 = vunpack.c.h.b16 %v6595_v32  ;;  %v3567_v0 = vunpack.c.h.b16 %v3372_v18  ;;  %3670 = vmatpush.bf16.msra.mxu0 %v3583_v19  ;;  %4735 = vmatmul.msk.bf16.gmra.mxu1 %vm810_vm3, %v9529_v44  ;;  %v3367_v55 = vpack.c.bf16 %v6469_v10, %v6463_v39  ;;  %v9530_v51 = vld [vmem:[#allocation37_spill] sm:$0xff]  ;;  %v9531_v61 = vld [vmem:[#allocation48_spill] sm:$0xff] }
 0x33a   : > { %v3038_v20 = vadd.f32 %v6455_v50, %v3037_v43  ;;  %v3520_v7 = vunpack.c.l.b16 %v3349_v56  ;;  %v3522_v46 = vunpack.c.l.b16 %v3350_v49  ;;  %v3521_v5 = vunpack.c.h.b16 %v3349_v56  ;;  %4719 = vmatmul.msk.bf16.gmra.mxu0 %vm810_vm3, %v9529_v44 }
 0x33b   : > { %v3005_v36 = vadd.f32 %v6492_v1, %v3004_v24  ;;  %v3523_v22 = vunpack.c.h.b16 %v3350_v49  ;;  %v3347_v54 = vpack.c.bf16 %v9531_v61, %v9530_v51  ;;  %v3561_v43 = vunpack.c.h.b16 %v6599_v28  ;;  %v9532_v49 = vld [vmem:[#allocation99_spill] sm:$0xff] }
 0x33c   : > { %v3039_v32 = vadd.f32 %v6469_v10, %v3038_v20  ;;  %3654 = vmatpush.bf16.msrb.mxu3 %v3604_v23  ;;  %3680 = vmatpush.bf16.msra.mxu1 %v3605_v62  ;;  %v3368_v18 = vpack.c.bf16 %v4914_v25, %v4912_v17  ;;  %v3580_v56 = vpack.c.b16 %v3522_v46, %v3520_v7  ;;  %v3563_v19 = vunpack.c.h.b16 %v6603_v11  ;;  %v6661_v10 = vpop.f32.mrf.mxu2  ;;  %v6666_v11 = vpop.f32.mrf.mxu1  ;;  %v9534_v20 = vld [vmem:[#allocation93_spill] sm:$0xff] }
 0x33d   : > { %v3006_v1 = vadd.f32 %v6506_v16, %v3005_v36  ;;  %v3581_v39 = vpack.c.b16 %v3523_v22, %v3521_v5  ;;  %v3348_v24 = vpack.c.bf16 %v6137_v52, %v9532_v49  ;;  %v3602_v61 = vpack.c.b16 %v3566_v38, %v3564_v13  ;;  %9533 = vst [vmem:[#allocation77_spill] sm:$0xff] %v6661_v10  ;;  %v6664_v16 = vpop.f32.mrf.mxu0  ;;  %v9536_v5 = vld [vmem:[#allocation68_spill] sm:$0xff] }
 0x33e   : > { %v3040_v51 = vadd.f32 %v4914_v25, %v3039_v32  ;;  %v3603_v33 = vpack.c.b16 %v3567_v0, %v3565_v45  ;;  %v3600_v44 = vpack.c.b16 %v3562_v3, %v3560_v2  ;;  %3645 = vmatpush.bf16.msrb.mxu2 %v3580_v56  ;;  %v3556_v62 = vunpack.c.l.b16 %v3367_v55  ;;  %v6674_v0 = vpop.f32.mrf.mxu3  ;;  %4711 = vmatmul.msk.bf16.gmra.mxu3 %vm810_vm3, %v9534_v20 }
 0x33f   : > { %v3007_v23 = vadd.f32 %v6528_v35, %v3006_v1  ;;  %3671 = vmatpush.bf16.msra.mxu0 %v3581_v39  ;;  %v3516_v17 = vunpack.c.l.b16 %v3347_v54  ;;  %v3518_v28 = vunpack.c.l.b16 %v3348_v24  ;;  %4695 = vmatmul.msk.bf16.gmra.mxu2 %vm810_vm3, %v9534_v20  ;;  %v3558_v25 = vunpack.c.l.b16 %v3368_v18  ;;  %9535 = vst [vmem:[#allocation41_spill] sm:$0xff] %v6674_v0 }
 0x340   : > { %v3041_v52 = vadd.f32 %v6483_v41, %v3040_v51  ;;  %3655 = vmatpush.bf16.msrb.mxu3 %v3602_v61  ;;  %3681 = vmatpush.bf16.msra.mxu1 %v3603_v33  ;;  %v3557_v2 = vunpack.c.h.b16 %v3367_v55  ;;  %v3559_v3 = vunpack.c.h.b16 %v3368_v18  ;;  %v3365_v13 = vpack.c.bf16 %v6445_v58, %v6438_v14  ;;  %v9538_v14 = vld [vmem:[#allocation74_spill] sm:$0xff] }
 0x341   : > { %v3008_v35 = vadd.f32 %v6542_v40, %v3007_v23  ;;  %v3578_v38 = vpack.c.b16 %v3518_v28, %v3516_v17  ;;  %v3517_v45 = vunpack.c.h.b16 %v3347_v54  ;;  %v3601_v41 = vpack.c.b16 %v3563_v19, %v3561_v43  ;;  %v9541_v19 = vld [vmem:[#allocation31_spill] sm:$0xff] }
 0x342   : > { %v3042_v7 = vadd.f32 %v6500_v9, %v3041_v52  ;;  %v3366_v33 = vpack.c.bf16 %v6455_v50, %v6449_v8  ;;  %v3519_v46 = vunpack.c.h.b16 %v3348_v24  ;;  %v9537_v40 = vmax.f32 %v6572_v4, %v9522_v42 }
 0x343   : > { %v1934_v58 = vmax.f32 %v6630_v31, %v9538_v14  ;;  %v3009_v55 = vadd.f32 %v6563_v47, %v3008_v35  ;;  %3646 = vmatpush.bf16.msrb.mxu2 %v3578_v38  ;;  %v3363_v22 = vpack.c.bf16 %v6415_v12, %v6410_v34  ;;  %v3598_v8 = vpack.c.b16 %v3558_v25, %v3556_v62 }
 0x344   : > { %v1970_v36 = vmax.f32 %v9537_v40, %v9536_v5  ;;  %v3043_v9 = vadd.f32 %v6512_v63, %v3042_v7  ;;  %3656 = vmatpush.bf16.msrb.mxu3 %v3600_v44  ;;  %3682 = vmatpush.bf16.msra.mxu1 %v3601_v41  ;;  %v3364_v50 = vpack.c.bf16 %v6430_v21, %v6420_v6  ;;  %v3552_v32 = vunpack.c.l.b16 %v3365_v13  ;;  %v6695_v1 = vpop.f32.mrf.mxu2  ;;  %v9540_v63 = vld [vmem:[#allocation15_spill] sm:$0xff]  ;;  %v9542_v6 = vld [vmem:[#allocation96_spill] sm:$0xff]  ;;  %v6704_v24 = vpop.f32.mrf.mxu1 }
 0x345   : > { %v3010_v4 = vadd.f32 %v6576_v59, %v3009_v55  ;;  %v3599_v54 = vpack.c.b16 %v3559_v3, %v3557_v2  ;;  %v3579_v43 = vpack.c.b16 %v3519_v46, %v3517_v45  ;;  %v3554_v47 = vunpack.c.l.b16 %v3366_v33  ;;  %9539 = vst [vmem:[#allocation27_spill] sm:$0xff] %v6695_v1  ;;  %v9543_v21 = vld [vmem:[#allocation36_spill] sm:$0xff]  ;;  %v6702_v49 = vpop.f32.mrf.mxu0  ;;  %v9545_v3 = vld [vmem:[#allocation75_spill] sm:$0xff]  ;;  %v9547_v45 = vld [vmem:[#allocation10_spill] sm:$0xff] }
 0x346   : > { %v3044_v31 = vadd.f32 %v6605_v53, %v3043_v9  ;;  %v3553_v18 = vunpack.c.h.b16 %v3365_v13  ;;  %v3555_v56 = vunpack.c.h.b16 %v3366_v33  ;;  %v3548_v12 = vunpack.c.l.b16 %v3363_v22  ;;  %v9544_v2 = vld [vmem:[#allocation8_spill] sm:$0xff] }
 0x347   : > { %v3011_v34 = vadd.f32 %v6585_v57, %v3010_v4  ;;  %3672 = vmatpush.bf16.msra.mxu0 %v3579_v43  ;;  %v3345_v39 = vpack.c.bf16 %v9541_v19, %v9540_v63  ;;  %v3346_v59 = vpack.c.bf16 %v9543_v21, %v9542_v6  ;;  %v3550_v51 = vunpack.c.l.b16 %v3364_v50  ;;  %v9549_v41 = vld [vmem:[#allocation80_spill] sm:$0xff]  ;;  %v9552_v4 = vld [vmem:[#allocation83_spill] sm:$0xff] }
 0x348   : > { %v3045_v53 = vadd.f32 %v6552_v27, %v3044_v31  ;;  %3657 = vmatpush.bf16.msrb.mxu3 %v3598_v8  ;;  %3683 = vmatpush.bf16.msra.mxu1 %v3599_v54  ;;  %v3549_v61 = vunpack.c.h.b16 %v3363_v22  ;;  %v3551_v44 = vunpack.c.h.b16 %v3364_v50  ;;  %v3361_v17 = vpack.c.bf16 %v9517_v15, %v6383_v26  ;;  %v9546_v26 = vld [vmem:[#allocation79_spill] sm:$0xff]  ;;  %v9550_v55 = vld [vmem:[#allocation72_spill] sm:$0xff] }
 0x349   : > { %v3012_v57 = vrot.slane %v3011_v34, 4  ;;  %v3512_v23 = vunpack.c.l.b16 %v3345_v39  ;;  %v3514_v62 = vunpack.c.l.b16 %v3346_v59  ;;  %v3596_v20 = vpack.c.b16 %v3554_v47, %v3552_v32  ;;  %4736 = vmatmul.msk.bf16.gmra.mxu1 %vm810_vm3, %v9544_v2  ;;  %v9555_v47 = vld [vmem:[#allocation84_spill] sm:$0xff]  ;;  %v9556_v63 = vld [vmem:[#allocation87_spill] sm:$0xff] }
 0x34a   : > { %v3046_v28 = vadd.f32 %v6569_v30, %v3045_v53  ;;  %v3597_v52 = vpack.c.b16 %v3555_v56, %v3553_v18  ;;  %v3362_v25 = vpack.c.bf16 %v6403_v29, %v6400_v48  ;;  %v3474_v27 = vunpack.c.l.b16 %v6618_v37  ;;  %4720 = vmatmul.msk.bf16.gmra.mxu0 %vm810_vm3, %v9544_v2  ;;  %v6720_v48 = vpop.f32.mrf.mxu3  ;;  %v9558_v6 = vld [vmem:[#allocation88_spill] sm:$0xff] }
 0x34b   : > { %v1971_v35 = vmax.f32 %v1970_v36, %v9545_v3  ;;  %v3576_v13 = vpack.c.b16 %v3514_v62, %v3512_v23  ;;  %v3513_v38 = vunpack.c.h.b16 %v3345_v39  ;;  %v1935_v15 = vmax.f32 %v1934_v58, %v9546_v26  ;;  %9548 = vst [vmem:[#allocation65_spill] sm:$0xff] %v6720_v48  ;;  %v9598_v48 = vld [vmem:[#allocation14_spill] sm:$0xff] }
 0x34c   : > { %v3013_v30 = vadd.f32 %v3012_v57, %v3011_v34  ;;  %v3047_v7 = vadd.f32 %v9547_v45, %v3046_v28  ;;  %3658 = vmatpush.bf16.msrb.mxu3 %v3596_v20  ;;  %3684 = vmatpush.bf16.msra.mxu1 %v3597_v52  ;;  %v3515_v29 = vunpack.c.h.b16 %v3346_v59  ;;  %v3594_v46 = vpack.c.b16 %v3550_v51, %v3548_v12  ;;  %v6729_v31 = vpop.f32.mrf.mxu1  ;;  %v6734_v39 = vpop.f32.mrf.mxu2  ;;  %v9560_v57 = vld [vmem:[#allocation91_spill] sm:$0xff]  ;;  %v9562_v28 = vld [vmem:[#allocation94_spill] sm:$0xff] }
 0x34d   : > { %v1972_v33 = vmax.f32 %v1971_v35, %v9549_v41  ;;  %v3595_v40 = vpack.c.b16 %v3551_v44, %v3549_v61  ;;  %3647 = vmatpush.bf16.msrb.mxu2 %v3576_v13  ;;  %v3544_v36 = vunpack.c.l.b16 %v3361_v17  ;;  %v3546_v9 = vunpack.c.l.b16 %v3362_v25  ;;  %v6727_v43 = vpop.f32.mrf.mxu0  ;;  %9554 = vst [vmem:[#allocation32_spill] sm:$0xff] %v6729_v31  ;;  %v9559_v61 = vld [vmem:[#allocation90_spill] sm:$0xff]  ;;  %v9563_v52 = vld [vmem:[#allocation95_spill] sm:$0xff] }
 0x34e   : > { %v3048_v22 = vadd.f32 %v9550_v55, %v3047_v7  ;;  %v3545_v8 = vunpack.c.h.b16 %v3361_v17  ;;  %v3547_v50 = vunpack.c.h.b16 %v3362_v25  ;;  %v6724_v58 = vpack.c.b16 %v3474_v27, %v3474_v27  ;;  %9553 = vst [vmem:[#allocation40_spill] sm:$0xff] %v6727_v43  ;;  %v9569_v7 = vld [vmem:[#allocation26_spill] sm:$0xff] }
 0x34f   : > { %v1936_v54 = vmax.f32 %v1935_v15, %v9552_v4  ;;  %v3577_v32 = vpack.c.b16 %v3515_v29, %v3513_v38  ;;  %v1973_v18 = vmax.f32 %v1972_v33, %v9555_v47  ;;  %v3014_v56 = vrot.slane %v3013_v30, 2  ;;  %9557 = vst [vmem:[#allocation37_spill] sm:$0xff] %v6734_v39 }
 0x350   : > { %9551 = vst [vmem:[#allocation101_spill] sm:$0xff] %v6724_v58  ;;  %v3049_v34 = vrot.slane %v3048_v22, 4  ;;  %3659 = vmatpush.bf16.msrb.mxu3 %v3594_v46  ;;  %3685 = vmatpush.bf16.msra.mxu1 %v3595_v40  ;;  %v3475_v12 = vunpack.c.h.b16 %v6618_v37  ;;  %v3592_v53 = vpack.c.b16 %v3546_v9, %v3544_v36  ;;  %v3593_v51 = vpack.c.b16 %v3547_v50, %v3545_v8  ;;  %v9570_v36 = vld [vmem:[#allocation13_spill] sm:$0xff] }
 0x351   : > { %v1937_v19 = vmax.f32 %v1936_v54, %v9556_v63  ;;  %3673 = vmatpush.bf16.msra.mxu0 %v3577_v32  ;;  %3648 = vmatmul.bf16.vlgmr.msrb.gmra.mxu2 %v6724_v58  ;;  %v1974_v21 = vmax.f32 %v1973_v18, %v9558_v6  ;;  %v3015_v62 = vadd.f32 %v3014_v56, %v3013_v30  ;;  %v5341_v38 = vmov 0.0   ;;  %v9568_v30 = vld [vmem:[#allocation24_spill] sm:$0xff]  ;;  %v9572_v8 = vld [vmem:[#allocation9_spill] sm:$0xff] }
 0x352   : > { %v3050_v59 = vadd.f32 %v3049_v34, %v3048_v22  ;;  %v6740_v37 = vpack.c.b16 %v3475_v12, %v3475_v12  ;;  %v6744_v27 = vpop.f32.mrf.mxu3  ;;  %743 = vst.msk [vmem:[#allocation6] sm:$0x3] %vm5906_vm4, %v5341_v38  ;;  %v9571_v22 = vld [vmem:[#allocation30_spill] sm:$0xff]  ;;  %v9573_v32 = vld [vmem:[#allocation12_spill] sm:$0xff] }
 0x353   : > { %v1938_v44 = vmax.f32 %v1937_v19, %v9559_v61  ;;  %v1975_v23 = vmax.f32 %v1974_v21, %v9560_v57  ;;  %9564 = vst [vmem:[#allocation99_spill] sm:$0xff] %v6744_v27  ;;  %v3016_v33 = vrot.slane %v3015_v62, 1  ;;  %v9574_v56 = vld [vmem:[#allocation100_spill] sm:$0xff]  ;;  %v9576_v19 = vld [vmem:[#allocation51_spill] sm:$0xff] }
 0x354   : > { %v3051_v17 = vrot.slane %v3050_v59, 2  ;;  %3660 = vmatpush.bf16.msrb.mxu3 %v3592_v53  ;;  %3686 = vmatpush.bf16.msra.mxu1 %v3593_v51  ;;  %9561 = vst [vmem:[#allocation48_spill] sm:$0xff] %v6740_v37  ;;  %v6748_v13 = vpop.f32.mrf.mxu1  ;;  %v6818_v39 = vpop.f32.mrf.mxu2 }
 0x355   : > { %v1939_v20 = vmax.f32 %v1938_v44, %v9562_v28  ;;  %v1976_v25 = vmax.f32 %v1975_v23, %v9563_v52  ;;  %v6746_v35 = vpop.f32.mrf.mxu0  ;;  %9566 = vst [vmem:[#allocation68_spill] sm:$0xff] %v6748_v13  ;;  %v3017_v50 = vadd.f32 %v3016_v33, %v3015_v62  ;;  %v9580_v23 = vld [vmem:[#allocation69_spill] sm:$0xff] }
 0x356   : > { %v3052_v2 = vadd.f32 %v3051_v17, %v3050_v59  ;;  %9565 = vst [vmem:[#allocation93_spill] sm:$0xff] %v6746_v35  ;;  %v9577_v59 = vld [vmem:[#allocation52_spill] sm:$0xff] }
 0x357   : > { %3661 = vmatmul.bf16.vlgmr.msrb.gmra.mxu3 %v6740_v37  ;;  %v1940_v45 = vmax.f32 %v1939_v20, %v9568_v30  ;;  %v1977_v29 = vmax.f32 %v1976_v25, %v9569_v7  ;;  %744 = vst.msk [vmem:[#allocation6 + $0x2] sm:$0x3] %vm5906_vm4, %v5341_v38  ;;  %v9581_v20 = vld [vmem:[#allocation71_spill] sm:$0xff] }
 0x358   : > { %v3053_v46 = vrot.slane %v3052_v2, 1  ;;  %745 = vst.msk [vmem:[#allocation6 + $0x4] sm:$0x3] %vm5906_vm4, %v5341_v38  ;;  %v9582_v25 = vld [vmem:[#allocation55_spill] sm:$0xff] }
 0x359   : > { %v1941_v55 = vmax.f32 %v1940_v45, %v9570_v36  ;;  %v1978_v9 = vmax.f32 %v1977_v29, %v9571_v22  ;;  %4737 = vmatmul.msk.bf16.gmra.mxu1 %vm810_vm3, %v9572_v8  ;;  %746 = vst.msk [vmem:[#allocation6 + $0x6] sm:$0x3] %vm5906_vm4, %v5341_v38  ;;  %v9583_v38 = vld [vmem:[#allocation85_spill] sm:$0xff]  ;;  %v9584_v29 = vld [vmem:[#allocation22_spill] sm:$0xff]  ;;  %v9591_v37 = vld [vmem:[#allocation11_spill] sm:$0xff] }
 0x35a   : > { %v3054_v40 = vadd.f32 %v3053_v46, %v3052_v2  ;;  %4721 = vmatmul.msk.bf16.gmra.mxu0 %vm810_vm3, %v9572_v8  ;;  %v9585_v46 = vld [vmem:[#allocation102_spill] sm:$0xff]  ;;  %9596 = vst [vmem:[#allocation80_spill] sm:$0xff] %v6818_v39 }
 0x35b   : > { %v1942_v18 = vmax.f32 %v1941_v55, %v9573_v32  ;;  %v1979_v34 = vmax.f32 %v1978_v9, %v9574_v56  ;;  %v9586_v55 = vld [vmem:[#allocation81_spill] sm:$0xff]  ;;  %v9587_v8 = vld [vmem:[#allocation82_spill] sm:$0xff] }
 0x35c   : > { %v3285_v54 = vrot.slane %v3054_v40, 7  ;;  %v6776_v44 = vpop.f32.mrf.mxu1 }
 0x35d   : > { %v1943_v21 = vmax.f32 %v1942_v18, %v9576_v19  ;;  %v1980_v53 = vmax.f32 %v1979_v34, %v9577_v59  ;;  %v6774_v51 = vpop.f32.mrf.mxu0  ;;  %9579 = vst [vmem:[#allocation31_spill] sm:$0xff] %v6776_v44 }
 0x35e   : > { %v6770_v12 = vsel %vm2160_vm5, %v3017_v50, %v3285_v54  ;;  %9578 = vst [vmem:[#allocation15_spill] sm:$0xff] %v6774_v51 }
 0x35f   : > { %9575 = vst [vmem:[#allocation74_spill] sm:$0xff] %v6770_v12  ;;  %v1944_v17 = vmax.f32 %v1943_v21, %v9580_v23  ;;  %v1981_v62 = vmax.f32 %v1980_v53, %v9581_v20  ;;  %v9590_v21 = vld [vmem:[#allocation58_spill] sm:$0xff] }
 0x361   : > { %v1945_v2 = vmax.f32 %v1944_v17, %v9582_v25  ;;  %v1982_v45 = vmax.f32 %v1981_v62, %v9583_v38 }
 0x363   : > { %v1946_v33 = vmax.f32 %v1945_v2, %v9584_v29  ;;  %v1983_v40 = vmax.f32 %v1982_v45, %v9585_v46 }
 0x364   : > { %v6788_v18 = vpop.f32.mrf.mxu1 }
 0x365   : > { %v1947_v9 = vmax.f32 %v1946_v33, %v9586_v55  ;;  %v1984_v50 = vmax.f32 %v1983_v40, %v9587_v8  ;;  %v6786_v54 = vpop.f32.mrf.mxu0  ;;  %9589 = vst [vmem:[#allocation36_spill] sm:$0xff] %v6788_v18 }
 0x366   : > { %9588 = vst [vmem:[#allocation96_spill] sm:$0xff] %v6786_v54 }
 0x367   : > { %v1948_v34 = vmax.f32 %v1947_v9, %v6625_v60  ;;  %v1985_v53 = vmax.f32 %v1984_v50, %v9590_v21 }
 0x369   : > { %v1949_v17 = vmax.f32 %v1948_v34, %v6664_v16  ;;  %v1986_v62 = vmax.f32 %v1985_v53, %v6666_v11  ;;  %4738 = vmatmul.msk.bf16.gmra.mxu1 %vm810_vm3, %v9591_v37 }
 0x36a   : > { %4722 = vmatmul.msk.bf16.gmra.mxu0 %vm810_vm3, %v9591_v37 }
 0x36b   : > { %v1950_v2 = vmax.f32 %v1949_v17, %v6702_v49  ;;  %v1987_v45 = vmax.f32 %v1986_v62, %v6704_v24 }
 0x36c   : > { %v6804_v50 = vpop.f32.mrf.mxu1 }
 0x36d   : > { %v1951_v33 = vmax.f32 %v1950_v2, %v6727_v43  ;;  %v1988_v40 = vmax.f32 %v1987_v45, %v6729_v31  ;;  %v6802_v9 = vpop.f32.mrf.mxu0  ;;  %9593 = vst [vmem:[#allocation75_spill] sm:$0xff] %v6804_v50  ;;  %v9679_v60 = vld [vmem:[#allocation96_spill] sm:$0xff] }
 0x36e   : > { %9592 = vst [vmem:[#allocation8_spill] sm:$0xff] %v6802_v9 }
 0x36f   : > { %v1952_v34 = vmax.f32 %v1951_v33, %v6746_v35  ;;  %v1989_v53 = vmax.f32 %v1988_v40, %v6748_v13  ;;  %v6820_v33 = vpop.f32.mrf.mxu3  ;;  %v9630_v13 = vld [vmem:[#allocation25_spill] sm:$0xff] }
 0x370   : > { %9597 = vst [vmem:[#allocation72_spill] sm:$0xff] %v6820_v33 }
 0x371   : > { %v1953_v58 = vmax.f32 %v1952_v34, %v6774_v51  ;;  %v1990_v37 = vmax.f32 %v1989_v53, %v6776_v44  ;;  %v9627_v51 = vld [vmem:[#allocation56_spill] sm:$0xff] }
 0x373   : > { %v1954_v17 = vmax.f32 %v1953_v58, %v6786_v54  ;;  %v1991_v62 = vmax.f32 %v1990_v37, %v6788_v18  ;;  %v6832_v18 = vld [vmem:[#allocation5 + $0x2] sm:$0x3] }
 0x374   : > { %v6816_v27 = vpop.f32.mrf.mxu1  ;;  %9601 = vst [vmem:[#allocation87_spill] sm:$0xff] %v6832_v18 }
 0x375   : > { %v1955_v2 = vmax.f32 %v1954_v17, %v6802_v9  ;;  %v1992_v45 = vmax.f32 %v1991_v62, %v6804_v50  ;;  %v6814_v12 = vpop.f32.mrf.mxu0  ;;  %9595 = vst [vmem:[#allocation10_spill] sm:$0xff] %v6816_v27  ;;  %v6828_v9 = vpop.f32.mrf.mxu2 }
 0x376   : > { %9594 = vst [vmem:[#allocation79_spill] sm:$0xff] %v6814_v12 }
 0x377   : > { %v1956_v40 = vmax.f32 %v1955_v2, %v6814_v12  ;;  %v1993_v34 = vmax.f32 %v1992_v45, %v6816_v27  ;;  %9599 = vst [vmem:[#allocation83_spill] sm:$0xff] %v6828_v9  ;;  %v6830_v33 = vpop.f32.mrf.mxu3  ;;  %v9624_v9 = vld [vmem:[#allocation17_spill] sm:$0xff] }
 0x378   : > { %9600 = vst [vmem:[#allocation84_spill] sm:$0xff] %v6830_v33 }
 0x379   : > { %v1957_v53 = vrot.slane %v1956_v40, 4  ;;  %v1994_v58 = vrot.slane %v1993_v34, 4  ;;  %4739 = vmatmul.msk.bf16.gmra.mxu1 %vm810_vm3, %v9598_v48 }
 0x37a   : > { %4723 = vmatmul.msk.bf16.gmra.mxu0 %vm810_vm3, %v9598_v48 }
 0x37b   : > { %v1958_v37 = vmax.f32 %v1956_v40, %v1957_v53  ;;  %v1995_v17 = vmax.f32 %v1993_v34, %v1994_v58  ;;  %v9603_v40 = vld [vmem:[#allocation46_spill] sm:$0xff]  ;;  %v9604_v34 = vld [vmem:[#allocation97_spill] sm:$0xff] }
 0x37c   : > { %v2000_v53 = vmax.f32 %v9604_v34, %v9603_v40  ;;  %v9606_v58 = vld [vmem:[#allocation98_spill] sm:$0xff] }
 0x37d   : > { %v1959_v62 = vrot.slane %v1958_v37, 2  ;;  %v1996_v1 = vrot.slane %v1995_v17, 2 }
 0x37f   : > { %v1960_v50 = vmax.f32 %v1958_v37, %v1959_v62  ;;  %v1997_v39 = vmax.f32 %v1995_v17, %v1996_v1  ;;  %v9605_v1 = vld [vmem:[#allocation47_spill] sm:$0xff]  ;;  %v9611_v62 = vld [vmem:[#allocation73_spill] sm:$0xff]  ;;  %v9613_v17 = vld [vmem:[#allocation16_spill] sm:$0xff] }
 0x380   : > { %v2037_v37 = vmax.f32 %v9606_v58, %v9605_v1 }
 0x381   : > { %v1961_v2 = vrot.slane %v1960_v50, 1  ;;  %v1998_v45 = vrot.slane %v1997_v39, 1 }
 0x383   : > { %v1999_v27 = vmax.f32 %v1997_v39, %v1998_v45  ;;  %v1962_v12 = vmax.f32 %v1960_v50, %v1961_v2  ;;  %v6847_v39 = vpop.f32.mrf.mxu2  ;;  %v9612_v45 = vld [vmem:[#allocation78_spill] sm:$0xff] }
 0x384   : > { %9607 = vst [vmem:[#allocation90_spill] sm:$0xff] %v6847_v39 }
 0x385   : > { %v2157_v54 = vrot.slane %v1999_v27, 7  ;;  %v6849_v27 = vpop.f32.mrf.mxu3 }
 0x386   : > { %9608 = vst [vmem:[#allocation91_spill] sm:$0xff] %v6849_v27  ;;  %v9616_v27 = vld [vmem:[#allocation63_spill] sm:$0xff] }
 0x387   : > { %v2162_v44 = vsel %vm2160_vm5, %v1962_v12, %v2157_v54  ;;  %v9609_v12 = vld [vmem:[#allocation62_spill] sm:$0xff] }
 0x388   : > { %v6836_v48 = vmax.f32 %v6832_v18, %v2162_v44  ;;  %v2001_v44 = vmax.f32 %v2000_v53, %v9609_v12  ;;  %v9610_v54 = vld [vmem:[#allocation66_spill] sm:$0xff] }
 0x389   : > { %v2038_v50 = vmax.f32 %v2037_v37, %v9610_v54  ;;  %v9617_v37 = vld [vmem:[#allocation38_spill] sm:$0xff] }
 0x38a   : > { %9602 = vst [vmem:[#allocation88_spill] sm:$0xff] %v6836_v48  ;;  %v2002_v2 = vmax.f32 %v2001_v44, %v9611_v62  ;;  %v6856_v1 = vperm.slane %v6836_v48, 0  ;;  %v6864_v39 = vperm.slane %v6836_v48, 1  ;;  %v9618_v44 = vld [vmem:[#allocation86_spill] sm:$0xff] }
 0x38b   : > { %4366 = vst.msk [vmem:[#allocation5 + $0x2] sm:$0x3] %vm5906_vm4, %v6836_v48  ;;  %v2039_v40 = vmax.f32 %v2038_v50, %v9612_v45  ;;  %v6859_v58 = vpop.f32.mrf.mxu2  ;;  %v9619_v50 = vld [vmem:[#allocation39_spill] sm:$0xff]  ;;  %v9620_v12 = vld [vmem:[#allocation70_spill] sm:$0xff] }
 0x38c   : > { %v2003_v18 = vmax.f32 %v2002_v2, %v9613_v17  ;;  %9614 = vst [vmem:[#allocation94_spill] sm:$0xff] %v6859_v58  ;;  %v2269_v54 = vsub.f32 %v9617_v37, %v6856_v1  ;;  %v2270_v45 = vsub.f32 %v9619_v50, %v6864_v39  ;;  %v9621_v2 = vld [vmem:[#allocation42_spill] sm:$0xff]  ;;  %v9626_v37 = vld [vmem:[#allocation44_spill] sm:$0xff] }
 0x38d   : > { %v6861_v34 = vpop.f32.mrf.mxu3  ;;  %v2040_v53 = vmax.f32 %v2039_v40, %v9616_v27  ;;  %v2271_v17 = vsub.f32 %v9621_v2, %v6856_v1  ;;  %v9623_v48 = vld [vmem:[#allocation34_spill] sm:$0xff] }
 0x38e   : > { %9615 = vst [vmem:[#allocation95_spill] sm:$0xff] %v6861_v34  ;;  %v2004_v62 = vmax.f32 %v2003_v18, %v9618_v44  ;;  %v9622_v34 = vld [vmem:[#allocation43_spill] sm:$0xff]  ;;  %v589_v15 = vadd.f32 %v9624_v9, %v9623_v48  ;;  %v9625_v40 = vld [vmem:[#allocation18_spill] sm:$0xff]  ;;  %v2273_v18 = vsub.f32 %v9626_v37, %v6856_v1  ;;  %v2589_v44 = vmul.f32 1.442695, %v2269_v54 }
 0x38f   : > { %v2041_v33 = vmax.f32 %v2040_v53, %v9620_v12  ;;  %v2272_v58 = vsub.f32 %v9622_v34, %v6864_v39  ;;  %v608_v27 = vadd.f32 %v9625_v40, %v9623_v48  ;;  %v9629_v53 = vld [vmem:[#allocation45_spill] sm:$0xff]  ;;  %v2591_v2 = vmul.f32 1.442695, %v2270_v45  ;;  %v9635_v54 = vld [vmem:[#allocation50_spill] sm:$0xff] }
 0x390   : > { %v6884_v50 = vmax.f32 %v2004_v62, %v9627_v51  ;;  %v2274_v12 = vsub.f32 %v9629_v53, %v6864_v39  ;;  %v9632_v34 = vld [vmem:[#allocation49_spill] sm:$0xff]  ;;  %v2593_v31 = vmul.f32 1.442695, %v2271_v17  ;;  %v2276_v40 = vsub.f32 %v9635_v54, %v6864_v39  ;;  %v9638_v17 = vld [vmem:[#allocation54_spill] sm:$0xff]  ;;  %v9640_v54 = vld [vmem:[#allocation59_spill] sm:$0xff] }
 0x391   : > { %v6889_v35 = vmax.f32 %v2041_v33, %v9630_v13  ;;  %v2275_v9 = vsub.f32 %v9632_v34, %v6856_v1  ;;  %v2595_v62 = vmul.f32 1.442695, %v2272_v58  ;;  %v6899_v37 = vpack.c.bf16 %v608_v27, %v589_v15  ;;  %v9637_v53 = vld [vmem:[#allocation53_spill] sm:$0xff] }
 0x392   : > { %9628 = vst [vmem:[#allocation24_spill] sm:$0xff] %v6884_v50  ;;  %v2277_v45 = vsub.f32 %v9637_v53, %v6856_v1  ;;  %4915 = vpow2.f32 %v2589_v44  ;;  %v2597_v33 = vmul.f32 1.442695, %v2273_v18  ;;  %v2278_v34 = vsub.f32 %v9638_v17, %v6864_v39  ;;  %v9639_v58 = vld [vmem:[#allocation57_spill] sm:$0xff]  ;;  %v9641_v18 = vld [vmem:[#allocation60_spill] sm:$0xff] }
 0x393   : > { %9631 = vst [vmem:[#allocation26_spill] sm:$0xff] %v6889_v35  ;;  %v6893_v43 = vpop.f32.mrf.mxu2  ;;  %4917 = vpow2.f32 %v2591_v2  ;;  %v2599_v51 = vmul.f32 1.442695, %v2274_v12  ;;  %v2279_v15 = vsub.f32 %v9639_v58, %v6856_v1  ;;  %v2601_v27 = vmul.f32 1.442695, %v2275_v9  ;;  %v9642_v17 = vld [vmem:[#allocation61_spill] sm:$0xff] }
 0x394   : > { %9633 = vst [vmem:[#allocation13_spill] sm:$0xff] %v6893_v43  ;;  %4919 = vpow2.f32 %v2593_v31  ;;  %v2280_v44 = vsub.f32 %v9640_v54, %v6864_v39  ;;  %v2281_v53 = vsub.f32 %v9641_v18, %v6856_v1  ;;  %v2603_v13 = vmul.f32 1.442695, %v2276_v40  ;;  %v9643_v12 = vld [vmem:[#allocation64_spill] sm:$0xff]  ;;  %v9644_v9 = vld [vmem:[#allocation67_spill] sm:$0xff] }
 0x395   : > { %v6895_v48 = vpop.f32.mrf.mxu3  ;;  %9636 = vst [vmem:[#allocation9_spill] sm:$0xff] %v6899_v37  ;;  %4921 = vpow2.f32 %v2595_v62  ;;  %v2282_v2 = vsub.f32 %v9642_v17, %v6864_v39  ;;  %v2283_v43 = vsub.f32 %v9643_v12, %v6856_v1  ;;  %v2284_v31 = vsub.f32 %v9522_v42, %v6864_v39 }
 0x396   : > { %9634 = vst [vmem:[#allocation30_spill] sm:$0xff] %v6895_v48  ;;  %4923 = vpow2.f32 %v2597_v33  ;;  %v2605_v48 = vmul.f32 1.442695, %v2277_v45  ;;  %v2285_v58 = vsub.f32 %v9644_v9, %v6856_v1  ;;  %v2607_v54 = vmul.f32 1.442695, %v2278_v34 }
 0x397   : > { %4925 = vpow2.f32 %v2599_v51  ;;  %v2286_v40 = vsub.f32 %v9536_v5, %v6864_v39  ;;  %v2287_v62 = vsub.f32 %v9538_v14, %v6856_v1  ;;  %v2609_v18 = vmul.f32 1.442695, %v2279_v15 }
 0x398   : > { %v6923_v0 = vpop.eup %4915  ;;  %4927 = vpow2.f32 %v2601_v27  ;;  %v2288_v42 = vsub.f32 %v9545_v3, %v6864_v39  ;;  %v2289_v45 = vsub.f32 %v9546_v26, %v6856_v1  ;;  %v2611_v51 = vmul.f32 1.442695, %v2280_v44  ;;  %v6965_v26 = vpop.f32.mrf.mxu1 }
 0x399   : > { %9645 = vst [vmem:[#allocation12_spill] sm:$0xff] %v6923_v0  ;;  %v6929_v33 = vpop.eup %4917  ;;  %4929 = vpow2.f32 %v2603_v13  ;;  %v2290_v5 = vsub.f32 %v9549_v41, %v6864_v39  ;;  %v2291_v14 = vsub.f32 %v9552_v4, %v6856_v1  ;;  %v2613_v15 = vmul.f32 1.442695, %v2281_v53 }
 0x39a   : > { %9646 = vst [vmem:[#allocation100_spill] sm:$0xff] %v6929_v33  ;;  %v6935_v34 = vpop.eup %4919  ;;  %4931 = vpow2.f32 %v2605_v48  ;;  %v2292_v3 = vsub.f32 %v9555_v47, %v6864_v39  ;;  %v2615_v13 = vmul.f32 1.442695, %v2282_v2  ;;  %v2617_v53 = vmul.f32 1.442695, %v2283_v43 }
 0x39b   : > { %9647 = vst [vmem:[#allocation51_spill] sm:$0xff] %v6935_v34  ;;  %v6941_v27 = vpop.eup %4921  ;;  %4933 = vpow2.f32 %v2607_v54  ;;  %v6947_v44 = vpop.f32.mrf.mxu2  ;;  %v2619_v9 = vmul.f32 1.442695, %v2284_v31  ;;  %v2621_v48 = vmul.f32 1.442695, %v2285_v58  ;;  %v9683_v50 = vsub.f32 %v9560_v57, %v6864_v39 }
 0x39c   : > { %9648 = vst [vmem:[#allocation52_spill] sm:$0xff] %v6941_v27  ;;  %v6951_v41 = vpop.eup %4923  ;;  %4935 = vpow2.f32 %v2609_v18  ;;  %v6963_v54 = vpop.f32.mrf.mxu0  ;;  %v2623_v2 = vmul.f32 1.442695, %v2286_v40  ;;  %v2625_v58 = vmul.f32 1.442695, %v2287_v62 }
 0x39d   : > { %9649 = vst [vmem:[#allocation69_spill] sm:$0xff] %v6947_v44  ;;  %v6949_v17 = vpop.f32.mrf.mxu3  ;;  %v6957_v47 = vpop.eup %4925  ;;  %4937 = vpow2.f32 %v2611_v51  ;;  %v2627_v40 = vmul.f32 1.442695, %v2288_v42  ;;  %v2629_v62 = vmul.f32 1.442695, %v2289_v45 }
 0x39e   : > { %9650 = vst [vmem:[#allocation71_spill] sm:$0xff] %v6949_v17  ;;  %v6967_v4 = vpop.eup %4927  ;;  %4939 = vpow2.f32 %v2613_v15  ;;  %v2631_v42 = vmul.f32 1.442695, %v2290_v5  ;;  %v2633_v43 = vmul.f32 1.442695, %v2291_v14 }
 0x39f   : > { %9651 = vst [vmem:[#allocation55_spill] sm:$0xff] %v6951_v41  ;;  %v6973_v12 = vpop.eup %4929  ;;  %4941 = vpow2.f32 %v2615_v13  ;;  %v2635_v31 = vmul.f32 1.442695, %v2292_v3  ;;  %v9663_v3 = vsub.f32 %v9556_v63, %v6856_v1  ;;  %v9675_v63 = vsub.f32 %v9569_v7, %v6864_v39  ;;  %v9681_v7 = vld [vmem:[#allocation36_spill] sm:$0xff] }
 0x3a0   : > { %9652 = vst [vmem:[#allocation85_spill] sm:$0xff] %v6957_v47  ;;  %4943 = vpow2.f32 %v2617_v53 }
 0x3a1   : > { %9653 = vst [vmem:[#allocation22_spill] sm:$0xff] %v6963_v54  ;;  %4945 = vpow2.f32 %v2619_v9  ;;  %v2651_v37 = vmul.f32 1.442695, %v9675_v63 }
 0x3a2   : > { %9654 = vst [vmem:[#allocation102_spill] sm:$0xff] %v6965_v26  ;;  %v6979_v26 = vpop.eup %4931  ;;  %4947 = vpow2.f32 %v2621_v48  ;;  %v9662_v48 = vld [vmem:[#allocation19_spill] sm:$0xff] }
 0x3a3   : > { %9655 = vst [vmem:[#allocation81_spill] sm:$0xff] %v6967_v4  ;;  %v6985_v15 = vpop.eup %4933  ;;  %4949 = vpow2.f32 %v2623_v2  ;;  %v7003_v9 = vpop.f32.mrf.mxu2 }
 0x3a4   : > { %9656 = vst [vmem:[#allocation82_spill] sm:$0xff] %v6973_v12  ;;  %v6991_v13 = vpop.eup %4935  ;;  %4951 = vpow2.f32 %v2625_v58  ;;  %v9664_v58 = vsub.f32 %v9558_v6, %v6864_v39  ;;  %v9667_v6 = vld [vmem:[#allocation40_spill] sm:$0xff] }
 0x3a5   : > { %9657 = vst [vmem:[#allocation11_spill] sm:$0xff] %v6991_v13  ;;  %v6997_v53 = vpop.eup %4937  ;;  %v7005_v54 = vpop.f32.mrf.mxu3  ;;  %4953 = vpow2.f32 %v2627_v40  ;;  %v2637_v40 = vmul.f32 1.442695, %v9663_v3  ;;  %v9665_v3 = vsub.f32 %v9562_v28, %v6856_v1  ;;  %v9670_v28 = vld [vmem:[#allocation93_spill] sm:$0xff] }
 0x3a6   : > { %9658 = vst [vmem:[#allocation14_spill] sm:$0xff] %v7003_v9  ;;  %v7007_v18 = vpop.eup %4939  ;;  %v7021_v9 = vpop.f32.mrf.mxu1  ;;  %4740 = vmatmul.msk.bf16.gmra.mxu1 %vm810_vm3, %v9662_v48  ;;  %4955 = vpow2.f32 %v2629_v62  ;;  %v9668_v62 = vsub.f32 %v9563_v52, %v6864_v39  ;;  %v9674_v52 = vld [vmem:[#allocation15_spill] sm:$0xff] }
 0x3a7   : > { %9659 = vst [vmem:[#allocation38_spill] sm:$0xff] %v7005_v54  ;;  %v7013_v51 = vpop.eup %4941  ;;  %v7019_v54 = vpop.f32.mrf.mxu0  ;;  %4724 = vmatmul.msk.bf16.gmra.mxu0 %vm810_vm3, %v9662_v48  ;;  %4957 = vpow2.f32 %v2631_v42  ;;  %v2645_v45 = vmul.f32 1.442695, %v9665_v3  ;;  %v9671_v42 = vsub.f32 %v9568_v30, %v6856_v1  ;;  %v9678_v30 = vld [vmem:[#allocation31_spill] sm:$0xff] }
 0x3a8   : > { %9660 = vst [vmem:[#allocation39_spill] sm:$0xff] %v7019_v54  ;;  %v7027_v14 = vpop.eup %4943  ;;  %4959 = vpow2.f32 %v2633_v43  ;;  %v2647_v48 = vmul.f32 1.442695, %v9668_v62  ;;  %v9669_v43 = vld [vmem:[#allocation32_spill] sm:$0xff]  ;;  %v9680_v62 = vsub.f32 %v9559_v61, %v6856_v1 }
 0x3a9   : > { %9661 = vst [vmem:[#allocation42_spill] sm:$0xff] %v7021_v9  ;;  %v7036_v2 = vpop.eup %4945  ;;  %v2639_v9 = vmul.f32 1.442695, %v9664_v58  ;;  %4961 = vpow2.f32 %v2635_v31  ;;  %v2649_v44 = vmul.f32 1.442695, %v9671_v42  ;;  %v9673_v31 = vld [vmem:[#allocation68_spill] sm:$0xff] }
 0x3aa   : > { %v7045_v54 = vpop.eup %4947  ;;  %4963 = vpow2.f32 %v2637_v40  ;;  %v2643_v42 = vmul.f32 1.442695, %v9683_v50  ;;  %v9689_v50 = vld [vmem:[#allocation10_spill] sm:$0xff] }
 0x3ab   : > { %v7054_v5 = vpop.eup %4949  ;;  %4965 = vpow2.f32 %v2639_v9  ;;  %v7081_v21 = vpop.f32.mrf.mxu2  ;;  %v2641_v9 = vmul.f32 1.442695, %v9680_v62  ;;  %v3055_v62 = vadd.f32 %v6935_v34, %v6923_v0 }
 0x3ac   : > { %9666 = vst [vmem:[#allocation43_spill] sm:$0xff] %v7054_v5  ;;  %v7063_v17 = vpop.eup %4951  ;;  %4967 = vpow2.f32 %v2645_v45  ;;  %v9687_v5 = vld [vmem:[#allocation79_spill] sm:$0xff] }
 0x3ad   : > { %v7072_v35 = vpop.eup %4953  ;;  %9676 = vst [vmem:[#allocation17_spill] sm:$0xff] %v7081_v21  ;;  %v7083_v40 = vpop.f32.mrf.mxu3  ;;  %4969 = vpow2.f32 %v2647_v48  ;;  %v9688_v21 = vsub.f32 %v9570_v36, %v6856_v1  ;;  %v9691_v36 = vsub.f32 %v9573_v32, %v6856_v1 }
 0x3ae   : > { %9672 = vst [vmem:[#allocation34_spill] sm:$0xff] %v7072_v35  ;;  %v7085_v3 = vpop.eup %4955  ;;  %v7105_v58 = vpop.f32.mrf.mxu1  ;;  %4971 = vpow2.f32 %v2649_v44  ;;  %v9692_v44 = vsub.f32 %v9574_v56, %v6864_v39  ;;  %v9696_v56 = vsub.f32 %v9581_v20, %v6864_v39 }
 0x3af   : > { %9677 = vst [vmem:[#allocation18_spill] sm:$0xff] %v7083_v40  ;;  %v7094_v10 = vpop.eup %4957  ;;  %v7103_v35 = vpop.f32.mrf.mxu0  ;;  %v2653_v40 = vmul.f32 1.442695, %v9688_v21  ;;  %4973 = vpow2.f32 %v2651_v37  ;;  %v2657_v21 = vmul.f32 1.442695, %v9691_v36  ;;  %v9693_v37 = vsub.f32 %v9576_v19, %v6856_v1 }
 0x3b0   : > { %9684 = vst [vmem:[#allocation44_spill] sm:$0xff] %v7103_v35  ;;  %v7107_v61 = vpop.eup %4959  ;;  %4975 = vpow2.f32 %v2641_v9  ;;  %v2659_v63 = vmul.f32 1.442695, %v9692_v44  ;;  %v9695_v9 = vsub.f32 %v9580_v23, %v6856_v1  ;;  %v3056_v36 = vadd.f32 %v6951_v41, %v3055_v62 }
 0x3b1   : > { %9685 = vst [vmem:[#allocation45_spill] sm:$0xff] %v7105_v58  ;;  %v7116_v57 = vpop.eup %4961  ;;  %v9690_v58 = vsub.f32 %v9571_v22, %v6864_v39  ;;  %v2661_v48 = vmul.f32 1.442695, %v9693_v37  ;;  %4977 = vpow2.f32 %v2643_v42  ;;  %v2667_v19 = vmul.f32 1.442695, %v9696_v56 }
 0x3b2   : > { %v7125_v45 = vpop.eup %4963  ;;  %v2665_v32 = vmul.f32 1.442695, %v9695_v9  ;;  %4979 = vpow2.f32 %v2653_v40  ;;  %v9697_v42 = vsub.f32 %v9582_v25, %v6856_v1  ;;  %v9699_v23 = vsub.f32 %v9584_v29, %v6856_v1 }
 0x3b3   : > { %v2655_v35 = vmul.f32 1.442695, %v9690_v58  ;;  %v7136_v22 = vpop.eup %4965  ;;  %v9694_v58 = vsub.f32 %v9577_v59, %v6864_v39  ;;  %v9698_v59 = vsub.f32 %v9583_v38, %v6864_v39  ;;  %v9700_v40 = vsub.f32 %v9585_v46, %v6864_v39  ;;  %v7180_v46 = vpop.f32.mrf.mxu2 }
 0x3b4   : > { %v7145_v0 = vpop.eup %4967  ;;  %v2669_v44 = vmul.f32 1.442695, %v9697_v42  ;;  %v2673_v62 = vmul.f32 1.442695, %v9699_v23  ;;  %v3057_v9 = vadd.f32 %v6967_v4, %v3056_v36  ;;  %v9701_v25 = vsub.f32 %v9586_v55, %v6856_v1  ;;  %9704 = vst [vmem:[#allocation49_spill] sm:$0xff] %v7180_v46 }
 0x3b5   : > { %v2663_v34 = vmul.f32 1.442695, %v9694_v58  ;;  %v2671_v37 = vmul.f32 1.442695, %v9698_v59  ;;  %v7156_v58 = vpop.eup %4969  ;;  %4981 = vpow2.f32 %v2655_v35  ;;  %v2675_v20 = vmul.f32 1.442695, %v9700_v40  ;;  %v7182_v36 = vpop.f32.mrf.mxu3 }
 0x3b6   : > { %v7165_v56 = vpop.eup %4971  ;;  %4983 = vpow2.f32 %v2657_v21  ;;  %v2677_v38 = vmul.f32 1.442695, %v9701_v25  ;;  %v9702_v35 = vsub.f32 %v9587_v8, %v6864_v39  ;;  %v9703_v29 = vsub.f32 %v6664_v16, %v6856_v1  ;;  %9705 = vst [vmem:[#allocation50_spill] sm:$0xff] %v7182_v36 }
 0x3b7   : > { %v7184_v23 = vpop.eup %4973  ;;  %4985 = vpow2.f32 %v2659_v63  ;;  %v9706_v55 = vsub.f32 %v6666_v11, %v6864_v39  ;;  %v9707_v8 = vsub.f32 %v6702_v49, %v6856_v1  ;;  %v3058_v16 = vadd.f32 %v6979_v26, %v3057_v9  ;;  %v7197_v25 = vpop.f32.mrf.mxu0 }
 0x3b8   : > { %v7173_v42 = vmul.f32 1.442695, %v9702_v35  ;;  %v7178_v59 = vmul.f32 1.442695, %v9703_v29  ;;  %9708 = vst [vmem:[#allocation53_spill] sm:$0xff] %v7197_v25  ;;  %v7199_v35 = vpop.f32.mrf.mxu1  ;;  %v9710_v29 = vld [vmem:[#allocation23_spill] sm:$0xff]  ;;  %v7205_v11 = vpop.eup %4975  ;;  %4987 = vpow2.f32 %v2661_v48  ;;  %v9711_v49 = vsub.f32 %v6704_v24, %v6864_v39 }
 0x3b9   : > { %v7189_v21 = vmul.f32 1.442695, %v9706_v55  ;;  %v7194_v40 = vmul.f32 1.442695, %v9707_v8  ;;  %9709 = vst [vmem:[#allocation54_spill] sm:$0xff] %v7199_v35  ;;  %4725 = vmatmul.msk.bf16.gmra.mxu0 %vm810_vm3, %v9710_v29  ;;  %4741 = vmatmul.msk.bf16.gmra.mxu1 %vm810_vm3, %v9710_v29  ;;  %v3092_v9 = vadd.f32 %v6941_v27, %v6929_v33  ;;  %v3391_v55 = vpack.c.bf16 %v7156_v58, %v7145_v0  ;;  %v7216_v8 = vpop.eup %4977 }
 0x3ba   : > { %v7210_v63 = vmul.f32 1.442695, %v9711_v49  ;;  %4989 = vpow2.f32 %v2663_v34  ;;  %v9712_v29 = vsub.f32 %v9667_v6, %v6856_v1  ;;  %v3059_v48 = vadd.f32 %v6991_v13, %v3058_v16  ;;  %v7226_v49 = vpop.eup %4979 }
 0x3bb   : > { %v3392_v24 = vpack.c.bf16 %v7184_v23, %v7165_v56  ;;  %4991 = vpow2.f32 %v2665_v32  ;;  %v3093_v25 = vadd.f32 %v6957_v47, %v3092_v9  ;;  %v3759_v36 = vunpack.c.l.b16 %v3391_v55  ;;  %v7229_v27 = vpop.eup %4981 }
 0x3bc   : > { %v7221_v35 = vmul.f32 1.442695, %v9712_v29  ;;  %v3760_v46 = vunpack.c.h.b16 %v3391_v55  ;;  %4993 = vpow2.f32 %v2667_v19  ;;  %v3060_v34 = vadd.f32 %v7007_v18, %v3059_v48  ;;  %v7232_v33 = vpop.eup %4983 }
 0x3bd   : > { %v3761_v6 = vunpack.c.l.b16 %v3392_v24  ;;  %v3762_v29 = vunpack.c.h.b16 %v3392_v24  ;;  %4995 = vpow2.f32 %v2669_v44  ;;  %v3094_v16 = vadd.f32 %v6973_v12, %v3093_v25  ;;  %v7239_v9 = vpop.eup %4985 }
 0x3be   : > { %v3389_v4 = vpack.c.bf16 %v7136_v22, %v7125_v45  ;;  %v3390_v32 = vpack.c.bf16 %v7216_v8, %v7205_v11  ;;  %9713 = vst [vmem:[#allocation57_spill] sm:$0xff] %v7239_v9  ;;  %4997 = vpow2.f32 %v2671_v37  ;;  %v3061_v19 = vadd.f32 %v7027_v14, %v3060_v34  ;;  %v7242_v47 = vpop.eup %4987 }
 0x3bf   : > { %v3809_v55 = vpack.c.b16 %v3761_v6, %v3759_v36  ;;  %v3810_v48 = vpack.c.b16 %v3762_v29, %v3760_v46  ;;  %4999 = vpow2.f32 %v2673_v62  ;;  %v9714_v44 = vsub.f32 %v9669_v43, %v6864_v39  ;;  %v7254_v46 = vpop.f32.mrf.mxu0 }
 0x3c0   : > { %v9715_v24 = vsub.f32 %v9670_v28, %v6856_v1  ;;  %v3095_v41 = vadd.f32 %v6985_v15, %v3094_v16  ;;  %v7251_v13 = vpop.eup %4989  ;;  %5001 = vpow2.f32 %v2675_v20  ;;  %v3062_v37 = vadd.f32 %v7045_v54, %v3061_v19  ;;  %9716 = vst [vmem:[#allocation59_spill] sm:$0xff] %v7254_v46  ;;  %v7256_v62 = vpop.f32.mrf.mxu1  ;;  %v9727_v46 = vld [vmem:[#allocation29_spill] sm:$0xff] }
 0x3c1   : > { %v2695_v25 = vmul.f32 1.442695, %v9714_v44  ;;  %3859 = vmatpush.bf16.msra.mxu2 %v3809_v55  ;;  %3885 = vmatpush.bf16.msrb.mxu0 %v3810_v48  ;;  %9717 = vst [vmem:[#allocation60_spill] sm:$0xff] %v7256_v62  ;;  %v3755_v36 = vunpack.c.l.b16 %v3389_v4  ;;  %v3757_v43 = vunpack.c.l.b16 %v3390_v32  ;;  %v7258_v34 = vpop.eup %4991  ;;  %5003 = vpow2.f32 %v2677_v38  ;;  %v7267_v19 = vpop.f32.mrf.mxu2 }
 0x3c2   : > { %v2697_v12 = vmul.f32 1.442695, %v9715_v24  ;;  %v9718_v28 = vsub.f32 %v9673_v31, %v6864_v39  ;;  %v9719_v20 = vsub.f32 %v9674_v52, %v6856_v1  ;;  %v3096_v16 = vadd.f32 %v6997_v53, %v3095_v41  ;;  %9720 = vst [vmem:[#allocation61_spill] sm:$0xff] %v7267_v19  ;;  %v7269_v55 = vpop.f32.mrf.mxu3  ;;  %v7271_v48 = vpop.eup %4993 }
 0x3c3   : > { %9721 = vst [vmem:[#allocation64_spill] sm:$0xff] %v7269_v55  ;;  %5005 = vpow2.f32 %v7173_v42  ;;  %v3063_v38 = vadd.f32 %v7063_v17, %v3062_v37  ;;  %v3807_v44 = vpack.c.b16 %v3757_v43, %v3755_v36  ;;  %v3756_v24 = vunpack.c.h.b16 %v3389_v4  ;;  %v7275_v31 = vpop.eup %4995 }
 0x3c4   : > { %v2699_v6 = vmul.f32 1.442695, %v9718_v28  ;;  %v2701_v29 = vmul.f32 1.442695, %v9719_v20  ;;  %5007 = vpow2.f32 %v7178_v59  ;;  %v3097_v52 = vadd.f32 %v7013_v51, %v3096_v16  ;;  %v7281_v20 = vpop.eup %4997 }
 0x3c5   : > { %v3758_v28 = vunpack.c.h.b16 %v3390_v32  ;;  %v3387_v41 = vpack.c.bf16 %v7094_v10, %v7085_v3  ;;  %5009 = vpow2.f32 %v7189_v21  ;;  %v9722_v42 = vsub.f32 %v9678_v30, %v6864_v39  ;;  %3860 = vmatpush.bf16.msra.mxu2 %v3807_v44  ;;  %v7290_v36 = vpop.eup %4999 }
 0x3c6   : > { %v3064_v4 = vadd.f32 %v7085_v3, %v3063_v38  ;;  %v3388_v59 = vpack.c.bf16 %v7116_v57, %v7107_v61  ;;  %5011 = vpow2.f32 %v7194_v40  ;;  %v3098_v32 = vadd.f32 %v7036_v2, %v3097_v52  ;;  %v7294_v62 = vpop.eup %5001 }
 0x3c7   : > { %v2703_v37 = vmul.f32 1.442695, %v9722_v42  ;;  %v3808_v43 = vpack.c.b16 %v3758_v28, %v3756_v24  ;;  %v3751_v16 = vunpack.c.l.b16 %v3387_v41  ;;  %5013 = vpow2.f32 %v7210_v63  ;;  %v7298_v38 = vpop.eup %5003  ;;  %v9724_v42 = vld [vmem:[#allocation43_spill] sm:$0xff] }
 0x3c8   : > { %v3065_v30 = vadd.f32 %v7107_v61, %v3064_v4  ;;  %v3753_v21 = vunpack.c.l.b16 %v3388_v59  ;;  %v3752_v3 = vunpack.c.h.b16 %v3387_v41  ;;  %5015 = vpow2.f32 %v7221_v35  ;;  %v7310_v4 = vpop.f32.mrf.mxu0  ;;  %v7312_v35 = vpop.f32.mrf.mxu1 }
 0x3c9   : > { %v9723_v44 = vsub.f32 %v9679_v60, %v6856_v1  ;;  %v3099_v52 = vadd.f32 %v9724_v42, %v3098_v32  ;;  %3886 = vmatpush.bf16.msrb.mxu0 %v3808_v43  ;;  %v3385_v24 = vpack.c.bf16 %v9724_v42, %v7045_v54  ;;  %v7307_v28 = vpop.eup %5005  ;;  %5017 = vpow2.f32 %v2695_v25  ;;  %9725 = vst [vmem:[#allocation67_spill] sm:$0xff] %v7310_v4  ;;  %v9731_v43 = vld [vmem:[#allocation34_spill] sm:$0xff] }
 0x3ca   : > { %v3066_v61 = vadd.f32 %v7125_v45, %v3065_v30  ;;  %v3805_v63 = vpack.c.b16 %v3753_v21, %v3751_v16  ;;  %v3754_v41 = vunpack.c.h.b16 %v3388_v59  ;;  %9726 = vst [vmem:[#allocation19_spill] sm:$0xff] %v7312_v35  ;;  %4726 = vmatmul.msk.bf16.gmra.mxu0 %vm810_vm3, %v9727_v46  ;;  %4742 = vmatmul.msk.bf16.gmra.mxu1 %vm810_vm3, %v9727_v46  ;;  %v7318_v60 = vpop.eup %5007  ;;  %5019 = vpow2.f32 %v2697_v12  ;;  %v9729_v45 = vld [vmem:[#allocation8_spill] sm:$0xff] }
 0x3cb   : > { %v2705_v40 = vmul.f32 1.442695, %v9723_v44  ;;  %v9728_v54 = vsub.f32 %v9681_v7, %v6864_v39  ;;  %v9730_v59 = vsub.f32 %v9729_v45, %v6856_v1  ;;  %v3100_v16 = vadd.f32 %v9731_v43, %v3099_v52  ;;  %v7327_v30 = vpop.eup %5009  ;;  %v9732_v7 = vld [vmem:[#allocation75_spill] sm:$0xff]  ;;  %v7338_v52 = vpop.f32.mrf.mxu2  ;;  %v9743_v35 = vld [vmem:[#allocation28_spill] sm:$0xff] }
 0x3cc   : > { %5021 = vpow2.f32 %v2699_v6  ;;  %v3067_v21 = vadd.f32 %v7205_v11, %v3066_v61  ;;  %3861 = vmatpush.bf16.msra.mxu2 %v3805_v63  ;;  %v3806_v46 = vpack.c.b16 %v3754_v41, %v3752_v3  ;;  %v3386_v12 = vpack.c.bf16 %v9731_v43, %v7063_v17  ;;  %v7332_v44 = vpop.eup %5011  ;;  %9734 = vst [vmem:[#allocation40_spill] sm:$0xff] %v7338_v52 }
 0x3cd   : > { %v2707_v25 = vmul.f32 1.442695, %v9728_v54  ;;  %v2709_v32 = vmul.f32 1.442695, %v9730_v59  ;;  %5023 = vpow2.f32 %v2701_v29  ;;  %v9733_v42 = vsub.f32 %v9732_v7, %v6864_v39  ;;  %v7340_v59 = vpop.f32.mrf.mxu3  ;;  %v7342_v11 = vpop.eup %5013 }
 0x3ce   : > { %v3101_v45 = vadd.f32 %v7094_v10, %v3100_v16  ;;  %9735 = vst [vmem:[#allocation32_spill] sm:$0xff] %v7340_v59  ;;  %v3747_v6 = vunpack.c.l.b16 %v3385_v24  ;;  %5025 = vpow2.f32 %v2703_v37  ;;  %v3068_v3 = vadd.f32 %v7145_v0, %v3067_v21  ;;  %3887 = vmatpush.bf16.msrb.mxu0 %v3806_v46  ;;  %v7345_v29 = vpop.eup %5015  ;;  %v9739_v46 = vld [vmem:[#allocation24_spill] sm:$0xff] }
 0x3cf   : > { %v2711_v54 = vmul.f32 1.442695, %v9733_v42  ;;  %v3749_v17 = vunpack.c.l.b16 %v3386_v12  ;;  %v3748_v61 = vunpack.c.h.b16 %v3385_v24  ;;  %5027 = vpow2.f32 %v2705_v40  ;;  %v7354_v7 = vpop.eup %5017  ;;  %v9738_v40 = vld [vmem:[#allocation27_spill] sm:$0xff]  ;;  %v9740_v42 = vld [vmem:[#allocation77_spill] sm:$0xff] }
 0x3d0   : > { %v9736_v63 = vsub.f32 %v9687_v5, %v6856_v1  ;;  %v9737_v41 = vsub.f32 %v9689_v50, %v6864_v39  ;;  %v3102_v16 = vadd.f32 %v7116_v57, %v3101_v45  ;;  %5029 = vpow2.f32 %v2707_v25  ;;  %v7357_v21 = vpop.eup %5019 }
 0x3d1   : > { %v3069_v0 = vadd.f32 %v7165_v56, %v3068_v3  ;;  %v3803_v37 = vpack.c.b16 %v3749_v17, %v3747_v6  ;;  %v3750_v24 = vunpack.c.h.b16 %v3386_v12  ;;  %v9741_v5 = vmax.f32 %v9739_v46, %v9740_v42  ;;  %v9745_v56 = vld [vmem:[#allocation58_spill] sm:$0xff]  ;;  %v9749_v46 = vld [vmem:[#allocation92_spill] sm:$0xff] }
 0x3d2   : > { %v2713_v10 = vmul.f32 1.442695, %v9736_v63  ;;  %v2715_v43 = vmul.f32 1.442695, %v9737_v41  ;;  %v9744_v50 = vsub.f32 %v9743_v35, %v6856_v1  ;;  %5031 = vpow2.f32 %v2709_v32  ;;  %v7369_v25 = vpop.eup %5021 }
 0x3d3   : > { %v7363_v63 = vmax.f32 %v9741_v5, %v9738_v40  ;;  %v3103_v57 = vadd.f32 %v7136_v22, %v3102_v16  ;;  %v9746_v12 = vsub.f32 %v9745_v56, %v6864_v39  ;;  %5033 = vpow2.f32 %v2711_v54  ;;  %3862 = vmatpush.bf16.msra.mxu2 %v3803_v37  ;;  %v7375_v17 = vpop.eup %5023  ;;  %v9748_v54 = vld [vmem:[#allocation89_spill] sm:$0xff] }
 0x3d4   : > { %v2681_v41 = vmul.f32 1.442695, %v9744_v50  ;;  %v3070_v6 = vadd.f32 %v7226_v49, %v3069_v0  ;;  %v3804_v3 = vpack.c.b16 %v3750_v24, %v3748_v61  ;;  %5035 = vpow2.f32 %v2713_v10  ;;  %v7378_v35 = vpop.eup %5025  ;;  %v9752_v24 = vld [vmem:[#allocation65_spill] sm:$0xff] }
 0x3d5   : > { %9742 = vst [vmem:[#allocation93_spill] sm:$0xff] %v7363_v63  ;;  %v2683_v45 = vmul.f32 1.442695, %v9746_v12  ;;  %v3104_v1 = vadd.f32 %v7216_v8, %v3103_v57  ;;  %5037 = vpow2.f32 %v2715_v43  ;;  %v7382_v39 = vpop.eup %5027  ;;  %v9750_v0 = vsub.f32 %v9748_v54, %v9749_v46  ;;  %v9753_v43 = vld [vmem:[#allocation26_spill] sm:$0xff]  ;;  %v9754_v5 = vld [vmem:[#allocation41_spill] sm:$0xff]  ;;  %v7416_v46 = vpop.f32.mrf.mxu2 }
 0x3d6   : > { %v3071_v16 = vadd.f32 %v7232_v33, %v3070_v6  ;;  %3888 = vmatpush.bf16.msrb.mxu0 %v3804_v3  ;;  %5039 = vpow2.f32 %v2681_v41  ;;  %v3405_v8 = vpack.c.bf16 %v7378_v35, %v7375_v17  ;;  %v7392_v10 = vpop.eup %5029  ;;  %v9755_v50 = vmax.f32 %v9753_v43, %v9754_v5  ;;  %9757 = vst [vmem:[#allocation15_spill] sm:$0xff] %v7416_v46 }
 0x3d7   : > { %v7387_v37 = vmul.f32 1.442695, %v9750_v0  ;;  %v3105_v61 = vadd.f32 %v7156_v58, %v3104_v1  ;;  %9751 = vst [vmem:[#allocation68_spill] sm:$0xff] %v7392_v10  ;;  %5041 = vpow2.f32 %v2683_v45  ;;  %v3406_v3 = vpack.c.bf16 %v7392_v10, %v7382_v39  ;;  %v7418_v45 = vpop.f32.mrf.mxu3 }
 0x3d8   : > { %v7398_v57 = vmax.f32 %v9755_v50, %v9752_v24  ;;  %v3072_v6 = vadd.f32 %v7242_v47, %v3071_v16  ;;  %v7403_v41 = vpop.eup %5031  ;;  %v7410_v1 = vpack.c.bf16 %v7327_v30, %v7318_v60  ;;  %v7414_v54 = vpack.c.bf16 %v7342_v11, %v7332_v44  ;;  %9758 = vst [vmem:[#allocation31_spill] sm:$0xff] %v7418_v45 }
 0x3d9   : > { %v3106_v58 = vadd.f32 %v7184_v23, %v3105_v61  ;;  %v7420_v16 = vpop.eup %5033  ;;  %v3787_v23 = vunpack.c.l.b16 %v3405_v8  ;;  %v3788_v61 = vunpack.c.h.b16 %v3405_v8  ;;  %v7425_v43 = vpack.c.bf16 %v7354_v7, %v7345_v29 }
 0x3da   : > { %9759 = vst [vmem:[#allocation96_spill] sm:$0xff] %v7420_v16  ;;  %v3073_v0 = vadd.f32 %v7258_v34, %v3072_v6  ;;  %v7427_v50 = vpop.eup %5035  ;;  %v3407_v12 = vpack.c.bf16 %v7420_v16, %v7403_v41  ;;  %v3789_v4 = vunpack.c.l.b16 %v3406_v3  ;;  %v3790_v24 = vunpack.c.h.b16 %v3406_v3 }
 0x3db   : > { %v3107_v22 = vadd.f32 %v7229_v27, %v3106_v58  ;;  %v7432_v40 = vpop.eup %5037  ;;  %v3404_v8 = vpack.c.bf16 %v7369_v25, %v7357_v21  ;;  %v3383_v6 = vpack.c.bf16 %v7013_v51, %v7007_v18  ;;  %v3384_v42 = vpack.c.bf16 %v7036_v2, %v7027_v14  ;;  %v7446_v2 = vpop.f32.mrf.mxu0 }
 0x3dc   : > { %9760 = vst [vmem:[#allocation36_spill] sm:$0xff] %v7432_v40  ;;  %v3074_v5 = vadd.f32 %v7275_v31, %v3073_v0  ;;  %v5040_v45 = vpop.eup %5039  ;;  %v3408_v46 = vpack.c.bf16 %v7432_v40, %v7427_v50  ;;  %v3791_v3 = vunpack.c.l.b16 %v3407_v12  ;;  %v3792_v59 = vunpack.c.h.b16 %v3407_v12  ;;  %v7448_v14 = vpop.f32.mrf.mxu1 }
 0x3dd   : > { %v3108_v58 = vadd.f32 %v7239_v9, %v3107_v22  ;;  %v5042_v52 = vpop.eup %5041  ;;  %v3823_v55 = vpack.c.b16 %v3789_v4, %v3787_v23  ;;  %v3824_v19 = vpack.c.b16 %v3790_v24, %v3788_v61  ;;  %v3743_v32 = vunpack.c.l.b16 %v3383_v6  ;;  %9761 = vst [vmem:[#allocation79_spill] sm:$0xff] %v7446_v2 }
 0x3de   : > { %v3075_v0 = vadd.f32 %v7290_v36, %v3074_v5  ;;  %v3793_v18 = vunpack.c.l.b16 %v3408_v46  ;;  %v3794_v51 = vunpack.c.h.b16 %v3408_v46  ;;  %v3745_v56 = vunpack.c.l.b16 %v3384_v42  ;;  %9762 = vst [vmem:[#allocation10_spill] sm:$0xff] %v7448_v14 }
 0x3df   : > { %v3109_v16 = vadd.f32 %v7251_v13, %v3108_v58  ;;  %v3779_v40 = vunpack.c.l.b16 %v7410_v1  ;;  %v3781_v12 = vunpack.c.l.b16 %v7414_v54  ;;  %v3744_v63 = vunpack.c.h.b16 %v3383_v6  ;;  %v7458_v6 = vpop.f32.mrf.mxu2 }
 0x3e0   : > { %v3076_v22 = vadd.f32 %v7298_v38, %v3075_v0  ;;  %v3825_v24 = vpack.c.b16 %v3793_v18, %v3791_v3  ;;  %v3826_v5 = vpack.c.b16 %v3794_v51, %v3792_v59  ;;  %v3780_v23 = vunpack.c.h.b16 %v7410_v1  ;;  %v9764_v51 = vld [vmem:[#allocation99_spill] sm:$0xff] }
 0x3e1   : > { %v3110_v4 = vadd.f32 %v7271_v48, %v3109_v16  ;;  %v3783_v46 = vunpack.c.l.b16 %v7425_v43  ;;  %v3801_v58 = vpack.c.b16 %v3745_v56, %v3743_v32  ;;  %v3746_v2 = vunpack.c.h.b16 %v3384_v42  ;;  %v7460_v16 = vpop.f32.mrf.mxu3 }
 0x3e2   : > { %v3077_v61 = vadd.f32 %v5040_v45, %v3076_v22  ;;  %3872 = vmatpush.bf16.msra.mxu3 %v3825_v24  ;;  %3898 = vmatpush.bf16.msrb.mxu1 %v3826_v5  ;;  %v3785_v0 = vunpack.c.l.b16 %v3404_v8  ;;  %v3784_v10 = vunpack.c.h.b16 %v7425_v43  ;;  %v3786_v9 = vunpack.c.h.b16 %v3404_v8  ;;  %v9763_v8 = vld [vmem:[#allocation11_spill] sm:$0xff] }
 0x3e3   : > { %v3111_v14 = vadd.f32 %v7281_v20, %v3110_v4  ;;  %v3782_v1 = vunpack.c.h.b16 %v7414_v54  ;;  %3863 = vmatpush.bf16.msra.mxu2 %v3801_v58  ;;  %v3802_v3 = vpack.c.b16 %v3746_v2, %v3744_v63  ;;  %v3381_v42 = vpack.c.bf16 %v6985_v15, %v6979_v26 }
 0x3e4   : > { %v3078_v59 = vadd.f32 %v7318_v60, %v3077_v61  ;;  %v3399_v56 = vpack.c.bf16 %v7307_v28, %v7298_v38  ;;  %v3400_v43 = vpack.c.bf16 %v5042_v52, %v5040_v45  ;;  %v3382_v18 = vpack.c.bf16 %v6997_v53, %v9763_v8 }
 0x3e5   : > { %v3112_v32 = vadd.f32 %v7294_v62, %v3111_v14  ;;  %v2045_v22 = vmax.f32 %v7398_v57, %v9764_v51  ;;  %3889 = vmatpush.bf16.msrb.mxu0 %v3802_v3  ;;  %v3739_v54 = vunpack.c.l.b16 %v3381_v42  ;;  %v3740_v63 = vunpack.c.h.b16 %v3381_v42  ;;  %v9765_v3 = vld [vmem:[#allocation33_spill] sm:$0xff] }
 0x3e6   : > { %v3079_v60 = vadd.f32 %v7332_v44, %v3078_v59  ;;  %3873 = vmatpush.bf16.msra.mxu3 %v3823_v55  ;;  %3899 = vmatpush.bf16.msrb.mxu1 %v3824_v19  ;;  %v3819_v26 = vpack.c.b16 %v3781_v12, %v3779_v40  ;;  %v3741_v15 = vunpack.c.l.b16 %v3382_v18  ;;  %v3742_v14 = vunpack.c.h.b16 %v3382_v18  ;;  %v7476_v44 = vpop.f32.mrf.mxu0  ;;  %v7478_v59 = vpop.f32.mrf.mxu1  ;;  %v9766_v40 = vld [vmem:[#allocation55_spill] sm:$0xff] }
 0x3e7   : > { %v3113_v2 = vadd.f32 %v7307_v28, %v3112_v32  ;;  %v3821_v45 = vpack.c.b16 %v3785_v0, %v3783_v46  ;;  %v3822_v4 = vpack.c.b16 %v3786_v9, %v3784_v10  ;;  %v3820_v53 = vpack.c.b16 %v3782_v1, %v3780_v23  ;;  %4727 = vmatmul.msk.bf16.gmra.mxu0 %vm810_vm3, %v9765_v3  ;;  %v9767_v10 = vld [vmem:[#allocation85_spill] sm:$0xff]  ;;  %v9769_v46 = vld [vmem:[#allocation82_spill] sm:$0xff]  ;;  %v7494_v0 = vpop.f32.mrf.mxu2 }
 0x3e8   : > { %v3080_v38 = vadd.f32 %v7345_v29, %v3079_v60  ;;  %v3775_v5 = vunpack.c.l.b16 %v3399_v56  ;;  %v3777_v61 = vunpack.c.l.b16 %v3400_v43  ;;  %v3776_v58 = vunpack.c.h.b16 %v3399_v56  ;;  %4743 = vmatmul.msk.bf16.gmra.mxu1 %vm810_vm3, %v9765_v3  ;;  %v9768_v23 = vld [vmem:[#allocation81_spill] sm:$0xff] }
 0x3e9   : > { %v3114_v24 = vadd.f32 %v5042_v52, %v3113_v2  ;;  %v3799_v55 = vpack.c.b16 %v3741_v15, %v3739_v54  ;;  %v7485_v28 = vpack.c.bf16 %v7281_v20, %v7275_v31  ;;  %v3800_v9 = vpack.c.b16 %v3742_v14, %v3740_v63  ;;  %v7496_v1 = vpop.f32.mrf.mxu3  ;;  %v9771_v15 = vld [vmem:[#allocation100_spill] sm:$0xff] }
 0x3ea   : > { %v3081_v19 = vadd.f32 %v7357_v21, %v3080_v38  ;;  %3874 = vmatpush.bf16.msra.mxu3 %v3821_v45  ;;  %3900 = vmatpush.bf16.msrb.mxu1 %v3822_v4  ;;  %v3778_v29 = vunpack.c.h.b16 %v3400_v43  ;;  %v3379_v12 = vpack.c.bf16 %v9767_v10, %v9766_v40  ;;  %v3380_v21 = vpack.c.bf16 %v9769_v46, %v9768_v23  ;;  %v9779_v10 = vld [vmem:[#allocation68_spill] sm:$0xff] }
 0x3eb   : > { %v3115_v52 = vadd.f32 %v7327_v30, %v3114_v24  ;;  %3864 = vmatpush.bf16.msra.mxu2 %v3799_v55  ;;  %v3398_v20 = vpack.c.bf16 %v7294_v62, %v7290_v36  ;;  %3890 = vmatpush.bf16.msrb.mxu0 %v3800_v9  ;;  %v3395_v30 = vpack.c.bf16 %v7251_v13, %v7242_v47  ;;  %5043 = vpow2.f32 %v7387_v37  ;;  %v9776_v24 = vld [vmem:[#allocation52_spill] sm:$0xff] }
 0x3ec   : > { %v3082_v31 = vadd.f32 %v7375_v17, %v3081_v19  ;;  %v3735_v32 = vunpack.c.l.b16 %v3379_v12  ;;  %v3737_v56 = vunpack.c.l.b16 %v3380_v21  ;;  %v3736_v43 = vunpack.c.h.b16 %v3379_v12 }
 0x3ed   : > { %v3116_v42 = vadd.f32 %v7342_v11, %v3115_v52  ;;  %v3817_v18 = vpack.c.b16 %v3777_v61, %v3775_v5  ;;  %v3396_v17 = vpack.c.bf16 %v7271_v48, %v7258_v34  ;;  %v3738_v60 = vunpack.c.h.b16 %v3380_v21  ;;  %v9770_v48 = vld [vmem:[#allocation12_spill] sm:$0xff] }
 0x3ee   : > { %v3083_v8 = vadd.f32 %v7382_v39, %v3082_v31  ;;  %3875 = vmatpush.bf16.msra.mxu3 %v3819_v26  ;;  %3901 = vmatpush.bf16.msrb.mxu1 %v3820_v53  ;;  %v3818_v36 = vpack.c.b16 %v3778_v29, %v3776_v58  ;;  %v3771_v47 = vunpack.c.l.b16 %v7485_v28  ;;  %v3797_v13 = vpack.c.b16 %v3737_v56, %v3735_v32  ;;  %v7515_v26 = vpop.f32.mrf.mxu0  ;;  %v7517_v14 = vpop.f32.mrf.mxu1  ;;  %v9775_v53 = vld [vmem:[#allocation51_spill] sm:$0xff]  ;;  %v9778_v29 = vld [vmem:[#allocation57_spill] sm:$0xff]  ;;  %v9780_v21 = vld [vmem:[#allocation80_spill] sm:$0xff] }
 0x3ef   : > { %v3117_v62 = vadd.f32 %v7354_v7, %v3116_v42  ;;  %v3773_v37 = vunpack.c.l.b16 %v3398_v20  ;;  %v3772_v54 = vunpack.c.h.b16 %v7485_v28  ;;  %v3798_v63 = vpack.c.b16 %v3738_v60, %v3736_v43  ;;  %9772 = vst [vmem:[#allocation23_spill] sm:$0xff] %v7515_v26  ;;  %v7525_v19 = vpop.f32.mrf.mxu2  ;;  %v2973_v28 = vld [vmem:[#allocation6] sm:$0x3]  ;;  %v9781_v31 = vld [vmem:[#allocation93_spill] sm:$0xff]  ;;  %v9784_v32 = vld [vmem:[#allocation72_spill] sm:$0xff] }
 0x3f0   : > { %v3084_v11 = vadd.f32 %v7403_v41, %v3083_v8  ;;  %v3774_v2 = vunpack.c.h.b16 %v3398_v20  ;;  %3865 = vmatpush.bf16.msra.mxu2 %v3797_v13  ;;  %v3767_v34 = vunpack.c.l.b16 %v3395_v30  ;;  %v3377_v7 = vpack.c.bf16 %v9771_v15, %v9770_v48  ;;  %9773 = vst [vmem:[#allocation43_spill] sm:$0xff] %v7517_v14  ;;  %v9782_v20 = vld [vmem:[#allocation37_spill] sm:$0xff]  ;;  %v9793_v15 = vld [vmem:[#allocation48_spill] sm:$0xff] }
 0x3f1   : > { %v3118_v39 = vadd.f32 %v7369_v25, %v3117_v62  ;;  %v7519_v38 = vpop.eup %5043  ;;  %v3769_v45 = vunpack.c.l.b16 %v3396_v17  ;;  %3891 = vmatpush.bf16.msrb.mxu0 %v3798_v63  ;;  %v3768_v4 = vunpack.c.h.b16 %v3395_v30  ;;  %v3378_v25 = vpack.c.bf16 %v9776_v24, %v9775_v53  ;;  %v7527_v55 = vpop.f32.mrf.mxu3 }
 0x3f2   : > { %9774 = vst [vmem:[#allocation29_spill] sm:$0xff] %v7519_v38  ;;  %v3085_v41 = vadd.f32 %v7427_v50, %v3084_v11  ;;  %3876 = vmatpush.bf16.msra.mxu3 %v3817_v18  ;;  %3902 = vmatpush.bf16.msrb.mxu1 %v3818_v36  ;;  %v3770_v61 = vunpack.c.h.b16 %v3396_v17  ;;  %v3731_v58 = vunpack.c.l.b16 %v3377_v7  ;;  %v3732_v3 = vunpack.c.h.b16 %v3377_v7 }
 0x3f3   : > { %v3119_v5 = vadd.f32 %v7378_v35, %v3118_v39  ;;  %9777 = vst [vmem:[#allocation8_spill] sm:$0xff] %v7527_v55  ;;  %v3733_v50 = vunpack.c.l.b16 %v3378_v25  ;;  %v3393_v52 = vpack.c.bf16 %v7229_v27, %v7226_v49  ;;  %v3394_v40 = vpack.c.bf16 %v9778_v29, %v7232_v33  ;;  %v9785_v33 = vld [vmem:[#allocation96_spill] sm:$0xff]  ;;  %v9790_v39 = vld [vmem:[#allocation9_spill] sm:$0xff] }
 0x3f4   : > { %v3086_v9 = vrot.slane %v3085_v41, 4  ;;  %v3815_v12 = vpack.c.b16 %v3773_v37, %v3771_v47  ;;  %v3816_v23 = vpack.c.b16 %v3774_v2, %v3772_v54  ;;  %v3734_v46 = vunpack.c.h.b16 %v3378_v25  ;;  %v9786_v47 = vld [vmem:[#allocation36_spill] sm:$0xff]  ;;  %v9789_v54 = vld [vmem:[#allocation74_spill] sm:$0xff]  ;;  %v9797_v25 = vld [vmem:[#allocation83_spill] sm:$0xff] }
 0x3f5   : > { %v3120_v35 = vadd.f32 %v9779_v10, %v3119_v5  ;;  %v9783_v30 = vmax.f32 %v9781_v31, %v9782_v20  ;;  %v2046_v56 = vmax.f32 %v2045_v22, %v9784_v32  ;;  %v3795_v43 = vpack.c.b16 %v3733_v50, %v3731_v58 }
 0x3f6   : > { %v2977_v27 = vmul.f32 %v7519_v38, %v2973_v28  ;;  %v3087_v49 = vadd.f32 %v3086_v9, %v3085_v41  ;;  %3877 = vmatpush.bf16.msra.mxu3 %v3815_v12  ;;  %3903 = vmatpush.bf16.msrb.mxu1 %v3816_v23  ;;  %v3796_v18 = vpack.c.b16 %v3734_v46, %v3732_v3  ;;  %v3763_v62 = vunpack.c.l.b16 %v3393_v52  ;;  %v7545_v22 = vpop.f32.mrf.mxu0  ;;  %v7547_v37 = vpop.f32.mrf.mxu1 }
 0x3f7   : > { %v2009_v42 = vmax.f32 %v9783_v30, %v9780_v21  ;;  %v3121_v8 = vadd.f32 %v9785_v33, %v3120_v35  ;;  %v3813_v17 = vpack.c.b16 %v3769_v45, %v3767_v34  ;;  %v3814_v60 = vpack.c.b16 %v3770_v61, %v3768_v4  ;;  %3866 = vmatpush.bf16.msra.mxu2 %v3795_v43  ;;  %v9792_v34 = vld [vmem:[#allocation101_spill] sm:$0xff]  ;;  %v7555_v45 = vpop.f32.mrf.mxu2  ;;  %v9798_v61 = vld [vmem:[#allocation84_spill] sm:$0xff]  ;;  %v9800_v35 = vld [vmem:[#allocation91_spill] sm:$0xff] }
 0x3f8   : > { %v3765_v36 = vunpack.c.l.b16 %v3394_v40  ;;  %3892 = vmatpush.bf16.msrb.mxu0 %v3796_v18  ;;  %v3764_v11 = vunpack.c.h.b16 %v3393_v52  ;;  %v3766_v57 = vunpack.c.h.b16 %v3394_v40  ;;  %9787 = vst [vmem:[#allocation34_spill] sm:$0xff] %v7545_v22  ;;  %v3297_v63 = vadd.f32 %v9789_v54, %v2977_v27  ;;  %3687 = vmatmul.bf16.vlgmr.msra.gmra.mxu1 %v9793_v15  ;;  %v9799_v40 = vld [vmem:[#allocation90_spill] sm:$0xff]  ;;  %v9806_v33 = vld [vmem:[#allocation95_spill] sm:$0xff] }
 0x3f9   : > { %v3122_v13 = vadd.f32 %v9786_v47, %v3121_v8  ;;  %9788 = vst [vmem:[#allocation75_spill] sm:$0xff] %v7547_v37  ;;  %v9791_v2 = vunpack.c.l.b16 %v9790_v39  ;;  %3674 = vmatmul.bf16.vlgmr.msra.gmra.mxu0 %v9792_v34  ;;  %v3088_v7 = vrot.slane %v3087_v49, 2  ;;  %v7557_v4 = vpop.f32.mrf.mxu3  ;;  %v3694_v24 = vunpack.c.h.b16 %v9790_v39  ;;  %v9805_v27 = vld [vmem:[#allocation94_spill] sm:$0xff]  ;;  %v9814_v15 = vld [vmem:[#allocation71_spill] sm:$0xff] }
 0x3fa   : > { %3878 = vmatpush.bf16.msra.mxu3 %v3813_v17  ;;  %3904 = vmatpush.bf16.msrb.mxu1 %v3814_v60  ;;  %9794 = vst [vmem:[#allocation24_spill] sm:$0xff] %v7555_v45  ;;  %v2010_v5 = vmax.f32 %v2009_v42, %v9797_v25  ;;  %v2047_v58 = vmax.f32 %v2046_v56, %v9798_v61  ;;  %v9808_v47 = vld [vmem:[#allocation30_spill] sm:$0xff] }
 0x3fb   : > { %v3695_v48 = vpack.c.b16 %v9791_v2, %v9791_v2  ;;  %v3123_v41 = vrot.slane %v3122_v13, 4  ;;  %9795 = vst [vmem:[#allocation28_spill] sm:$0xff] %v7557_v4  ;;  %v3811_v28 = vpack.c.b16 %v3765_v36, %v3763_v62  ;;  %v3812_v9 = vpack.c.b16 %v3766_v57, %v3764_v11  ;;  %v9807_v62 = vld [vmem:[#allocation13_spill] sm:$0xff] }
 0x3fc   : > { %3305 = vst.msk [vmem:[#allocation6] sm:$0x3] %vm5906_vm4, %v3297_v63  ;;  %v3089_v50 = vadd.f32 %v3088_v7, %v3087_v49  ;;  %v3696_v29 = vpack.c.b16 %v3694_v24, %v3694_v24  ;;  %v2011_v10 = vmax.f32 %v2010_v5, %v9799_v40  ;;  %v2048_v12 = vmax.f32 %v2047_v58, %v9800_v35  ;;  %v9813_v2 = vld [vmem:[#allocation69_spill] sm:$0xff]  ;;  %v9816_v5 = vld [vmem:[#allocation38_spill] sm:$0xff] }
 0x3fd   : > { %3867 = vmatmul.bf16.vlgmr.msra.gmra.mxu2 %v3695_v48  ;;  %v3124_v3 = vadd.f32 %v3123_v41, %v3122_v13  ;;  %v9815_v41 = vld [vmem:[#allocation14_spill] sm:$0xff] }
 0x3fe   : > { %3879 = vmatpush.bf16.msra.mxu3 %v3811_v28  ;;  %3905 = vmatpush.bf16.msrb.mxu1 %v3812_v9  ;;  %v7566_v46 = vpop.f32.mrf.mxu0  ;;  %v7568_v31 = vpop.f32.mrf.mxu1  ;;  %v3090_v30 = vrot.slane %v3089_v50, 1  ;;  %v2012_v49 = vmax.f32 %v2011_v10, %v9805_v27  ;;  %v2049_v8 = vmax.f32 %v2048_v12, %v9806_v33  ;;  %v9818_v9 = vld [vmem:[#allocation18_spill] sm:$0xff] }
 0x3ff   : > { %v3125_v52 = vrot.slane %v3124_v3, 2  ;;  %9801 = vst [vmem:[#allocation58_spill] sm:$0xff] %v7566_v46  ;;  %v7570_v56 = vpop.f32.mrf.mxu2 }
 0x400   : > { %9802 = vst [vmem:[#allocation89_spill] sm:$0xff] %v7568_v31  ;;  %v3091_v17 = vadd.f32 %v3090_v30, %v3089_v50  ;;  %v2013_v36 = vmax.f32 %v2012_v49, %v9807_v62  ;;  %v2050_v13 = vmax.f32 %v2049_v8, %v9808_v47  ;;  %v9823_v30 = vld [vmem:[#allocation61_spill] sm:$0xff]  ;;  %v9824_v49 = vld [vmem:[#allocation64_spill] sm:$0xff] }
 0x401   : > { %v3126_v23 = vadd.f32 %v3125_v52, %v3124_v3  ;;  %3880 = vmatmul.bf16.vlgmr.msra.gmra.mxu3 %v3696_v29  ;;  %9803 = vst [vmem:[#allocation92_spill] sm:$0xff] %v7570_v56  ;;  %v7572_v43 = vpop.f32.mrf.mxu3  ;;  %v9817_v3 = vld [vmem:[#allocation17_spill] sm:$0xff] }
 0x402   : > { %9804 = vst [vmem:[#allocation26_spill] sm:$0xff] %v7572_v43  ;;  %v2014_v34 = vmax.f32 %v2013_v36, %v9813_v2  ;;  %v2051_v7 = vmax.f32 %v2050_v13, %v9814_v15  ;;  %v9819_v52 = vld [vmem:[#allocation49_spill] sm:$0xff]  ;;  %v9827_v13 = vld [vmem:[#allocation15_spill] sm:$0xff] }
 0x403   : > { %v3127_v42 = vrot.slane %v3126_v23, 1 }
 0x404   : > { %v2015_v24 = vmax.f32 %v2014_v34, %v9815_v41  ;;  %v2052_v58 = vmax.f32 %v2051_v7, %v9816_v5  ;;  %v9828_v7 = vld [vmem:[#allocation31_spill] sm:$0xff] }
 0x405   : > { %v3128_v18 = vadd.f32 %v3127_v42, %v3126_v23 }
 0x406   : > { %v7581_v57 = vpop.f32.mrf.mxu0  ;;  %v7583_v54 = vpop.f32.mrf.mxu1  ;;  %v2016_v28 = vmax.f32 %v2015_v24, %v9817_v3  ;;  %v2053_v50 = vmax.f32 %v2052_v58, %v9818_v9 }
 0x407   : > { %v3286_v60 = vrot.slane %v3128_v18, 7  ;;  %9809 = vst [vmem:[#allocation11_spill] sm:$0xff] %v7581_v57  ;;  %v7585_v63 = vpop.f32.mrf.mxu2  ;;  %v9825_v18 = vld [vmem:[#allocation40_spill] sm:$0xff] }
 0x408   : > { %9810 = vst [vmem:[#allocation99_spill] sm:$0xff] %v7583_v54  ;;  %3906 = vmatmul.bf16.vlgmr.msrb.gmra.mxu1 %v3696_v29  ;;  %v2017_v10 = vmax.f32 %v2016_v28, %v9819_v52 }
 0x409   : > { %v7579_v11 = vsel %vm2160_vm5, %v3091_v17, %v3286_v60  ;;  %3893 = vmatmul.bf16.vlgmr.msrb.gmra.mxu0 %v3695_v48  ;;  %9811 = vst [vmem:[#allocation33_spill] sm:$0xff] %v7585_v63  ;;  %v7587_v39 = vpop.f32.mrf.mxu3  ;;  %v9820_v48 = vld [vmem:[#allocation50_spill] sm:$0xff]  ;;  %v9826_v60 = vld [vmem:[#allocation32_spill] sm:$0xff] }
 0x40a   : > { %9812 = vst [vmem:[#allocation55_spill] sm:$0xff] %v7587_v39  ;;  %v2054_v29 = vmax.f32 %v2053_v50, %v9820_v48  ;;  %v2018_v42 = vmax.f32 %v2017_v10, %v9823_v30 }
 0x40c   : > { %v2055_v8 = vmax.f32 %v2054_v29, %v9824_v49  ;;  %v2019_v17 = vmax.f32 %v2018_v42, %v9825_v18 }
 0x40e   : > { %v2056_v36 = vmax.f32 %v2055_v8, %v9826_v60  ;;  %v2020_v34 = vmax.f32 %v2019_v17, %v9827_v13 }
 0x40f   : > { %v7597_v12 = vpop.f32.mrf.mxu2 }
 0x410   : > { %9821 = vst [vmem:[#allocation85_spill] sm:$0xff] %v7597_v12  ;;  %v2057_v24 = vmax.f32 %v2056_v36, %v9828_v7  ;;  %v2021_v58 = vmax.f32 %v2020_v34, %v7458_v6 }
 0x411   : > { %v7599_v23 = vpop.f32.mrf.mxu3 }
 0x412   : > { %9822 = vst [vmem:[#allocation81_spill] sm:$0xff] %v7599_v23  ;;  %v2058_v28 = vmax.f32 %v2057_v24, %v7460_v16  ;;  %v2022_v10 = vmax.f32 %v2021_v58, %v7494_v0 }
 0x414   : > { %v2059_v29 = vmax.f32 %v2058_v28, %v7496_v1  ;;  %v2023_v42 = vmax.f32 %v2022_v10, %v7525_v19 }
 0x416   : > { %v2060_v8 = vmax.f32 %v2059_v29, %v7527_v55  ;;  %v2024_v17 = vmax.f32 %v2023_v42, %v7555_v45 }
 0x417   : > { %v7609_v50 = vpop.f32.mrf.mxu2 }
 0x418   : > { %9829 = vst [vmem:[#allocation82_spill] sm:$0xff] %v7609_v50  ;;  %v2061_v36 = vmax.f32 %v2060_v8, %v7557_v4  ;;  %v2025_v34 = vmax.f32 %v2024_v17, %v7570_v56  ;;  %v9859_v56 = vld [vmem:[#allocation21_spill] sm:$0xff] }
 0x419   : > { %v7611_v54 = vpop.f32.mrf.mxu3 }
 0x41a   : > { %9830 = vst [vmem:[#allocation12_spill] sm:$0xff] %v7611_v54  ;;  %v2062_v24 = vmax.f32 %v2061_v36, %v7572_v43  ;;  %v2026_v58 = vmax.f32 %v2025_v34, %v7585_v63 }
 0x41c   : > { %v2063_v28 = vmax.f32 %v2062_v24, %v7587_v39  ;;  %v2027_v10 = vmax.f32 %v2026_v58, %v7597_v12 }
 0x41e   : > { %v2064_v29 = vmax.f32 %v2063_v28, %v7599_v23  ;;  %v2028_v42 = vmax.f32 %v2027_v10, %v7609_v50 }
 0x41f   : > { %v7621_v57 = vpop.f32.mrf.mxu2 }
 0x420   : > { %9831 = vst [vmem:[#allocation100_spill] sm:$0xff] %v7621_v57  ;;  %v2065_v8 = vmax.f32 %v2064_v29, %v7611_v54  ;;  %v2029_v17 = vmax.f32 %v2028_v42, %v7621_v57 }
 0x421   : > { %v7623_v31 = vpop.f32.mrf.mxu3 }
 0x422   : > { %9832 = vst [vmem:[#allocation51_spill] sm:$0xff] %v7623_v31  ;;  %v2066_v36 = vmax.f32 %v2065_v8, %v7623_v31  ;;  %v7639_v31 = vld [vmem:[#allocation5 + $0x4] sm:$0x3] }
 0x423   : > { %9835 = vst [vmem:[#allocation68_spill] sm:$0xff] %v7639_v31 }
 0x427   : > { %v7633_v46 = vpop.f32.mrf.mxu2 }
 0x428   : > { %9833 = vst [vmem:[#allocation52_spill] sm:$0xff] %v7633_v46  ;;  %v2030_v34 = vmax.f32 %v2029_v17, %v7633_v46 }
 0x429   : > { %v7635_v37 = vpop.f32.mrf.mxu3 }
 0x42a   : > { %9834 = vst [vmem:[#allocation57_spill] sm:$0xff] %v7635_v37  ;;  %v2067_v24 = vmax.f32 %v2066_v36, %v7635_v37  ;;  %v2031_v22 = vrot.slane %v2030_v34, 4 }
 0x42c   : > { %v2068_v58 = vrot.slane %v2067_v24, 4  ;;  %v2032_v14 = vmax.f32 %v2030_v34, %v2031_v22  ;;  %v9842_v34 = vld [vmem:[#allocation98_spill] sm:$0xff]  ;;  %v9847_v22 = vld [vmem:[#allocation47_spill] sm:$0xff] }
 0x42e   : > { %v2069_v28 = vmax.f32 %v2067_v24, %v2068_v58  ;;  %v2033_v26 = vrot.slane %v2032_v14, 2  ;;  %v9843_v58 = vld [vmem:[#allocation46_spill] sm:$0xff] }
 0x430   : > { %v2070_v10 = vrot.slane %v2069_v28, 2  ;;  %v2034_v50 = vmax.f32 %v2032_v14, %v2033_v26  ;;  %v7650_v26 = vpop.f32.mrf.mxu0  ;;  %v7652_v14 = vpop.f32.mrf.mxu1 }
 0x431   : > { %9837 = vst [vmem:[#allocation93_spill] sm:$0xff] %v7650_v26 }
 0x432   : > { %v2071_v29 = vmax.f32 %v2069_v28, %v2070_v10  ;;  %v2035_v54 = vrot.slane %v2034_v50, 1  ;;  %9838 = vst [vmem:[#allocation37_spill] sm:$0xff] %v7652_v14  ;;  %v9844_v10 = vld [vmem:[#allocation87_spill] sm:$0xff] }
 0x434   : > { %v2072_v42 = vrot.slane %v2071_v29, 1  ;;  %v2036_v8 = vmax.f32 %v2034_v50, %v2035_v54  ;;  %v9841_v50 = vld [vmem:[#allocation97_spill] sm:$0xff] }
 0x436   : > { %v2073_v57 = vmax.f32 %v2071_v29, %v2072_v42  ;;  %v9845_v29 = vld [vmem:[#allocation88_spill] sm:$0xff] }
 0x437   : > { %v9846_v42 = vsub.f32 %v9844_v10, %v9845_v29  ;;  %v547_v29 = vpop.permute.xlu2 %546 }
 0x438   : > { %v2158_v23 = vrot.slane %v2073_v57, 7 }
 0x43a   : > { %v2163_v12 = vsel %vm2160_vm5, %v2036_v8, %v2158_v23  ;;  %v7660_v23 = vpop.f32.mrf.mxu0  ;;  %v2179_v8 = vmul.f32 1.442695, %v9846_v42 }
 0x43b   : > { %v7643_v17 = vmax.f32 %v7639_v31, %v2163_v12  ;;  %9839 = vst [vmem:[#allocation72_spill] sm:$0xff] %v7660_v23  ;;  %v7662_v12 = vpop.f32.mrf.mxu1  ;;  %v9848_v23 = vld [vmem:[#allocation62_spill] sm:$0xff] }
 0x43c   : > { %9840 = vst [vmem:[#allocation96_spill] sm:$0xff] %v7662_v12  ;;  %5045 = vpow2.f32 %v2179_v8  ;;  %v9857_v8 = vld [vmem:[#allocation20_spill] sm:$0xff] }
 0x43d   : > { %9836 = vst [vmem:[#allocation80_spill] sm:$0xff] %v7643_v17  ;;  %v7655_v54 = vperm.slane %v7643_v17, 0  ;;  %v7658_v57 = vperm.slane %v7643_v17, 1  ;;  %v592_v43 = vadd.f32 %v9857_v8, %v547_v29  ;;  %v3321_v8 = vperm.slane %v7519_v38, 0 }
 0x43e   : > { %4367 = vst.msk [vmem:[#allocation5 + $0x4] sm:$0x3] %vm5906_vm4, %v7643_v17  ;;  %v9849_v17 = vld [vmem:[#allocation66_spill] sm:$0xff] }
 0x43f   : > { %v2333_v36 = vsub.f32 %v9841_v50, %v7655_v54  ;;  %v2334_v24 = vsub.f32 %v9842_v34, %v7658_v57  ;;  %v2335_v28 = vsub.f32 %v9843_v58, %v7655_v54  ;;  %v2336_v14 = vsub.f32 %v9847_v22, %v7658_v57  ;;  %v9850_v34 = vld [vmem:[#allocation73_spill] sm:$0xff]  ;;  %v9851_v58 = vld [vmem:[#allocation78_spill] sm:$0xff]  ;;  %v9852_v22 = vld [vmem:[#allocation16_spill] sm:$0xff] }
 0x440   : > { %v2337_v26 = vsub.f32 %v9848_v23, %v7655_v54  ;;  %v2338_v50 = vsub.f32 %v9849_v17, %v7658_v57  ;;  %v2339_v37 = vsub.f32 %v9850_v34, %v7655_v54  ;;  %v2340_v39 = vsub.f32 %v9851_v58, %v7658_v57 }
 0x441   : > { %v2717_v12 = vmul.f32 1.442695, %v2333_v36  ;;  %v2719_v31 = vmul.f32 1.442695, %v2334_v24  ;;  %v2721_v46 = vmul.f32 1.442695, %v2335_v28  ;;  %v2341_v42 = vsub.f32 %v9852_v22, %v7655_v54 }
 0x442   : > { %v2723_v10 = vmul.f32 1.442695, %v2336_v14  ;;  %v2725_v23 = vmul.f32 1.442695, %v2337_v26  ;;  %v9853_v36 = vld [vmem:[#allocation63_spill] sm:$0xff]  ;;  %v7687_v24 = vpop.f32.mrf.mxu0  ;;  %v9856_v28 = vld [vmem:[#allocation86_spill] sm:$0xff] }
 0x443   : > { %5047 = vpow2.f32 %v2717_v12  ;;  %v2342_v63 = vsub.f32 %v9853_v36, %v7658_v57  ;;  %v2727_v17 = vmul.f32 1.442695, %v2338_v50  ;;  %9854 = vst [vmem:[#allocation36_spill] sm:$0xff] %v7687_v24  ;;  %v7689_v34 = vpop.f32.mrf.mxu1  ;;  %v2343_v58 = vsub.f32 %v9856_v28, %v7655_v54  ;;  %v9858_v22 = vld [vmem:[#allocation70_spill] sm:$0xff]  ;;  %v9862_v28 = vld [vmem:[#allocation25_spill] sm:$0xff] }
 0x444   : > { %5049 = vpow2.f32 %v2719_v31  ;;  %9855 = vst [vmem:[#allocation74_spill] sm:$0xff] %v7689_v34  ;;  %v2729_v14 = vmul.f32 1.442695, %v2339_v37  ;;  %v2344_v12 = vsub.f32 %v9858_v22, %v7658_v57  ;;  %v2731_v26 = vmul.f32 1.442695, %v2340_v39  ;;  %v9860_v31 = vld [vmem:[#allocation56_spill] sm:$0xff]  ;;  %v7699_v34 = vpop.eup %5045 }
 0x445   : > { %5051 = vpow2.f32 %v2721_v46  ;;  %v611_v36 = vadd.f32 %v9859_v56, %v547_v29  ;;  %v2345_v50 = vsub.f32 %v9860_v31, %v7655_v54  ;;  %v2733_v24 = vmul.f32 1.442695, %v2341_v42  ;;  %9861 = vst [vmem:[#allocation9_spill] sm:$0xff] %v7699_v34  ;;  %v9864_v39 = vld [vmem:[#allocation77_spill] sm:$0xff] }
 0x446   : > { %5053 = vpow2.f32 %v2723_v10  ;;  %v2346_v46 = vsub.f32 %v9862_v28, %v7658_v57  ;;  %v2735_v37 = vmul.f32 1.442695, %v2342_v63  ;;  %v2347_v10 = vsub.f32 %v9864_v39, %v7655_v54  ;;  %v9866_v42 = vld [vmem:[#allocation41_spill] sm:$0xff]  ;;  %v9869_v63 = vld [vmem:[#allocation27_spill] sm:$0xff] }
 0x447   : > { %5055 = vpow2.f32 %v2725_v23  ;;  %v2737_v56 = vmul.f32 1.442695, %v2343_v58  ;;  %v2348_v23 = vsub.f32 %v9866_v42, %v7658_v57  ;;  %v2739_v22 = vmul.f32 1.442695, %v2344_v12  ;;  %v9871_v58 = vld [vmem:[#allocation65_spill] sm:$0xff]  ;;  %v9873_v42 = vld [vmem:[#allocation39_spill] sm:$0xff] }
 0x448   : > { %5057 = vpow2.f32 %v2727_v17  ;;  %v7714_v17 = vpack.c.bf16 %v611_v36, %v592_v43  ;;  %v2349_v28 = vsub.f32 %v9869_v63, %v7655_v54  ;;  %v2741_v38 = vmul.f32 1.442695, %v2345_v50  ;;  %v9874_v43 = vld [vmem:[#allocation22_spill] sm:$0xff] }
 0x449   : > { %v7704_v4 = vpop.eup %5047  ;;  %5059 = vpow2.f32 %v2729_v14  ;;  %v2350_v14 = vsub.f32 %v9871_v58, %v7658_v57  ;;  %v2743_v39 = vmul.f32 1.442695, %v2346_v46  ;;  %v7722_v55 = vmul.f32 0.0, %v3321_v8  ;;  %v7736_v8 = vpop.f32.mrf.mxu2 }
 0x44a   : > { %9863 = vst [vmem:[#allocation101_spill] sm:$0xff] %v7704_v4  ;;  %v7708_v29 = vpop.eup %5049  ;;  %5061 = vpow2.f32 %v2731_v26  ;;  %v2974_v26 = vld [vmem:[#allocation6 + $0x2] sm:$0x3]  ;;  %v2074_v36 = vmax.f32 %v9874_v43, %v9873_v42  ;;  %v2351_v63 = vsub.f32 %v9782_v20, %v7655_v54  ;;  %v2352_v46 = vsub.f32 %v9764_v51, %v7658_v57  ;;  %v7740_v42 = vpop.f32.mrf.mxu0  ;;  %v9882_v51 = vld [vmem:[#allocation44_spill] sm:$0xff] }
 0x44b   : > { %9865 = vst [vmem:[#allocation48_spill] sm:$0xff] %v7708_v29  ;;  %v7712_v31 = vpop.eup %5051  ;;  %5063 = vpow2.f32 %v2733_v24  ;;  %v2745_v24 = vmul.f32 1.442695, %v2347_v10  ;;  %v7742_v43 = vpop.f32.mrf.mxu1  ;;  %v2353_v20 = vsub.f32 %v9780_v21, %v7655_v54  ;;  %v2749_v10 = vmul.f32 1.442695, %v2349_v28 }
 0x44c   : > { %9867 = vst [vmem:[#allocation83_spill] sm:$0xff] %v7712_v31  ;;  %v7718_v45 = vpop.eup %5053  ;;  %5065 = vpow2.f32 %v2735_v37  ;;  %v2747_v37 = vmul.f32 1.442695, %v2348_v23  ;;  %v2354_v23 = vsub.f32 %v9784_v32, %v7658_v57  ;;  %v2753_v21 = vmul.f32 1.442695, %v2351_v63 }
 0x44d   : > { %9868 = vst [vmem:[#allocation84_spill] sm:$0xff] %v7714_v17  ;;  %v7724_v12 = vpop.eup %5055  ;;  %5067 = vpow2.f32 %v2737_v56  ;;  %v9876_v17 = vld [vmem:[#allocation42_spill] sm:$0xff]  ;;  %v2978_v56 = vmul.f32 %v7699_v34, %v2974_v26  ;;  %v9885_v26 = vld [vmem:[#allocation45_spill] sm:$0xff]  ;;  %v2755_v32 = vmul.f32 1.442695, %v2352_v46 }
 0x44e   : > { %9870 = vst [vmem:[#allocation90_spill] sm:$0xff] %v7718_v45  ;;  %v7730_v50 = vpop.eup %5057  ;;  %v9877_v45 = vld [vmem:[#allocation102_spill] sm:$0xff]  ;;  %5069 = vpow2.f32 %v2739_v22  ;;  %v2075_v22 = vmax.f32 %v2074_v36, %v9882_v51  ;;  %v2356_v36 = vsub.f32 %v9798_v61, %v7658_v57  ;;  %v2757_v63 = vmul.f32 1.442695, %v2353_v20 }
 0x44f   : > { %9872 = vst [vmem:[#allocation91_spill] sm:$0xff] %v7724_v12  ;;  %v2111_v58 = vmax.f32 %v9877_v45, %v9876_v17  ;;  %v7738_v29 = vpop.eup %5059  ;;  %5071 = vpow2.f32 %v2741_v38  ;;  %v2751_v45 = vmul.f32 1.442695, %v2350_v14  ;;  %v3298_v38 = vadd.f32 %v7579_v11, %v2978_v56  ;;  %v9887_v14 = vld [vmem:[#allocation53_spill] sm:$0xff]  ;;  %v9890_v56 = vld [vmem:[#allocation59_spill] sm:$0xff] }
 0x450   : > { %9875 = vst [vmem:[#allocation94_spill] sm:$0xff] %v7730_v50  ;;  %v7747_v17 = vpop.eup %5061  ;;  %5073 = vpow2.f32 %v2743_v39  ;;  %v2076_v51 = vmax.f32 %v2075_v22, %v9887_v14  ;;  %v2358_v61 = vsub.f32 %v9800_v35, %v7658_v57  ;;  %v2759_v46 = vmul.f32 1.442695, %v2354_v23 }
 0x451   : > { %9878 = vst [vmem:[#allocation95_spill] sm:$0xff] %v7738_v29  ;;  %v7752_v50 = vpop.eup %5063  ;;  %5075 = vpow2.f32 %v2745_v24  ;;  %v9889_v24 = vld [vmem:[#allocation54_spill] sm:$0xff]  ;;  %v2763_v35 = vmul.f32 1.442695, %v2356_v36 }
 0x452   : > { %9879 = vst [vmem:[#allocation13_spill] sm:$0xff] %v7740_v42  ;;  %v7757_v28 = vpop.eup %5065  ;;  %v2112_v42 = vmax.f32 %v2111_v58, %v9885_v26  ;;  %5077 = vpow2.f32 %v2747_v37  ;;  %v2077_v22 = vmax.f32 %v2076_v51, %v9890_v56  ;;  %v2361_v51 = vsub.f32 %v9807_v62, %v7655_v54 }
 0x453   : > { %9880 = vst [vmem:[#allocation30_spill] sm:$0xff] %v7742_v43  ;;  %v2355_v43 = vsub.f32 %v9797_v25, %v7655_v54  ;;  %v7762_v39 = vpop.eup %5067  ;;  %v2357_v25 = vsub.f32 %v9799_v40, %v7655_v54  ;;  %5079 = vpow2.f32 %v2749_v10  ;;  %v2359_v40 = vsub.f32 %v9805_v27, %v7655_v54 }
 0x454   : > { %9881 = vst [vmem:[#allocation69_spill] sm:$0xff] %v7747_v17  ;;  %v7769_v11 = vpop.eup %5069  ;;  %v2113_v58 = vmax.f32 %v2112_v42, %v9889_v24  ;;  %5081 = vpow2.f32 %v2751_v45  ;;  %v2360_v42 = vsub.f32 %v9806_v33, %v7658_v57  ;;  %v3651_v45 = vpop.f32.mrf.mxu2  ;;  %v9893_v24 = vld [vmem:[#allocation67_spill] sm:$0xff]  ;;  %v2767_v33 = vmul.f32 1.442695, %v2358_v61 }
 0x455   : > { %9883 = vst [vmem:[#allocation71_spill] sm:$0xff] %v7752_v50  ;;  %v7774_v37 = vpop.eup %5071  ;;  %5083 = vpow2.f32 %v2753_v21  ;;  %v2761_v20 = vmul.f32 1.442695, %v2355_v43  ;;  %v2078_v26 = vmax.f32 %v2077_v22, %v9893_v24  ;;  %v2765_v27 = vmul.f32 1.442695, %v2357_v25  ;;  %v9895_v21 = vld [vmem:[#allocation19_spill] sm:$0xff]  ;;  %v7801_v25 = vpop.f32.mrf.mxu0 }
 0x456   : > { %9884 = vst [vmem:[#allocation14_spill] sm:$0xff] %v7757_v28  ;;  %v7779_v10 = vpop.eup %5073  ;;  %5085 = vpow2.f32 %v2755_v32  ;;  %v9896_v32 = vld [vmem:[#allocation79_spill] sm:$0xff]  ;;  %v2363_v22 = vsub.f32 %v9813_v2, %v7655_v54  ;;  %v2769_v62 = vmul.f32 1.442695, %v2359_v40  ;;  %v2364_v61 = vsub.f32 %v9814_v15, %v7658_v57 }
 0x457   : > { %9886 = vst [vmem:[#allocation38_spill] sm:$0xff] %v7762_v39  ;;  %v7784_v23 = vpop.eup %5075  ;;  %5087 = vpow2.f32 %v2757_v63  ;;  %v7797_v45 = vmax.f32 %v2078_v26, %v9896_v32  ;;  %v7803_v63 = vpop.f32.mrf.mxu1  ;;  %v2771_v26 = vmul.f32 1.442695, %v2360_v42  ;;  %v2365_v40 = vsub.f32 %v9815_v41, %v7655_v54 }
 0x458   : > { %3306 = vst.msk [vmem:[#allocation6 + $0x2] sm:$0x3] %vm5906_vm4, %v3298_v38  ;;  %v9891_v38 = vld [vmem:[#allocation60_spill] sm:$0xff]  ;;  %v7789_v43 = vpop.eup %5077  ;;  %5089 = vpow2.f32 %v2759_v46  ;;  %v2366_v15 = vsub.f32 %v9816_v5, %v7658_v57  ;;  %v2367_v2 = vsub.f32 %v9817_v3, %v7655_v54  ;;  %v2368_v41 = vsub.f32 %v9818_v9, %v7658_v57 }
 0x459   : > { %9888 = vst [vmem:[#allocation17_spill] sm:$0xff] %v7769_v11  ;;  %v2114_v14 = vmax.f32 %v2113_v58, %v9891_v38  ;;  %v2362_v58 = vsub.f32 %v9808_v47, %v7658_v57  ;;  %v7794_v36 = vpop.eup %5079  ;;  %5091 = vpow2.f32 %v2761_v20  ;;  %v2773_v20 = vmul.f32 1.442695, %v2361_v51 }
 0x45a   : > { %9892 = vst [vmem:[#allocation18_spill] sm:$0xff] %v7784_v23  ;;  %5093 = vpow2.f32 %v2763_v35  ;;  %v2777_v51 = vmul.f32 1.442695, %v2363_v22  ;;  %v2370_v5 = vsub.f32 %v9820_v48, %v7658_v57  ;;  %v2371_v3 = vsub.f32 %v9823_v30, %v7655_v54 }
 0x45b   : > { %9894 = vst [vmem:[#allocation49_spill] sm:$0xff] %v7789_v43  ;;  %v2115_v56 = vmax.f32 %v2114_v14, %v9895_v21  ;;  %v7805_v14 = vpop.eup %5081  ;;  %v9899_v21 = vld [vmem:[#allocation10_spill] sm:$0xff]  ;;  %5095 = vpow2.f32 %v2765_v27  ;;  %v2775_v42 = vmul.f32 1.442695, %v2362_v58  ;;  %v2779_v58 = vmul.f32 1.442695, %v2364_v61 }
 0x45c   : > { %9897 = vst [vmem:[#allocation50_spill] sm:$0xff] %v7801_v25  ;;  %v7812_v46 = vpop.eup %5083  ;;  %5097 = vpow2.f32 %v2767_v33  ;;  %v2372_v9 = vsub.f32 %v9824_v49, %v7658_v57  ;;  %v2781_v22 = vmul.f32 1.442695, %v2365_v40  ;;  %v3129_v48 = vadd.f32 %v7712_v31, %v7704_v4  ;;  %v3662_v40 = vpop.f32.mrf.mxu3 }
 0x45d   : > { %9898 = vst [vmem:[#allocation61_spill] sm:$0xff] %v7803_v63  ;;  %v7808_v47 = vmax.f32 %v2115_v56, %v9899_v21  ;;  %v7818_v32 = vpop.eup %5085  ;;  %5099 = vpow2.f32 %v2769_v62  ;;  %v2369_v56 = vsub.f32 %v9819_v52, %v7655_v54  ;;  %v2373_v52 = vsub.f32 %v9825_v18, %v7655_v54 }
 0x45e   : > { %v7824_v35 = vpop.eup %5087  ;;  %5101 = vpow2.f32 %v2771_v26  ;;  %v2783_v21 = vmul.f32 1.442695, %v2366_v15  ;;  %v2374_v30 = vsub.f32 %v9826_v60, %v7658_v57  ;;  %v2375_v49 = vsub.f32 %v9827_v13, %v7655_v54 }
 0x45f   : > { %v7830_v27 = vpop.eup %5089  ;;  %5103 = vpow2.f32 %v2773_v20  ;;  %v2785_v26 = vmul.f32 1.442695, %v2367_v2  ;;  %v2787_v18 = vmul.f32 1.442695, %v2368_v41  ;;  %v3130_v15 = vadd.f32 %v7724_v12, %v3129_v48  ;;  %v7864_v2 = vpop.f32.mrf.mxu0 }
 0x460   : > { %v7836_v33 = vpop.eup %5091  ;;  %5105 = vpow2.f32 %v2775_v42  ;;  %v3663_v42 = vadd.f32 %v3662_v40, %v7736_v8  ;;  %v2376_v38 = vsub.f32 %v9828_v7, %v7658_v57  ;;  %v2377_v60 = vsub.f32 %v7458_v6, %v7655_v54  ;;  %9900 = vst [vmem:[#allocation64_spill] sm:$0xff] %v7864_v2 }
 0x461   : > { %v7842_v62 = vpop.eup %5093  ;;  %5107 = vpow2.f32 %v2777_v51  ;;  %v2789_v13 = vmul.f32 1.442695, %v2369_v56  ;;  %v7866_v51 = vpop.f32.mrf.mxu1  ;;  %v2791_v41 = vmul.f32 1.442695, %v2370_v5  ;;  %v3131_v8 = vadd.f32 %v7738_v29, %v3130_v15 }
 0x462   : > { %v7848_v61 = vpop.eup %5095  ;;  %5109 = vpow2.f32 %v2779_v58  ;;  %9901 = vst [vmem:[#allocation40_spill] sm:$0xff] %v7866_v51  ;;  %v7872_v48 = vadd.f32 %v3663_v42, %v7722_v55  ;;  %v2378_v6 = vsub.f32 %v7460_v16, %v7658_v57  ;;  %v2379_v7 = vsub.f32 %v7494_v0, %v7655_v54  ;;  %v9904_v0 = vld [vmem:[#allocation90_spill] sm:$0xff]  ;;  %v9905_v51 = vld [vmem:[#allocation8_spill] sm:$0xff] }
 0x463   : > { %v7854_v20 = vpop.eup %5097  ;;  %5111 = vpow2.f32 %v2781_v22  ;;  %v2793_v56 = vmul.f32 1.442695, %v2371_v3  ;;  %v2795_v5 = vmul.f32 1.442695, %v2372_v9  ;;  %v3132_v55 = vadd.f32 %v7752_v50, %v3131_v8 }
 0x464   : > { %v7858_v24 = vpop.eup %5099  ;;  %5113 = vpow2.f32 %v2783_v21  ;;  %9902 = vst [vmem:[#allocation32_spill] sm:$0xff] %v7872_v48  ;;  %v2381_v42 = vsub.f32 %v7525_v19, %v7655_v54  ;;  %v2797_v16 = vmul.f32 1.442695, %v2373_v52  ;;  %v9903_v48 = vld [vmem:[#allocation48_spill] sm:$0xff]  ;;  %v2382_v2 = vsub.f32 %v9905_v51, %v7658_v57  ;;  %v9908_v52 = vld [vmem:[#allocation94_spill] sm:$0xff]  ;;  %v3664_v25 = vpop.f32.mrf.mxu3 }
 0x465   : > { %v7868_v58 = vpop.eup %5101  ;;  %5115 = vpow2.f32 %v2785_v26  ;;  %v3166_v26 = vadd.f32 %v9904_v0, %v9903_v48  ;;  %v3133_v9 = vadd.f32 %v7762_v39, %v3132_v55  ;;  %v9907_v21 = vld [vmem:[#allocation24_spill] sm:$0xff]  ;;  %v2801_v19 = vmul.f32 1.442695, %v2375_v49 }
 0x466   : > { %v7874_v40 = vpop.eup %5103  ;;  %5117 = vpow2.f32 %v2787_v18  ;;  %v2799_v18 = vmul.f32 1.442695, %v2374_v30  ;;  %v2383_v63 = vsub.f32 %v9907_v21, %v7655_v54  ;;  %v9910_v0 = vld [vmem:[#allocation28_spill] sm:$0xff]  ;;  %v2803_v51 = vmul.f32 1.442695, %v2376_v38 }
 0x467   : > { %v7880_v22 = vpop.eup %5105  ;;  %5119 = vpow2.f32 %v2789_v13  ;;  %v3167_v13 = vadd.f32 %v9908_v52, %v3166_v26  ;;  %v3134_v30 = vadd.f32 %v7774_v37, %v3133_v9  ;;  %v9912_v55 = vld [vmem:[#allocation92_spill] sm:$0xff]  ;;  %v7911_v21 = vpop.f32.mrf.mxu0  ;;  %v2807_v9 = vmul.f32 1.442695, %v2378_v6 }
 0x468   : > { %v7885_v15 = vpop.eup %5107  ;;  %5121 = vpow2.f32 %v2791_v41  ;;  %v2385_v48 = vsub.f32 %v9912_v55, %v7655_v54  ;;  %9913 = vst [vmem:[#allocation98_spill] sm:$0xff] %v7911_v21 }
 0x469   : > { %v7891_v3 = vpop.eup %5109  ;;  %5123 = vpow2.f32 %v2793_v56  ;;  %v2805_v56 = vmul.f32 1.442695, %v2377_v60  ;;  %v3168_v49 = vadd.f32 %v7747_v17, %v3167_v13  ;;  %v7913_v25 = vpop.f32.mrf.mxu1  ;;  %v3135_v31 = vadd.f32 %v7784_v23, %v3134_v30  ;;  %v9920_v30 = vld [vmem:[#allocation85_spill] sm:$0xff] }
 0x46a   : > { %v7896_v8 = vpop.eup %5111  ;;  %5125 = vpow2.f32 %v2795_v5  ;;  %9914 = vst [vmem:[#allocation46_spill] sm:$0xff] %v7913_v25  ;;  %v9916_v5 = vld [vmem:[#allocation26_spill] sm:$0xff]  ;;  %v2809_v13 = vmul.f32 1.442695, %v2379_v7  ;;  %v9918_v25 = vld [vmem:[#allocation55_spill] sm:$0xff]  ;;  %v2389_v29 = vsub.f32 %v9920_v30, %v7655_v54 }
 0x46b   : > { %9906 = vst [vmem:[#allocation15_spill] sm:$0xff] %v7896_v8  ;;  %v7901_v53 = vpop.eup %5113  ;;  %5127 = vpow2.f32 %v2797_v16  ;;  %v2386_v38 = vsub.f32 %v9916_v5, %v7658_v57  ;;  %v9917_v16 = vld [vmem:[#allocation33_spill] sm:$0xff]  ;;  %v3169_v55 = vadd.f32 %v7757_v28, %v3168_v49  ;;  %v2388_v17 = vsub.f32 %v9918_v25, %v7658_v57 }
 0x46c   : > { %9909 = vst [vmem:[#allocation31_spill] sm:$0xff] %v7901_v53  ;;  %v7906_v41 = vpop.eup %5115  ;;  %5129 = vpow2.f32 %v2799_v18  ;;  %v2387_v60 = vsub.f32 %v9917_v16, %v7655_v54  ;;  %v2813_v5 = vmul.f32 1.442695, %v2381_v42  ;;  %v3136_v6 = vadd.f32 %v7794_v36, %v3135_v31  ;;  %v9921_v49 = vld [vmem:[#allocation81_spill] sm:$0xff]  ;;  %v9922_v31 = vld [vmem:[#allocation82_spill] sm:$0xff] }
 0x46d   : > { %9911 = vst [vmem:[#allocation97_spill] sm:$0xff] %v7906_v41  ;;  %v7915_v26 = vpop.eup %5117  ;;  %5131 = vpow2.f32 %v2801_v19  ;;  %v2815_v16 = vmul.f32 1.442695, %v2382_v2  ;;  %v3170_v7 = vadd.f32 %v7769_v11, %v3169_v55  ;;  %v2390_v52 = vsub.f32 %v9921_v49, %v7658_v57  ;;  %v9923_v55 = vld [vmem:[#allocation12_spill] sm:$0xff] }
 0x46e   : > { %9915 = vst [vmem:[#allocation87_spill] sm:$0xff] %v7915_v26  ;;  %v7920_v4 = vpop.eup %5119  ;;  %5133 = vpow2.f32 %v2803_v51  ;;  %v2817_v25 = vmul.f32 1.442695, %v2383_v63  ;;  %v3137_v42 = vadd.f32 %v7812_v46, %v3136_v6  ;;  %v2391_v12 = vsub.f32 %v9922_v31, %v7655_v54  ;;  %v9924_v6 = vld [vmem:[#allocation100_spill] sm:$0xff] }
 0x46f   : > { %v7925_v21 = vpop.eup %5121  ;;  %5135 = vpow2.f32 %v2805_v56  ;;  %v2821_v30 = vmul.f32 1.442695, %v2385_v48  ;;  %v3171_v2 = vadd.f32 %v7779_v10, %v3170_v7  ;;  %v2392_v34 = vsub.f32 %v9923_v55, %v7658_v57 }
 0x470   : > { %v7930_v18 = vpop.eup %5123  ;;  %5137 = vpow2.f32 %v2807_v9  ;;  %v2823_v49 = vmul.f32 1.442695, %v2386_v38  ;;  %v3138_v63 = vadd.f32 %v7824_v35, %v3137_v42  ;;  %v2393_v11 = vsub.f32 %v9924_v6, %v7655_v54 }
 0x471   : > { %9919 = vst [vmem:[#allocation88_spill] sm:$0xff] %v7930_v18  ;;  %v7935_v19 = vpop.eup %5125  ;;  %5139 = vpow2.f32 %v2809_v13  ;;  %v2825_v31 = vmul.f32 1.442695, %v2387_v60  ;;  %v3172_v48 = vadd.f32 %v7789_v43, %v3171_v2  ;;  %v7955_v13 = vpop.f32.mrf.mxu0  ;;  %v2827_v42 = vmul.f32 1.442695, %v2388_v17 }
 0x472   : > { %v7940_v51 = vpop.eup %5127  ;;  %5141 = vpow2.f32 %v2813_v5  ;;  %9925 = vst [vmem:[#allocation47_spill] sm:$0xff] %v7955_v13  ;;  %v7957_v7 = vpop.f32.mrf.mxu1  ;;  %v9927_v5 = vld [vmem:[#allocation51_spill] sm:$0xff]  ;;  %v3139_v55 = vadd.f32 %v7836_v33, %v3138_v63  ;;  %v2829_v2 = vmul.f32 1.442695, %v2389_v29  ;;  %v9930_v63 = vsub.f32 %v9910_v0, %v7658_v57 }
 0x473   : > { %v7945_v56 = vpop.eup %5129  ;;  %5143 = vpow2.f32 %v2815_v16  ;;  %9926 = vst [vmem:[#allocation62_spill] sm:$0xff] %v7957_v7  ;;  %v2394_v38 = vsub.f32 %v9927_v5, %v7658_v57  ;;  %v9928_v16 = vld [vmem:[#allocation52_spill] sm:$0xff]  ;;  %v3173_v6 = vadd.f32 %v7805_v14, %v3172_v48  ;;  %v9929_v7 = vld [vmem:[#allocation57_spill] sm:$0xff]  ;;  %v2831_v5 = vmul.f32 1.442695, %v2390_v52 }
 0x474   : > { %v7950_v9 = vpop.eup %5131  ;;  %5145 = vpow2.f32 %v2817_v25  ;;  %v2395_v60 = vsub.f32 %v9928_v16, %v7655_v54  ;;  %v2396_v50 = vsub.f32 %v9929_v7, %v7658_v57  ;;  %v3140_v17 = vadd.f32 %v7848_v61, %v3139_v55 }
 0x475   : > { %v7959_v39 = vpop.eup %5133  ;;  %5147 = vpow2.f32 %v2821_v30  ;;  %v2819_v43 = vmul.f32 1.442695, %v9930_v63  ;;  %v2833_v54 = vmul.f32 1.442695, %v2391_v12  ;;  %v3174_v29 = vadd.f32 %v7818_v32, %v3173_v6 }
 0x476   : > { %v7964_v28 = vpop.eup %5135  ;;  %5149 = vpow2.f32 %v2823_v49  ;;  %v2835_v48 = vmul.f32 1.442695, %v2392_v34  ;;  %v2837_v16 = vmul.f32 1.442695, %v2393_v11  ;;  %v3141_v49 = vadd.f32 %v7858_v24, %v3140_v17 }
 0x477   : > { %v7969_v13 = vpop.eup %5137  ;;  %5151 = vpow2.f32 %v2825_v31  ;;  %v2839_v7 = vmul.f32 1.442695, %v2394_v38  ;;  %v3175_v55 = vadd.f32 %v7830_v27, %v3174_v29  ;;  %v3423_v0 = vpack.c.bf16 %v7880_v22, %v7874_v40 }
 0x478   : > { %v7974_v25 = vpop.eup %5139  ;;  %5153 = vpow2.f32 %v2827_v42  ;;  %v2841_v12 = vmul.f32 1.442695, %v2395_v60  ;;  %v3142_v6 = vadd.f32 %v7874_v40, %v3141_v49  ;;  %v3424_v34 = vpack.c.bf16 %v7891_v3, %v7885_v15 }
 0x479   : > { %v7980_v30 = vpop.eup %5141  ;;  %5155 = vpow2.f32 %v2829_v2  ;;  %v2843_v42 = vmul.f32 1.442695, %v2396_v50  ;;  %v3176_v38 = vadd.f32 %v7842_v62, %v3175_v55  ;;  %v7996_v2 = vpop.f32.mrf.mxu0  ;;  %v3421_v63 = vpack.c.bf16 %v7854_v20, %v7848_v61 }
 0x47a   : > { %v7983_v52 = vpop.eup %5143  ;;  %5157 = vpow2.f32 %v2831_v5  ;;  %9931 = vst [vmem:[#allocation66_spill] sm:$0xff] %v7996_v2  ;;  %v7998_v17 = vpop.f32.mrf.mxu1  ;;  %v3143_v40 = vadd.f32 %v7885_v15, %v3142_v6  ;;  %v3422_v60 = vpack.c.bf16 %v7868_v58, %v7858_v24  ;;  %v8009_v50 = vpack.c.bf16 %v7830_v27, %v7824_v35 }
 0x47b   : > { %v7988_v31 = vpop.eup %5145  ;;  %5159 = vpow2.f32 %v2833_v54  ;;  %9932 = vst [vmem:[#allocation73_spill] sm:$0xff] %v7998_v17  ;;  %v3177_v29 = vadd.f32 %v7854_v20, %v3176_v38  ;;  %v3978_v49 = vunpack.c.l.b16 %v3423_v0  ;;  %v3980_v55 = vunpack.c.l.b16 %v3424_v34 }
 0x47c   : > { %v7993_v11 = vpop.eup %5147  ;;  %5161 = vpow2.f32 %v2835_v48  ;;  %v3144_v48 = vadd.f32 %v7896_v8, %v3143_v40  ;;  %v3979_v15 = vunpack.c.h.b16 %v3423_v0  ;;  %v3981_v6 = vunpack.c.h.b16 %v3424_v34 }
 0x47d   : > { %v8002_v5 = vpop.eup %5149  ;;  %5163 = vpow2.f32 %v2837_v16  ;;  %v3178_v24 = vadd.f32 %v7868_v58, %v3177_v29  ;;  %v4028_v35 = vpack.c.b16 %v3980_v55, %v3978_v49  ;;  %v3974_v27 = vunpack.c.l.b16 %v3421_v63 }
 0x47e   : > { %v8011_v54 = vpop.eup %5151  ;;  %5165 = vpow2.f32 %v2839_v7  ;;  %v3145_v20 = vadd.f32 %v7906_v41, %v3144_v48  ;;  %v4029_v16 = vpack.c.b16 %v3981_v6, %v3979_v15  ;;  %v3976_v38 = vunpack.c.l.b16 %v3422_v60 }
 0x47f   : > { %v8014_v61 = vpop.eup %5153  ;;  %5167 = vpow2.f32 %v2841_v12  ;;  %v3179_v7 = vadd.f32 %v7880_v22, %v3178_v24  ;;  %4078 = vmatpush.bf16.msrb.mxu2 %v4028_v35  ;;  %v3975_v12 = vunpack.c.h.b16 %v3421_v63  ;;  %v3977_v34 = vunpack.c.h.b16 %v3422_v60 }
 0x480   : > { %v8017_v17 = vpop.eup %5155  ;;  %5169 = vpow2.f32 %v2843_v42  ;;  %v9933_v40 = vsub.f32 %v7496_v1, %v7658_v57  ;;  %v3146_v29 = vadd.f32 %v7920_v4, %v3145_v20  ;;  %4104 = vmatpush.bf16.msra.mxu0 %v4029_v16  ;;  %v3420_v49 = vpack.c.bf16 %v7842_v62, %v7836_v33 }
 0x481   : > { %v8020_v2 = vpop.eup %5157  ;;  %5171 = vpow2.f32 %v2819_v43  ;;  %v3180_v55 = vadd.f32 %v7891_v3, %v3179_v7  ;;  %v8039_v48 = vpop.f32.mrf.mxu0  ;;  %v4026_v60 = vpack.c.b16 %v3976_v38, %v3974_v27  ;;  %v3970_v57 = vunpack.c.l.b16 %v8009_v50 }
 0x482   : > { %v8023_v23 = vpop.eup %5159  ;;  %v3437_v0 = vpack.c.bf16 %v8020_v2, %v8017_v17  ;;  %v2811_v42 = vmul.f32 1.442695, %v9933_v40  ;;  %9934 = vst [vmem:[#allocation78_spill] sm:$0xff] %v8039_v48  ;;  %v8041_v63 = vpop.f32.mrf.mxu1  ;;  %v3147_v15 = vadd.f32 %v7930_v18, %v3146_v29  ;;  %v4027_v33 = vpack.c.b16 %v3977_v34, %v3975_v12 }
 0x483   : > { %v8028_v58 = vpop.eup %5161  ;;  %9935 = vst [vmem:[#allocation16_spill] sm:$0xff] %v8041_v63  ;;  %v3181_v3 = vadd.f32 %v7901_v53, %v3180_v55  ;;  %4079 = vmatpush.bf16.msrb.mxu2 %v4026_v60  ;;  %v3972_v7 = vunpack.c.l.b16 %v3420_v49  ;;  %v3435_v12 = vpack.c.bf16 %v8002_v5, %v7993_v11 }
 0x484   : > { %v8036_v22 = vpop.eup %5163  ;;  %v3438_v1 = vpack.c.bf16 %v8028_v58, %v8023_v23  ;;  %v4006_v6 = vunpack.c.l.b16 %v3437_v0  ;;  %v4007_v62 = vunpack.c.h.b16 %v3437_v0  ;;  %v3148_v38 = vadd.f32 %v7940_v51, %v3147_v15  ;;  %4105 = vmatpush.bf16.msra.mxu0 %v4027_v33 }
 0x485   : > { %v8046_v43 = vpop.eup %5165  ;;  %v3436_v0 = vpack.c.bf16 %v8014_v61, %v8011_v54  ;;  %v3182_v34 = vadd.f32 %v7915_v26, %v3181_v3  ;;  %v4024_v63 = vpack.c.b16 %v3972_v7, %v3970_v57  ;;  %v4002_v8 = vunpack.c.l.b16 %v3435_v12  ;;  %v9940_v7 = vld [vmem:[#allocation43_spill] sm:$0xff] }
 0x486   : > { %9936 = vst [vmem:[#allocation63_spill] sm:$0xff] %v8046_v43  ;;  %v8049_v24 = vpop.eup %5167  ;;  %v3439_v35 = vpack.c.bf16 %v8046_v43, %v8036_v22  ;;  %v4008_v27 = vunpack.c.l.b16 %v3438_v1  ;;  %v4009_v20 = vunpack.c.h.b16 %v3438_v1  ;;  %v3149_v1 = vadd.f32 %v7950_v9, %v3148_v38 }
 0x487   : > { %v8054_v16 = vpop.eup %5169  ;;  %v3183_v48 = vadd.f32 %v7925_v21, %v3182_v34  ;;  %4080 = vmatpush.bf16.msrb.mxu2 %v4024_v63  ;;  %v4004_v3 = vunpack.c.l.b16 %v3436_v0  ;;  %v3971_v26 = vunpack.c.h.b16 %v8009_v50  ;;  %v9939_v43 = vmax.f32 %v7797_v45, %v7476_v44 }
 0x488   : > { %9937 = vst [vmem:[#allocation86_spill] sm:$0xff] %v8054_v16  ;;  %v3440_v40 = vpack.c.bf16 %v8054_v16, %v8049_v24  ;;  %v4010_v29 = vunpack.c.l.b16 %v3439_v35  ;;  %v4011_v55 = vunpack.c.h.b16 %v3439_v35  ;;  %v8064_v60 = vpop.eup %5171  ;;  %v4042_v15 = vpack.c.b16 %v4008_v27, %v4006_v6  ;;  %v9938_v35 = vld [vmem:[#allocation23_spill] sm:$0xff] }
 0x489   : > { %v4043_v33 = vpack.c.b16 %v4009_v20, %v4007_v62  ;;  %v3150_v18 = vadd.f32 %v7964_v28, %v3149_v1  ;;  %v3973_v16 = vunpack.c.h.b16 %v3420_v49  ;;  %v8074_v38 = vmax.f32 %v9939_v43, %v9938_v35  ;;  %v8077_v27 = vpop.f32.mrf.mxu0  ;;  %v9942_v43 = vld [vmem:[#allocation34_spill] sm:$0xff] }
 0x48a   : > { %v4012_v41 = vunpack.c.l.b16 %v3440_v40  ;;  %v4013_v53 = vunpack.c.h.b16 %v3440_v40  ;;  %v3184_v57 = vadd.f32 %v7935_v19, %v3183_v48  ;;  %v8079_v20 = vpop.f32.mrf.mxu1  ;;  %v9941_v63 = vmax.f32 %v7808_v47, %v7478_v59 }
 0x48b   : > { %5173 = vpow2.f32 %v2811_v42  ;;  %v3151_v49 = vadd.f32 %v7974_v25, %v3150_v18  ;;  %v4025_v45 = vpack.c.b16 %v3973_v16, %v3971_v26  ;;  %v2082_v34 = vmax.f32 %v8074_v38, %v9942_v43 }
 0x48c   : > { %v4044_v6 = vpack.c.b16 %v4012_v41, %v4010_v29  ;;  %v4045_v62 = vpack.c.b16 %v4013_v53, %v4011_v55  ;;  %v8085_v50 = vmax.f32 %v9941_v63, %v9940_v7  ;;  %v3185_v41 = vadd.f32 %v7945_v56, %v3184_v57 }
 0x48d   : > { %v4040_v53 = vpack.c.b16 %v4004_v3, %v4002_v8  ;;  %v4003_v48 = vunpack.c.h.b16 %v3435_v12  ;;  %v3152_v40 = vadd.f32 %v7980_v30, %v3151_v49  ;;  %4106 = vmatpush.bf16.msra.mxu0 %v4025_v45  ;;  %v4005_v29 = vunpack.c.h.b16 %v3436_v0  ;;  %v9944_v49 = vld [vmem:[#allocation49_spill] sm:$0xff] }
 0x48e   : > { %4091 = vmatpush.bf16.msrb.mxu3 %v4044_v6  ;;  %4117 = vmatpush.bf16.msra.mxu1 %v4045_v62  ;;  %v3417_v47 = vpack.c.bf16 %v7805_v14, %v7794_v36  ;;  %v3418_v18 = vpack.c.bf16 %v7818_v32, %v7812_v46  ;;  %v3186_v26 = vadd.f32 %v7959_v39, %v3185_v41 }
 0x48f   : > { %v3433_v42 = vpack.c.bf16 %v7983_v52, %v7980_v30  ;;  %v3434_v16 = vpack.c.bf16 %v8064_v60, %v7988_v31  ;;  %v3415_v8 = vpack.c.bf16 %v7779_v10, %v7774_v37  ;;  %v3153_v12 = vadd.f32 %v7988_v31, %v3152_v40  ;;  %v9943_v31 = vld [vmem:[#allocation18_spill] sm:$0xff] }
 0x490   : > { %v3966_v0 = vunpack.c.l.b16 %v3417_v47  ;;  %v3968_v55 = vunpack.c.l.b16 %v3418_v18  ;;  %v3967_v1 = vunpack.c.h.b16 %v3417_v47  ;;  %v3187_v36 = vadd.f32 %v7969_v13, %v3186_v26 }
 0x491   : > { %v3998_v32 = vunpack.c.l.b16 %v3433_v42  ;;  %v4000_v14 = vunpack.c.l.b16 %v3434_v16  ;;  %v3969_v46 = vunpack.c.h.b16 %v3418_v18  ;;  %v5174_v3 = vpop.eup %5173  ;;  %v3154_v30 = vadd.f32 %v7993_v11, %v3153_v12  ;;  %v8108_v41 = vpop.f32.mrf.mxu0 }
 0x492   : > { %4092 = vmatpush.bf16.msrb.mxu3 %v4042_v15  ;;  %4118 = vmatpush.bf16.msra.mxu1 %v4043_v33  ;;  %v4041_v57 = vpack.c.b16 %v4005_v29, %v4003_v48  ;;  %v4022_v6 = vpack.c.b16 %v3968_v55, %v3966_v0  ;;  %v3999_v62 = vunpack.c.h.b16 %v3433_v42  ;;  %v3188_v63 = vadd.f32 %v5174_v3, %v3187_v36  ;;  %v8110_v40 = vpop.f32.mrf.mxu1  ;;  %v8118_v0 = vpop.f32.mrf.mxu2 }
 0x493   : > { %v4038_v37 = vpack.c.b16 %v4000_v14, %v3998_v32  ;;  %v4001_v10 = vunpack.c.h.b16 %v3434_v16  ;;  %v3416_v45 = vpack.c.bf16 %v9944_v49, %v9943_v31  ;;  %v3155_v15 = vadd.f32 %v8011_v54, %v3154_v30  ;;  %v8120_v55 = vpop.f32.mrf.mxu3  ;;  %v9946_v32 = vld [vmem:[#allocation84_spill] sm:$0xff]  ;;  %v9951_v31 = vld [vmem:[#allocation9_spill] sm:$0xff] }
 0x494   : > { %4081 = vmatpush.bf16.msrb.mxu2 %v4022_v6  ;;  %v4023_v33 = vpack.c.b16 %v3969_v46, %v3967_v1  ;;  %v3962_v47 = vunpack.c.l.b16 %v3415_v8  ;;  %v3431_v11 = vpack.c.bf16 %v7969_v13, %v7964_v28  ;;  %v3189_v48 = vadd.f32 %v7983_v52, %v3188_v63  ;;  %v9945_v1 = vld [vmem:[#allocation75_spill] sm:$0xff]  ;;  %v9948_v6 = vld [vmem:[#allocation14_spill] sm:$0xff] }
 0x495   : > { %v3964_v29 = vunpack.c.l.b16 %v3416_v45  ;;  %v3432_v18 = vpack.c.bf16 %v5174_v3, %v7974_v25  ;;  %v3963_v26 = vunpack.c.h.b16 %v3415_v8  ;;  %v3156_v42 = vadd.f32 %v8017_v17, %v3155_v15  ;;  %v9949_v63 = vld [vmem:[#allocation38_spill] sm:$0xff]  ;;  %v9952_v15 = vld [vmem:[#allocation91_spill] sm:$0xff] }
 0x496   : > { %4093 = vmatpush.bf16.msrb.mxu3 %v4040_v53  ;;  %4119 = vmatpush.bf16.msra.mxu1 %v4041_v57  ;;  %v3994_v16 = vunpack.c.l.b16 %v3431_v11  ;;  %v3965_v12 = vunpack.c.h.b16 %v3416_v45  ;;  %v3995_v54 = vunpack.c.h.b16 %v3431_v11  ;;  %v3190_v28 = vadd.f32 %v8064_v60, %v3189_v48  ;;  %v9947_v57 = vld [vmem:[#allocation71_spill] sm:$0xff] }
 0x497   : > { %4107 = vmatpush.bf16.msra.mxu0 %v4023_v33  ;;  %v4039_v13 = vpack.c.b16 %v4001_v10, %v3999_v62  ;;  %v3996_v52 = vunpack.c.l.b16 %v3432_v18  ;;  %v3997_v53 = vunpack.c.h.b16 %v3432_v18  ;;  %v2119_v36 = vmax.f32 %v8085_v50, %v9945_v1  ;;  %v9950_v10 = vld [vmem:[#allocation17_spill] sm:$0xff]  ;;  %v9972_v50 = vld [vmem:[#allocation87_spill] sm:$0xff] }
 0x498   : > { %v3157_v25 = vadd.f32 %v8023_v23, %v3156_v42  ;;  %v4020_v8 = vpack.c.b16 %v3964_v29, %v3962_v47  ;;  %v4021_v17 = vpack.c.b16 %v3965_v12, %v3963_v26  ;;  %v3912_v14 = vunpack.c.l.b16 %v9946_v32 }
 0x499   : > { %v3191_v46 = vadd.f32 %v8002_v5, %v3190_v28  ;;  %v4036_v3 = vpack.c.b16 %v3996_v52, %v3994_v16  ;;  %v4037_v30 = vpack.c.b16 %v3997_v53, %v3995_v54  ;;  %v3413_v62 = vpack.c.bf16 %v9948_v6, %v9947_v57  ;;  %v8141_v47 = vpop.f32.mrf.mxu0  ;;  %v9954_v53 = vld [vmem:[#allocation95_spill] sm:$0xff]  ;;  %v9957_v6 = vld [vmem:[#allocation88_spill] sm:$0xff] }
 0x49a   : > { %4094 = vmatpush.bf16.msrb.mxu3 %v4038_v37  ;;  %4120 = vmatpush.bf16.msra.mxu1 %v4039_v13  ;;  %v3158_v60 = vadd.f32 %v8036_v22, %v3157_v25  ;;  %v3414_v23 = vpack.c.bf16 %v9950_v10, %v9949_v63  ;;  %v3323_v49 = vperm.slane %v9951_v31, 0  ;;  %v3429_v5 = vpack.c.bf16 %v7945_v56, %v7940_v51  ;;  %v9953_v22 = vld [vmem:[#allocation94_spill] sm:$0xff]  ;;  %v8143_v11 = vpop.f32.mrf.mxu1  ;;  %v3870_v54 = vpop.f32.mrf.mxu2  ;;  %v9955_v25 = vld [vmem:[#allocation69_spill] sm:$0xff] }
 0x49b   : > { %4082 = vmatpush.bf16.msrb.mxu2 %v4020_v8  ;;  %4108 = vmatpush.bf16.msra.mxu0 %v4021_v17  ;;  %v3192_v45 = vadd.f32 %v8014_v61, %v3191_v46  ;;  %v3430_v37 = vpack.c.bf16 %v7959_v39, %v7950_v9  ;;  %v3411_v33 = vpack.c.bf16 %v9953_v22, %v9952_v15  ;;  %v3958_v29 = vunpack.c.l.b16 %v3413_v62  ;;  %v3883_v28 = vpop.f32.mrf.mxu3  ;;  %v9958_v63 = vld [vmem:[#allocation58_spill] sm:$0xff]  ;;  %v9966_v54 = vld [vmem:[#allocation48_spill] sm:$0xff] }
 0x49c   : > { %v3159_v48 = vadd.f32 %v8049_v24, %v3158_v60  ;;  %v3960_v18 = vunpack.c.l.b16 %v3414_v23  ;;  %v3959_v26 = vunpack.c.h.b16 %v3413_v62  ;;  %v3990_v51 = vunpack.c.l.b16 %v3429_v5 }
 0x49d   : > { %v3193_v61 = vadd.f32 %v8020_v2, %v3192_v45  ;;  %v3992_v56 = vunpack.c.l.b16 %v3430_v37  ;;  %v3961_v42 = vunpack.c.h.b16 %v3414_v23  ;;  %v3991_v16 = vunpack.c.h.b16 %v3429_v5 }
 0x49e   : > { %4095 = vmatpush.bf16.msrb.mxu3 %v4036_v3  ;;  %4121 = vmatpush.bf16.msra.mxu1 %v4037_v30  ;;  %v3160_v39 = vrot.slane %v3159_v48, 4  ;;  %v4018_v9 = vpack.c.b16 %v3960_v18, %v3958_v29  ;;  %v3993_v12 = vunpack.c.h.b16 %v3430_v37  ;;  %v3412_v8 = vpack.c.bf16 %v9955_v25, %v9954_v53  ;;  %v9956_v30 = vld [vmem:[#allocation63_spill] sm:$0xff]  ;;  %v9959_v37 = vld [vmem:[#allocation86_spill] sm:$0xff] }
 0x49f   : > { %v3194_v13 = vadd.f32 %v8028_v58, %v3193_v61  ;;  %v4034_v52 = vpack.c.b16 %v3992_v56, %v3990_v51  ;;  %v4019_v24 = vpack.c.b16 %v3961_v42, %v3959_v26  ;;  %v3954_v46 = vunpack.c.l.b16 %v3411_v33  ;;  %v9970_v53 = vld [vmem:[#allocation31_spill] sm:$0xff] }
 0x4a0   : > { %v3161_v17 = vadd.f32 %v3160_v39, %v3159_v48  ;;  %4083 = vmatpush.bf16.msrb.mxu2 %v4018_v9  ;;  %v4035_v2 = vpack.c.b16 %v3993_v12, %v3991_v16  ;;  %v3427_v3 = vpack.c.bf16 %v7925_v21, %v7920_v4  ;;  %v3956_v57 = vunpack.c.l.b16 %v3412_v8  ;;  %v9964_v9 = vld [vmem:[#allocation89_spill] sm:$0xff] }
 0x4a1   : > { %v3195_v60 = vadd.f32 %v9956_v30, %v3194_v13  ;;  %4109 = vmatpush.bf16.msra.mxu0 %v4019_v24  ;;  %v3428_v58 = vpack.c.bf16 %v7935_v19, %v9957_v6  ;;  %v3955_v62 = vunpack.c.h.b16 %v3411_v33  ;;  %v2083_v10 = vmax.f32 %v2082_v34, %v9958_v63  ;;  %v8160_v48 = vpop.f32.mrf.mxu0  ;;  %v9961_v19 = vld [vmem:[#allocation68_spill] sm:$0xff]  ;;  %v9965_v12 = vld [vmem:[#allocation101_spill] sm:$0xff]  ;;  %v9967_v13 = vld [vmem:[#allocation83_spill] sm:$0xff] }
 0x4a2   : > { %4096 = vmatpush.bf16.msrb.mxu3 %v4034_v52  ;;  %4122 = vmatpush.bf16.msra.mxu1 %v4035_v2  ;;  %v3986_v23 = vunpack.c.l.b16 %v3427_v3  ;;  %v3957_v45 = vunpack.c.h.b16 %v3412_v8  ;;  %v3987_v5 = vunpack.c.h.b16 %v3427_v3  ;;  %v4016_v21 = vpack.c.b16 %v3956_v57, %v3954_v46  ;;  %v8162_v29 = vpop.f32.mrf.mxu1  ;;  %v9962_v33 = vld [vmem:[#allocation80_spill] sm:$0xff]  ;;  %v9968_v52 = vld [vmem:[#allocation90_spill] sm:$0xff] }
 0x4a3   : > { %v3196_v4 = vadd.f32 %v9959_v37, %v3195_v60  ;;  %v3988_v15 = vunpack.c.l.b16 %v3428_v58  ;;  %v3989_v22 = vunpack.c.h.b16 %v3428_v58  ;;  %9960 = vst [vmem:[#allocation20_spill] sm:$0xff] %v8162_v29  ;;  %v9963_v18 = vsub.f32 %v9961_v19, %v9962_v33  ;;  %v9976_v33 = vld [vmem:[#allocation99_spill] sm:$0xff] }
 0x4a4   : > { %v3162_v61 = vrot.slane %v3161_v17, 2  ;;  %v4017_v38 = vpack.c.b16 %v3957_v45, %v3955_v62  ;;  %v3339_v34 = vmul.f32 0.0, %v3323_v49  ;;  %4084 = vmatpush.bf16.msrb.mxu2 %v4016_v21  ;;  %v3882_v39 = vadd.f32 %v8120_v55, %v8118_v0  ;;  %v9969_v49 = vld [vmem:[#allocation15_spill] sm:$0xff]  ;;  %v9971_v55 = vld [vmem:[#allocation97_spill] sm:$0xff] }
 0x4a5   : > { %v2181_v26 = vmul.f32 1.442695, %v9963_v18  ;;  %v3197_v51 = vrot.slane %v3196_v4, 4  ;;  %v4032_v56 = vpack.c.b16 %v3988_v15, %v3986_v23  ;;  %v4033_v42 = vpack.c.b16 %v3989_v22, %v3987_v5  ;;  %v9975_v22 = vld [vmem:[#allocation11_spill] sm:$0xff] }
 0x4a6   : > { %v2120_v16 = vmax.f32 %v2119_v36, %v9964_v9  ;;  %4110 = vmatpush.bf16.msra.mxu0 %v4017_v38  ;;  %v3409_v28 = vpack.c.bf16 %v9966_v54, %v9965_v12  ;;  %v3410_v24 = vpack.c.bf16 %v9968_v52, %v9967_v13  ;;  %v3425_v25 = vpack.c.bf16 %v9970_v53, %v9969_v49  ;;  %v9979_v12 = vld [vmem:[#allocation37_spill] sm:$0xff]  ;;  %v9982_v49 = vld [vmem:[#allocation36_spill] sm:$0xff] }
 0x4a7   : > { %v3913_v8 = vunpack.c.h.b16 %v9946_v32  ;;  %v3198_v2 = vadd.f32 %v3197_v51, %v3196_v4  ;;  %4097 = vmatpush.bf16.msrb.mxu3 %v4032_v56  ;;  %4123 = vmatpush.bf16.msra.mxu1 %v4033_v42  ;;  %v8180_v0 = vadd.f32 %v3882_v39, %v3339_v34  ;;  %v3426_v36 = vpack.c.bf16 %v9972_v50, %v9971_v55  ;;  %v9978_v42 = vld [vmem:[#allocation93_spill] sm:$0xff]  ;;  %v9981_v32 = vld [vmem:[#allocation96_spill] sm:$0xff] }
 0x4a8   : > { %5175 = vpow2.f32 %v2181_v26  ;;  %v3950_v46 = vunpack.c.l.b16 %v3409_v28  ;;  %v3952_v3 = vunpack.c.l.b16 %v3410_v24  ;;  %v3982_v30 = vunpack.c.l.b16 %v3425_v25 }
 0x4a9   : > { %v3163_v60 = vadd.f32 %v3162_v61, %v3161_v17  ;;  %v3199_v57 = vrot.slane %v3198_v2, 2  ;;  %v3984_v6 = vunpack.c.l.b16 %v3426_v36  ;;  %v3951_v58 = vunpack.c.h.b16 %v3409_v28  ;;  %v8184_v21 = vpop.f32.mrf.mxu0  ;;  %v9980_v28 = vld [vmem:[#allocation72_spill] sm:$0xff] }
 0x4aa   : > { %v4014_v62 = vpack.c.b16 %v3952_v3, %v3950_v46  ;;  %v3953_v23 = vunpack.c.h.b16 %v3410_v24  ;;  %v3983_v45 = vunpack.c.h.b16 %v3425_v25  ;;  %v3985_v5 = vunpack.c.h.b16 %v3426_v36  ;;  %9973 = vst [vmem:[#allocation70_spill] sm:$0xff] %v8184_v21  ;;  %v8186_v15 = vpop.f32.mrf.mxu1  ;;  %v9983_v25 = vld [vmem:[#allocation74_spill] sm:$0xff]  ;;  %v9986_v46 = vld [vmem:[#allocation13_spill] sm:$0xff] }
 0x4ab   : > { %v3200_v37 = vadd.f32 %v3199_v57, %v3198_v2  ;;  %v4030_v4 = vpack.c.b16 %v3984_v6, %v3982_v30  ;;  %9974 = vst [vmem:[#allocation21_spill] sm:$0xff] %v8186_v15  ;;  %v2084_v19 = vmax.f32 %v2083_v10, %v9975_v22  ;;  %v2121_v18 = vmax.f32 %v2120_v16, %v9976_v33  ;;  %v2975_v10 = vld [vmem:[#allocation6 + $0x4] sm:$0x3]  ;;  %v9987_v30 = vld [vmem:[#allocation30_spill] sm:$0xff] }
 0x4ac   : > { %4085 = vmatpush.bf16.msrb.mxu2 %v4014_v62  ;;  %v4015_v26 = vpack.c.b16 %v3953_v23, %v3951_v58  ;;  %v4031_v17 = vpack.c.b16 %v3985_v5, %v3983_v45  ;;  %v3914_v61 = vpack.c.b16 %v3912_v14, %v3912_v14  ;;  %v3164_v38 = vrot.slane %v3163_v60, 1  ;;  %v9989_v58 = vld [vmem:[#allocation50_spill] sm:$0xff]  ;;  %v9990_v23 = vld [vmem:[#allocation61_spill] sm:$0xff]  ;;  %v9991_v5 = vld [vmem:[#allocation64_spill] sm:$0xff] }
 0x4ad   : > { %v3201_v34 = vrot.slane %v3200_v37, 1  ;;  %4098 = vmatpush.bf16.msrb.mxu3 %v4030_v4  ;;  %v3915_v56 = vpack.c.b16 %v3913_v8, %v3913_v8  ;;  %v2085_v39 = vmax.f32 %v2084_v19, %v9978_v42  ;;  %v2122_v54 = vmax.f32 %v2121_v18, %v9979_v12  ;;  %v9992_v4 = vld [vmem:[#allocation40_spill] sm:$0xff]  ;;  %v9993_v18 = vld [vmem:[#allocation98_spill] sm:$0xff] }
 0x4ae   : > { %v8193_v51 = vpop.eup %5175  ;;  %4111 = vmatpush.bf16.msra.mxu0 %v4015_v26  ;;  %4124 = vmatpush.bf16.msra.mxu1 %v4031_v17  ;;  %v3165_v14 = vadd.f32 %v3164_v38, %v3163_v60  ;;  %v9994_v17 = vld [vmem:[#allocation46_spill] sm:$0xff] }
 0x4af   : > { %9977 = vst [vmem:[#allocation56_spill] sm:$0xff] %v8193_v51  ;;  %v3202_v16 = vadd.f32 %v3201_v34, %v3200_v37  ;;  %4086 = vmatmul.bf16.vlgmr.msrb.gmra.mxu2 %v3914_v61  ;;  %v2086_v13 = vmax.f32 %v2085_v39, %v9980_v28  ;;  %v2123_v52 = vmax.f32 %v2122_v54, %v9981_v32  ;;  %v9998_v54 = vld [vmem:[#allocation62_spill] sm:$0xff] }
 0x4b0   : > { %4099 = vmatmul.bf16.vlgmr.msrb.gmra.mxu3 %v3915_v56  ;;  %v2979_v2 = vmul.f32 %v8193_v51, %v2975_v10 }
 0x4b1   : > { %v3287_v24 = vrot.slane %v3202_v16, 7  ;;  %4112 = vmatmul.bf16.vlgmr.msra.gmra.mxu0 %v3914_v61  ;;  %4125 = vmatmul.bf16.vlgmr.msra.gmra.mxu1 %v3915_v56  ;;  %v2087_v53 = vmax.f32 %v2086_v13, %v9982_v49  ;;  %v2124_v8 = vmax.f32 %v2123_v52, %v9983_v25  ;;  %v8203_v50 = vpop.f32.mrf.mxu0  ;;  %v9997_v56 = vld [vmem:[#allocation47_spill] sm:$0xff]  ;;  %v9999_v16 = vld [vmem:[#allocation66_spill] sm:$0xff]  ;;  %v10000_v52 = vld [vmem:[#allocation73_spill] sm:$0xff] }
 0x4b2   : > { %9984 = vst [vmem:[#allocation25_spill] sm:$0xff] %v8203_v50  ;;  %v8205_v36 = vpop.f32.mrf.mxu1 }
 0x4b3   : > { %v3291_v55 = vsel %vm2160_vm5, %v3165_v14, %v3287_v24  ;;  %9985 = vst [vmem:[#allocation77_spill] sm:$0xff] %v8205_v36  ;;  %v2088_v3 = vmax.f32 %v2087_v53, %v9986_v46  ;;  %v2125_v57 = vmax.f32 %v2124_v8, %v9987_v30  ;;  %v10001_v24 = vld [vmem:[#allocation78_spill] sm:$0xff]  ;;  %v10002_v8 = vld [vmem:[#allocation16_spill] sm:$0xff] }
 0x4b4   : > { %v3299_v60 = vadd.f32 %v3291_v55, %v2979_v2 }
 0x4b5   : > { %v2089_v62 = vmax.f32 %v2088_v3, %v9989_v58  ;;  %v2126_v45 = vmax.f32 %v2125_v57, %v9990_v23 }
 0x4b6   : > { %3307 = vst.msk [vmem:[#allocation6 + $0x4] sm:$0x3] %vm5906_vm4, %v3299_v60 }
 0x4b7   : > { %v2090_v37 = vmax.f32 %v2089_v62, %v9991_v5  ;;  %v2127_v19 = vmax.f32 %v2126_v45, %v9992_v4 }
 0x4b9   : > { %v2091_v26 = vmax.f32 %v2090_v37, %v9993_v18  ;;  %v2128_v61 = vmax.f32 %v2127_v19, %v9994_v17  ;;  %v8217_v38 = vpop.f32.mrf.mxu0 }
 0x4ba   : > { %9995 = vst [vmem:[#allocation41_spill] sm:$0xff] %v8217_v38  ;;  %v8219_v34 = vpop.f32.mrf.mxu1 }
 0x4bb   : > { %9996 = vst [vmem:[#allocation27_spill] sm:$0xff] %v8219_v34  ;;  %v2092_v39 = vmax.f32 %v2091_v26, %v9997_v56  ;;  %v2129_v10 = vmax.f32 %v2128_v61, %v9998_v54 }
 0x4bd   : > { %v2093_v13 = vmax.f32 %v2092_v39, %v9999_v16  ;;  %v2130_v14 = vmax.f32 %v2129_v10, %v10000_v52 }
 0x4bf   : > { %v2094_v53 = vmax.f32 %v2093_v13, %v10001_v24  ;;  %v2131_v2 = vmax.f32 %v2130_v14, %v10002_v8 }
 0x4c1   : > { %v2095_v55 = vmax.f32 %v2094_v53, %v8077_v27  ;;  %v2132_v3 = vmax.f32 %v2131_v2, %v8079_v20  ;;  %v8229_v57 = vpop.f32.mrf.mxu0 }
 0x4c2   : > { %10003 = vst [vmem:[#allocation65_spill] sm:$0xff] %v8229_v57  ;;  %v8231_v60 = vpop.f32.mrf.mxu1 }
 0x4c3   : > { %10004 = vst [vmem:[#allocation8_spill] sm:$0xff] %v8231_v60  ;;  %v2096_v62 = vmax.f32 %v2095_v55, %v8108_v41  ;;  %v2133_v45 = vmax.f32 %v2132_v3, %v8110_v40 }
 0x4c5   : > { %v2097_v37 = vmax.f32 %v2096_v62, %v8141_v47  ;;  %v2134_v19 = vmax.f32 %v2133_v45, %v8143_v11 }
 0x4c7   : > { %v2098_v26 = vmax.f32 %v2097_v37, %v8160_v48  ;;  %v2135_v61 = vmax.f32 %v2134_v19, %v8162_v29 }
 0x4c9   : > { %v2099_v39 = vmax.f32 %v2098_v26, %v8184_v21  ;;  %v2136_v10 = vmax.f32 %v2135_v61, %v8186_v15  ;;  %v8241_v13 = vpop.f32.mrf.mxu0  ;;  %v10031_v21 = vld [vmem:[#allocation10_spill] sm:$0xff] }
 0x4ca   : > { %10005 = vst [vmem:[#allocation24_spill] sm:$0xff] %v8241_v13  ;;  %v8243_v14 = vpop.f32.mrf.mxu1 }
 0x4cb   : > { %10006 = vst [vmem:[#allocation28_spill] sm:$0xff] %v8243_v14  ;;  %v2100_v53 = vmax.f32 %v2099_v39, %v8203_v50  ;;  %v2137_v2 = vmax.f32 %v2136_v10, %v8205_v36 }
 0x4cd   : > { %v2101_v55 = vmax.f32 %v2100_v53, %v8217_v38  ;;  %v2138_v3 = vmax.f32 %v2137_v2, %v8219_v34 }
 0x4cf   : > { %v2102_v62 = vmax.f32 %v2101_v55, %v8229_v57  ;;  %v2139_v45 = vmax.f32 %v2138_v3, %v8231_v60 }
 0x4d1   : > { %v2103_v37 = vmax.f32 %v2102_v62, %v8241_v13  ;;  %v2140_v19 = vmax.f32 %v2139_v45, %v8243_v14  ;;  %v8253_v26 = vpop.f32.mrf.mxu0  ;;  %v8259_v14 = vld [vmem:[#allocation5 + $0x6] sm:$0x3] }
 0x4d2   : > { %10007 = vst [vmem:[#allocation92_spill] sm:$0xff] %v8253_v26  ;;  %v8255_v61 = vpop.f32.mrf.mxu1 }
 0x4d3   : > { %10008 = vst [vmem:[#allocation26_spill] sm:$0xff] %v8255_v61  ;;  %v2104_v39 = vmax.f32 %v2103_v37, %v8253_v26  ;;  %v2141_v10 = vmax.f32 %v2140_v19, %v8255_v61  ;;  %v10025_v26 = vld [vmem:[#allocation54_spill] sm:$0xff] }
 0x4d4   : > { %10009 = vst [vmem:[#allocation33_spill] sm:$0xff] %v8259_v14 }
 0x4d5   : > { %v2105_v51 = vrot.slane %v2104_v39, 4  ;;  %v2142_v53 = vrot.slane %v2141_v10, 4 }
 0x4d7   : > { %v2106_v8 = vmax.f32 %v2104_v39, %v2105_v51  ;;  %v2143_v2 = vmax.f32 %v2141_v10, %v2142_v53  ;;  %v3324_v39 = vperm.slane %v9951_v31, 1  ;;  %v10014_v10 = vld [vmem:[#allocation22_spill] sm:$0xff] }
 0x4d9   : > { %v2107_v34 = vrot.slane %v2106_v8, 2  ;;  %v2144_v55 = vrot.slane %v2143_v2, 2 }
 0x4db   : > { %v2108_v57 = vmax.f32 %v2106_v8, %v2107_v34  ;;  %v2145_v3 = vmax.f32 %v2143_v2, %v2144_v55  ;;  %v4372_v34 = vld [vmem:[#allocation6] sm:$0x3]  ;;  %v4373_v8 = vld [vmem:[#allocation6 + $0x2] sm:$0x3]  ;;  %v10015_v2 = vld [vmem:[#allocation102_spill] sm:$0xff] }
 0x4dc   : > { %5177 = vrcp.f32 %v4372_v34 }
 0x4dd   : > { %v2109_v60 = vrot.slane %v2108_v57, 1  ;;  %v2146_v62 = vrot.slane %v2145_v3, 1  ;;  %5179 = vrcp.f32 %v4373_v8  ;;  %v10017_v8 = vld [vmem:[#allocation42_spill] sm:$0xff] }
 0x4df   : > { %v2147_v13 = vmax.f32 %v2145_v3, %v2146_v62  ;;  %v2110_v45 = vmax.f32 %v2108_v57, %v2109_v60 }
 0x4e1   : > { %v2159_v38 = vrot.slane %v2147_v13, 7  ;;  %v10013_v13 = vld [vmem:[#allocation29_spill] sm:$0xff] }
 0x4e2   : > { %v3322_v19 = vperm.slane %v10013_v13, 1  ;;  %v10018_v13 = vld [vmem:[#allocation32_spill] sm:$0xff] }
 0x4e3   : > { %v2164_v36 = vsel %vm2160_vm5, %v2110_v45, %v2159_v38  ;;  %v8276_v38 = vpop.eup %5177  ;;  %v10016_v45 = vld [vmem:[#allocation39_spill] sm:$0xff] }
 0x4e4   : > { %v8263_v37 = vmax.f32 %v8259_v14, %v2164_v36  ;;  %10011 = vst [vmem:[#allocation85_spill] sm:$0xff] %v8276_v38  ;;  %v8278_v36 = vpop.eup %5179  ;;  %v4392_v3 = vperm.slane %v8276_v38, 0  ;;  %v8292_v6 = vmul.f32 0.0, %v3322_v19  ;;  %v8302_v14 = vmul.f32 0.0, %v3324_v39  ;;  %v10023_v38 = vld [vmem:[#allocation45_spill] sm:$0xff]  ;;  %v10028_v39 = vld [vmem:[#allocation67_spill] sm:$0xff] }
 0x4e5   : > { %10012 = vst [vmem:[#allocation81_spill] sm:$0xff] %v8278_v36  ;;  %v4394_v62 = vperm.slane %v8278_v36, 0 }
 0x4e6   : > { %10010 = vst [vmem:[#allocation55_spill] sm:$0xff] %v8263_v37  ;;  %v8271_v57 = vperm.slane %v8263_v37, 0  ;;  %v8274_v60 = vperm.slane %v8263_v37, 1  ;;  %v8295_v31 = vmul.f32 %v4392_v3, %v10018_v13  ;;  %v10026_v13 = vld [vmem:[#allocation59_spill] sm:$0xff] }
 0x4e7   : > { %4368 = vst.msk [vmem:[#allocation5 + $0x6] sm:$0x3] %vm5906_vm4, %v8263_v37 }
 0x4e8   : > { %v2397_v53 = vsub.f32 %v10014_v10, %v8271_v57  ;;  %v2398_v55 = vsub.f32 %v10015_v2, %v8274_v60  ;;  %v2399_v34 = vsub.f32 %v10016_v45, %v8271_v57  ;;  %v2400_v51 = vsub.f32 %v10017_v8, %v8274_v60  ;;  %10019 = vst [vmem:[#allocation82_spill] sm:$0xff] %v8295_v31  ;;  %v10021_v2 = vld [vmem:[#allocation44_spill] sm:$0xff]  ;;  %v10024_v45 = vld [vmem:[#allocation53_spill] sm:$0xff] }
 0x4e9   : > { %v8298_v10 = vmul.f32 %v4394_v62, %v8180_v0  ;;  %v2401_v37 = vsub.f32 %v10021_v2, %v8271_v57  ;;  %10022 = vst [vmem:[#allocation100_spill] sm:$0xff] %v8302_v14  ;;  %v2402_v36 = vsub.f32 %v10023_v38, %v8274_v60  ;;  %v2403_v61 = vsub.f32 %v10024_v45, %v8271_v57  ;;  %v10027_v62 = vld [vmem:[#allocation60_spill] sm:$0xff]  ;;  %v10029_v38 = vld [vmem:[#allocation19_spill] sm:$0xff] }
 0x4ea   : > { %v2845_v8 = vmul.f32 1.442695, %v2397_v53  ;;  %v2847_v19 = vmul.f32 1.442695, %v2398_v55  ;;  %v2404_v3 = vsub.f32 %v10025_v26, %v8274_v60  ;;  %v2405_v0 = vsub.f32 %v10026_v13, %v8271_v57  ;;  %v10030_v45 = vld [vmem:[#allocation79_spill] sm:$0xff] }
 0x4eb   : > { %10020 = vst [vmem:[#allocation12_spill] sm:$0xff] %v8298_v10  ;;  %v2406_v50 = vsub.f32 %v10027_v62, %v8274_v60  ;;  %v2849_v2 = vmul.f32 1.442695, %v2399_v34  ;;  %v2407_v14 = vsub.f32 %v10028_v39, %v8271_v57  ;;  %v2408_v15 = vsub.f32 %v10029_v38, %v8274_v60 }
 0x4ec   : > { %v2409_v53 = vsub.f32 %v10030_v45, %v8271_v57  ;;  %v2851_v55 = vmul.f32 1.442695, %v2400_v51  ;;  %v2410_v26 = vsub.f32 %v10031_v21, %v8274_v60  ;;  %v2411_v13 = vsub.f32 %v7476_v44, %v8271_v57 }
 0x4ed   : > { %5181 = vpow2.f32 %v2845_v8  ;;  %v2853_v29 = vmul.f32 1.442695, %v2401_v37  ;;  %v2412_v34 = vsub.f32 %v7478_v59, %v8274_v60  ;;  %v2413_v62 = vsub.f32 %v9938_v35, %v8271_v57 }
 0x4ee   : > { %5183 = vpow2.f32 %v2847_v19  ;;  %v2855_v39 = vmul.f32 1.442695, %v2402_v36  ;;  %v2414_v38 = vsub.f32 %v9940_v7, %v8274_v60  ;;  %v2415_v51 = vsub.f32 %v9942_v43, %v8271_v57 }
 0x4ef   : > { %5185 = vpow2.f32 %v2849_v2  ;;  %v2857_v21 = vmul.f32 1.442695, %v2403_v61  ;;  %v2416_v44 = vsub.f32 %v9945_v1, %v8274_v60  ;;  %v2417_v37 = vsub.f32 %v9958_v63, %v8271_v57 }
 0x4f0   : > { %5187 = vpow2.f32 %v2851_v55  ;;  %v2859_v59 = vmul.f32 1.442695, %v2404_v3  ;;  %v2418_v35 = vsub.f32 %v9964_v9, %v8274_v60  ;;  %v2419_v36 = vsub.f32 %v9975_v22, %v8271_v57  ;;  %v3688_v3 = vpop.f32.mrf.mxu1  ;;  %v10044_v22 = vld [vmem:[#allocation70_spill] sm:$0xff] }
 0x4f1   : > { %5189 = vpow2.f32 %v2853_v29  ;;  %v2861_v7 = vmul.f32 1.442695, %v2405_v0  ;;  %v2863_v1 = vmul.f32 1.442695, %v2406_v50  ;;  %v2865_v2 = vmul.f32 1.442695, %v2407_v14 }
 0x4f2   : > { %5191 = vpow2.f32 %v2855_v39  ;;  %v2867_v50 = vmul.f32 1.442695, %v2408_v15  ;;  %v2869_v14 = vmul.f32 1.442695, %v2409_v53  ;;  %v2871_v15 = vmul.f32 1.442695, %v2410_v26 }
 0x4f3   : > { %v8344_v8 = vpop.eup %5181  ;;  %5193 = vpow2.f32 %v2857_v21  ;;  %v2873_v53 = vmul.f32 1.442695, %v2411_v13  ;;  %v2875_v26 = vmul.f32 1.442695, %v2412_v34  ;;  %v2877_v13 = vmul.f32 1.442695, %v2413_v62 }
 0x4f4   : > { %10032 = vst [vmem:[#allocation51_spill] sm:$0xff] %v8344_v8  ;;  %v8350_v29 = vpop.eup %5183  ;;  %5195 = vpow2.f32 %v2859_v59  ;;  %v2879_v0 = vmul.f32 1.442695, %v2414_v38  ;;  %v2881_v62 = vmul.f32 1.442695, %v2415_v51  ;;  %v10049_v63 = vsub.f32 %v9980_v28, %v8271_v57 }
 0x4f5   : > { %10033 = vst [vmem:[#allocation52_spill] sm:$0xff] %v8350_v29  ;;  %v8356_v55 = vpop.eup %5185  ;;  %5197 = vpow2.f32 %v2861_v7  ;;  %v2883_v38 = vmul.f32 1.442695, %v2416_v44  ;;  %v2885_v51 = vmul.f32 1.442695, %v2417_v37  ;;  %v10058_v39 = vsub.f32 %v9983_v25, %v8274_v60 }
 0x4f6   : > { %10034 = vst [vmem:[#allocation57_spill] sm:$0xff] %v8356_v55  ;;  %v8362_v21 = vpop.eup %5187  ;;  %5199 = vpow2.f32 %v2863_v1  ;;  %v2889_v37 = vmul.f32 1.442695, %v2419_v36  ;;  %v2897_v36 = vmul.f32 1.442695, %v10049_v63  ;;  %v10063_v25 = vsub.f32 %v9976_v33, %v8274_v60 }
 0x4f7   : > { %10035 = vst [vmem:[#allocation23_spill] sm:$0xff] %v8362_v21  ;;  %v8368_v59 = vpop.eup %5189  ;;  %5201 = vpow2.f32 %v2865_v2  ;;  %v3675_v2 = vpop.f32.mrf.mxu0  ;;  %v10064_v63 = vsub.f32 %v9987_v30, %v8274_v60  ;;  %v10067_v33 = vsub.f32 %v9991_v5, %v8271_v57  ;;  %v10068_v30 = vsub.f32 %v9992_v4, %v8274_v60 }
 0x4f8   : > { %10036 = vst [vmem:[#allocation43_spill] sm:$0xff] %v8368_v59  ;;  %v8374_v7 = vpop.eup %5191  ;;  %5203 = vpow2.f32 %v2867_v50  ;;  %v3689_v61 = vadd.f32 %v3688_v3, %v3675_v2  ;;  %v3690_v9 = vpop.f32.mrf.mxu1  ;;  %v10071_v5 = vsub.f32 %v9997_v56, %v8271_v57  ;;  %v10072_v4 = vsub.f32 %v9998_v54, %v8274_v60 }
 0x4f9   : > { %10037 = vst [vmem:[#allocation34_spill] sm:$0xff] %v8374_v7  ;;  %v8380_v1 = vpop.eup %5193  ;;  %5205 = vpow2.f32 %v2869_v14  ;;  %v10061_v9 = vsub.f32 %v9986_v46, %v8271_v57  ;;  %v10065_v46 = vsub.f32 %v9989_v58, %v8271_v57  ;;  %v3203_v56 = vadd.f32 %v8356_v55, %v8344_v8 }
 0x4fa   : > { %10038 = vst [vmem:[#allocation18_spill] sm:$0xff] %v8380_v1  ;;  %v8386_v19 = vpop.eup %5195  ;;  %5207 = vpow2.f32 %v2871_v15  ;;  %v8401_v3 = vadd.f32 %v3689_v61, %v8292_v6  ;;  %v2887_v61 = vmul.f32 1.442695, %v2418_v35  ;;  %v10042_v35 = vsub.f32 %v9978_v42, %v8271_v57  ;;  %v10047_v42 = vld [vmem:[#allocation21_spill] sm:$0xff] }
 0x4fb   : > { %v8390_v50 = vpop.eup %5197  ;;  %5209 = vpow2.f32 %v2873_v53  ;;  %v10048_v15 = vld [vmem:[#allocation25_spill] sm:$0xff]  ;;  %v10075_v54 = vsub.f32 %v10001_v24, %v8271_v57  ;;  %v3204_v24 = vadd.f32 %v8368_v59, %v3203_v56 }
 0x4fc   : > { %10039 = vst [vmem:[#allocation49_spill] sm:$0xff] %v8390_v50  ;;  %v8396_v14 = vpop.eup %5199  ;;  %5211 = vpow2.f32 %v2875_v26 }
 0x4fd   : > { %10040 = vst [vmem:[#allocation75_spill] sm:$0xff] %v8401_v3  ;;  %v8403_v2 = vpop.eup %5201  ;;  %5213 = vpow2.f32 %v2877_v13  ;;  %v2893_v13 = vmul.f32 1.442695, %v10042_v35  ;;  %v10052_v35 = vsub.f32 %v9981_v32, %v8274_v60  ;;  %v10057_v32 = vld [vmem:[#allocation24_spill] sm:$0xff] }
 0x4fe   : > { %10041 = vst [vmem:[#allocation84_spill] sm:$0xff] %v8403_v2  ;;  %v8412_v53 = vpop.eup %5203  ;;  %5215 = vpow2.f32 %v2879_v0  ;;  %v10045_v0 = vsub.f32 %v9979_v12, %v8274_v60  ;;  %v2903_v12 = vmul.f32 1.442695, %v10058_v39  ;;  %v2891_v39 = vmul.f32 1.442695, %v10063_v25 }
 0x4ff   : > { %v8421_v26 = vpop.eup %5205  ;;  %5217 = vpow2.f32 %v2881_v62  ;;  %v10043_v62 = vld [vmem:[#allocation20_spill] sm:$0xff]  ;;  %v3677_v34 = vpop.f32.mrf.mxu0  ;;  %v2899_v45 = vmul.f32 1.442695, %v10052_v35  ;;  %v2913_v25 = vmul.f32 1.442695, %v10067_v33 }
 0x500   : > { %v8430_v44 = vpop.eup %5207  ;;  %5219 = vpow2.f32 %v2883_v38  ;;  %v2895_v43 = vmul.f32 1.442695, %v10045_v0  ;;  %v10051_v34 = vld [vmem:[#allocation41_spill] sm:$0xff]  ;;  %v10055_v0 = vsub.f32 %v9982_v49, %v8271_v57  ;;  %v2923_v33 = vmul.f32 1.442695, %v10072_v4 }
 0x501   : > { %v8439_v6 = vpop.eup %5209  ;;  %5221 = vpow2.f32 %v2885_v51 }
 0x502   : > { %v8448_v38 = vpop.eup %5211  ;;  %5223 = vpow2.f32 %v2887_v61  ;;  %v10053_v61 = vld [vmem:[#allocation27_spill] sm:$0xff]  ;;  %v2901_v10 = vmul.f32 1.442695, %v10055_v0 }
 0x503   : > { %10046 = vst [vmem:[#allocation71_spill] sm:$0xff] %v8448_v38  ;;  %v8457_v51 = vpop.eup %5213  ;;  %5225 = vpow2.f32 %v2889_v37  ;;  %v2905_v37 = vmul.f32 1.442695, %v10061_v9  ;;  %v10066_v9 = vsub.f32 %v9990_v23, %v8274_v60 }
 0x504   : > { %v8466_v31 = vpop.eup %5215  ;;  %5227 = vpow2.f32 %v2893_v13  ;;  %v2907_v13 = vmul.f32 1.442695, %v10064_v63  ;;  %v2915_v63 = vmul.f32 1.442695, %v10068_v30 }
 0x505   : > { %v8475_v3 = vpop.eup %5217  ;;  %5229 = vpow2.f32 %v2895_v43  ;;  %v2911_v35 = vmul.f32 1.442695, %v10066_v9  ;;  %v3907_v43 = vpop.f32.mrf.mxu1 }
 0x506   : > { %v8484_v38 = vpop.eup %5219  ;;  %5231 = vpow2.f32 %v2897_v36  ;;  %v2909_v36 = vmul.f32 1.442695, %v10065_v46  ;;  %v10070_v46 = vsub.f32 %v9994_v17, %v8274_v60  ;;  %v10073_v17 = vsub.f32 %v9999_v16, %v8271_v57  ;;  %v10077_v16 = vld [vmem:[#allocation100_spill] sm:$0xff] }
 0x507   : > { %v8493_v28 = vpop.eup %5221  ;;  %5233 = vpow2.f32 %v2899_v45  ;;  %v3894_v9 = vpop.f32.mrf.mxu0 }
 0x508   : > { %v8503_v0 = vpop.eup %5223  ;;  %5235 = vpow2.f32 %v2901_v10  ;;  %v10069_v10 = vsub.f32 %v9993_v18, %v8271_v57  ;;  %v2919_v23 = vmul.f32 1.442695, %v10070_v46  ;;  %v3908_v30 = vadd.f32 %v3907_v43, %v3894_v9 }
 0x509   : > { %v8514_v45 = vpop.eup %5225  ;;  %5237 = vpow2.f32 %v2903_v12  ;;  %v2921_v12 = vmul.f32 1.442695, %v10071_v5  ;;  %v10074_v46 = vsub.f32 %v10000_v52, %v8274_v60  ;;  %v2929_v43 = vmul.f32 1.442695, %v10075_v54 }
 0x50a   : > { %v2917_v58 = vmul.f32 1.442695, %v10069_v10  ;;  %v8525_v49 = vpop.eup %5227  ;;  %5239 = vpow2.f32 %v2905_v37  ;;  %v2925_v10 = vmul.f32 1.442695, %v10073_v17  ;;  %v8552_v4 = vadd.f32 %v3908_v30, %v10077_v16 }
 0x50b   : > { %v8533_v18 = vpop.eup %5229  ;;  %5241 = vpow2.f32 %v2907_v13  ;;  %v2927_v37 = vmul.f32 1.442695, %v10074_v46  ;;  %v10076_v13 = vsub.f32 %v8077_v27, %v8271_v57  ;;  %v10078_v52 = vsub.f32 %v8079_v20, %v8274_v60 }
 0x50c   : > { %v8543_v5 = vpop.eup %5231  ;;  %5243 = vpow2.f32 %v2891_v39  ;;  %v10079_v39 = vsub.f32 %v8108_v41, %v8271_v57  ;;  %v10080_v27 = vsub.f32 %v8110_v40, %v8274_v60  ;;  %v10082_v41 = vsub.f32 %v8143_v11, %v8274_v60 }
 0x50d   : > { %v2933_v9 = vmul.f32 1.442695, %v10076_v13  ;;  %v8554_v17 = vpop.eup %5233  ;;  %5245 = vpow2.f32 %v2909_v36  ;;  %v2935_v46 = vmul.f32 1.442695, %v10078_v52  ;;  %v10081_v36 = vsub.f32 %v8141_v47, %v8271_v57 }
 0x50e   : > { %v8562_v55 = vmul.f32 1.442695, %v10079_v39  ;;  %v8565_v54 = vpop.eup %5235  ;;  %5247 = vpow2.f32 %v2911_v35  ;;  %v8570_v30 = vmul.f32 1.442695, %v10080_v27  ;;  %v8580_v13 = vmul.f32 1.442695, %v10082_v41 }
 0x50f   : > { %v8575_v20 = vmul.f32 1.442695, %v10081_v36  ;;  %v8582_v16 = vpop.eup %5237  ;;  %5249 = vpow2.f32 %v2913_v25  ;;  %v10083_v35 = vsub.f32 %v8160_v48, %v8271_v57  ;;  %v10084_v40 = vsub.f32 %v10043_v62, %v8274_v60 }
 0x510   : > { %v3205_v47 = vadd.f32 %v8380_v1, %v3204_v24  ;;  %v8595_v39 = vpop.eup %5239  ;;  %5251 = vpow2.f32 %v2915_v63  ;;  %v10085_v11 = vsub.f32 %v10044_v22, %v8271_v57  ;;  %v10086_v48 = vsub.f32 %v10047_v42, %v8274_v60 }
 0x511   : > { %v8587_v56 = vmul.f32 1.442695, %v10083_v35  ;;  %v8592_v52 = vmul.f32 1.442695, %v10084_v40  ;;  %v10087_v62 = vsub.f32 %v10048_v15, %v8271_v57  ;;  %v8612_v41 = vpop.eup %5241  ;;  %5253 = vpow2.f32 %v2917_v58  ;;  %v3896_v40 = vpop.f32.mrf.mxu0 }
 0x512   : > { %v8600_v27 = vmul.f32 1.442695, %v10085_v11  ;;  %v8605_v25 = vmul.f32 1.442695, %v10086_v48  ;;  %v10088_v63 = vsub.f32 %v10051_v34, %v8271_v57  ;;  %v10089_v22 = vsub.f32 %v10053_v61, %v8274_v60  ;;  %v3909_v11 = vpop.f32.mrf.mxu1  ;;  %v8625_v15 = vpop.eup %5243 }
 0x513   : > { %v8610_v36 = vmul.f32 1.442695, %v10087_v62  ;;  %v3206_v42 = vadd.f32 %v8390_v50, %v3205_v47  ;;  %5255 = vpow2.f32 %v2919_v23  ;;  %v3240_v58 = vadd.f32 %v8362_v21, %v8350_v29  ;;  %v8633_v62 = vpop.eup %5245 }
 0x514   : > { %v8617_v24 = vmul.f32 1.442695, %v10088_v63  ;;  %v8622_v35 = vmul.f32 1.442695, %v10089_v22  ;;  %v3455_v34 = vpack.c.bf16 %v8582_v16, %v8565_v54  ;;  %v3456_v48 = vpack.c.bf16 %v8612_v41, %v8595_v39  ;;  %v8640_v63 = vpop.eup %5247 }
 0x515   : > { %5257 = vpow2.f32 %v2921_v12  ;;  %v3207_v61 = vadd.f32 %v8403_v2, %v3206_v42  ;;  %v3453_v47 = vpack.c.bf16 %v8533_v18, %v8525_v49  ;;  %v3454_v23 = vpack.c.bf16 %v8554_v17, %v8543_v5  ;;  %10090 = vst [vmem:[#allocation14_spill] sm:$0xff] %v8640_v63  ;;  %v8643_v21 = vpop.eup %5249 }
 0x516   : > { %5259 = vpow2.f32 %v2923_v33  ;;  %v3241_v22 = vadd.f32 %v8374_v7, %v3240_v58  ;;  %v4197_v40 = vunpack.c.l.b16 %v3455_v34  ;;  %v4199_v11 = vunpack.c.l.b16 %v3456_v48  ;;  %v8646_v8 = vpop.eup %5251 }
 0x517   : > { %5261 = vpow2.f32 %v2925_v10  ;;  %v3208_v12 = vadd.f32 %v8421_v26, %v3207_v61  ;;  %v4198_v29 = vunpack.c.h.b16 %v3455_v34  ;;  %v4200_v42 = vunpack.c.h.b16 %v3456_v48  ;;  %v8649_v50 = vpop.eup %5253 }
 0x518   : > { %5263 = vpow2.f32 %v2927_v37  ;;  %v3242_v1 = vadd.f32 %v8386_v19, %v3241_v22  ;;  %v4247_v59 = vpack.c.b16 %v4199_v11, %v4197_v40  ;;  %v4193_v2 = vunpack.c.l.b16 %v3453_v47 }
 0x519   : > { %5265 = vpow2.f32 %v2929_v43  ;;  %v3209_v33 = vadd.f32 %v8439_v6, %v3208_v12  ;;  %v4248_v58 = vpack.c.b16 %v4200_v42, %v4198_v29  ;;  %v4195_v7 = vunpack.c.l.b16 %v3454_v23  ;;  %v8652_v63 = vpop.eup %5255 }
 0x51a   : > { %5267 = vpow2.f32 %v2933_v9  ;;  %v3243_v10 = vadd.f32 %v8396_v14, %v3242_v1  ;;  %4297 = vmatpush.bf16.msra.mxu2 %v4247_v59  ;;  %v4194_v34 = vunpack.c.h.b16 %v3453_v47  ;;  %v4196_v48 = vunpack.c.h.b16 %v3454_v23 }
 0x51b   : > { %v8655_v37 = vpop.eup %5257  ;;  %5269 = vpow2.f32 %v2935_v46  ;;  %v3210_v61 = vadd.f32 %v8457_v51, %v3209_v33  ;;  %4323 = vmatpush.bf16.msrb.mxu0 %v4248_v58  ;;  %v4245_v22 = vpack.c.b16 %v4195_v7, %v4193_v2  ;;  %v3451_v43 = vpack.c.bf16 %v8503_v0, %v8493_v28 }
 0x51c   : > { %v8660_v29 = vpop.eup %5259  ;;  %5271 = vpow2.f32 %v8562_v55  ;;  %v3244_v9 = vadd.f32 %v8412_v53, %v3243_v10  ;;  %v4246_v1 = vpack.c.b16 %v4196_v48, %v4194_v34  ;;  %v3452_v59 = vpack.c.bf16 %v8625_v15, %v8514_v45  ;;  %v10093_v48 = vld [vmem:[#allocation71_spill] sm:$0xff] }
 0x51d   : > { %v8666_v47 = vpop.eup %5261  ;;  %5273 = vpow2.f32 %v8570_v30  ;;  %v3211_v46 = vadd.f32 %v8475_v3, %v3210_v61  ;;  %v4189_v7 = vunpack.c.l.b16 %v3451_v43  ;;  %v4190_v2 = vunpack.c.h.b16 %v3451_v43 }
 0x51e   : > { %v8670_v23 = vpop.eup %5263  ;;  %5275 = vpow2.f32 %v8575_v20  ;;  %v3245_v55 = vadd.f32 %v8430_v44, %v3244_v9  ;;  %4298 = vmatpush.bf16.msra.mxu2 %v4245_v22  ;;  %v4191_v40 = vunpack.c.l.b16 %v3452_v59  ;;  %v4192_v11 = vunpack.c.h.b16 %v3452_v59  ;;  %v10091_v20 = vld [vmem:[#allocation65_spill] sm:$0xff] }
 0x51f   : > { %v8674_v12 = vpop.eup %5265  ;;  %5277 = vpow2.f32 %v8580_v13  ;;  %v3212_v42 = vadd.f32 %v8493_v28, %v3211_v46  ;;  %4324 = vmatpush.bf16.msrb.mxu0 %v4246_v1  ;;  %v3449_v30 = vpack.c.bf16 %v8466_v31, %v8457_v51  ;;  %v3450_v33 = vpack.c.bf16 %v8484_v38, %v8475_v3 }
 0x520   : > { %v8682_v58 = vpop.eup %5267  ;;  %5279 = vpow2.f32 %v8587_v56  ;;  %v10092_v10 = vsub.f32 %v10091_v20, %v8271_v57  ;;  %v3246_v61 = vadd.f32 %v10093_v48, %v3245_v55  ;;  %v4243_v13 = vpack.c.b16 %v4191_v40, %v4189_v7  ;;  %v10094_v7 = vld [vmem:[#allocation8_spill] sm:$0xff] }
 0x521   : > { %v8689_v22 = vpop.eup %5269  ;;  %v3213_v28 = vadd.f32 %v8514_v45, %v3212_v42  ;;  %v4244_v43 = vpack.c.b16 %v4192_v11, %v4190_v2  ;;  %v4185_v51 = vunpack.c.l.b16 %v3449_v30  ;;  %v4187_v9 = vunpack.c.l.b16 %v3450_v33 }
 0x522   : > { %v2961_v34 = vmul.f32 1.442695, %v10092_v10  ;;  %v8692_v1 = vpop.eup %5271  ;;  %5281 = vpow2.f32 %v8592_v52  ;;  %v3247_v3 = vadd.f32 %v8466_v31, %v3246_v61  ;;  %4299 = vmatpush.bf16.msra.mxu2 %v4243_v13  ;;  %v4186_v56 = vunpack.c.h.b16 %v3449_v30 }
 0x523   : > { %v4188_v59 = vunpack.c.h.b16 %v3450_v33  ;;  %v8696_v46 = vpop.eup %5273  ;;  %5283 = vpow2.f32 %v8600_v27  ;;  %v10095_v55 = vsub.f32 %v10094_v7, %v8274_v60  ;;  %v3214_v2 = vadd.f32 %v8525_v49, %v3213_v28  ;;  %4325 = vmatpush.bf16.msrb.mxu0 %v4244_v43 }
 0x524   : > { %v8705_v40 = vpack.c.bf16 %v8430_v44, %v8421_v26  ;;  %v8707_v52 = vpop.eup %5275  ;;  %5285 = vpow2.f32 %v8605_v25  ;;  %v3248_v31 = vadd.f32 %v8484_v38, %v3247_v3  ;;  %v4241_v11 = vpack.c.b16 %v4187_v9, %v4185_v51 }
 0x525   : > { %v2963_v45 = vmul.f32 1.442695, %v10095_v55  ;;  %v8713_v27 = vpack.c.bf16 %v10093_v48, %v8439_v6  ;;  %v8715_v42 = vpop.eup %5277  ;;  %5287 = vpow2.f32 %v8610_v36  ;;  %v3215_v49 = vadd.f32 %v8543_v5, %v3214_v2  ;;  %v10097_v36 = vld [vmem:[#allocation16_spill] sm:$0xff] }
 0x526   : > { %v4242_v30 = vpack.c.b16 %v4188_v59, %v4186_v56  ;;  %v4181_v44 = vunpack.c.l.b16 %v8705_v40  ;;  %v8720_v26 = vpop.eup %5279  ;;  %5289 = vpow2.f32 %v8617_v24  ;;  %v10096_v38 = vsub.f32 %v10057_v32, %v8271_v57  ;;  %4300 = vmatpush.bf16.msra.mxu2 %v4241_v11  ;;  %v10098_v5 = vld [vmem:[#allocation28_spill] sm:$0xff]  ;;  %v10104_v59 = vld [vmem:[#allocation77_spill] sm:$0xff] }
 0x527   : > { %v3249_v6 = vadd.f32 %v8503_v0, %v3248_v31  ;;  %v4183_v33 = vunpack.c.l.b16 %v8713_v27  ;;  %v2440_v20 = vsub.f32 %v10097_v36, %v8274_v60  ;;  %5291 = vpow2.f32 %v8622_v35  ;;  %v10100_v32 = vld [vmem:[#allocation92_spill] sm:$0xff]  ;;  %v10102_v35 = vld [vmem:[#allocation26_spill] sm:$0xff]  ;;  %v10106_v31 = vld [vmem:[#allocation81_spill] sm:$0xff] }
 0x528   : > { %v2965_v25 = vmul.f32 1.442695, %v10096_v38  ;;  %v10099_v10 = vsub.f32 %v10098_v5, %v8274_v60  ;;  %v3216_v24 = vadd.f32 %v8565_v54, %v3215_v49  ;;  %4326 = vmatpush.bf16.msrb.mxu0 %v4242_v30  ;;  %v8735_v61 = vpop.eup %5281  ;;  %5293 = vpow2.f32 %v2961_v34 }
 0x529   : > { %v10101_v0 = vsub.f32 %v10100_v32, %v8271_v57  ;;  %v3250_v28 = vadd.f32 %v8625_v15, %v3249_v6  ;;  %v8741_v43 = vpop.eup %5283  ;;  %5295 = vpow2.f32 %v2963_v45  ;;  %v10103_v51 = vsub.f32 %v10102_v35, %v8274_v60 }
 0x52a   : > { %v2967_v48 = vmul.f32 1.442695, %v10099_v10  ;;  %v3217_v3 = vadd.f32 %v8595_v39, %v3216_v24  ;;  %v4239_v54 = vpack.c.b16 %v4183_v33, %v4181_v44  ;;  %v8747_v56 = vpop.eup %5285  ;;  %v10105_v34 = vsub.f32 %v10104_v59, %v8274_v60 }
 0x52b   : > { %v2969_v13 = vmul.f32 1.442695, %v10101_v0  ;;  %v2971_v9 = vmul.f32 1.442695, %v10103_v51  ;;  %5297 = vpow2.f32 %v2965_v25  ;;  %v3251_v57 = vadd.f32 %v8533_v18, %v3250_v28  ;;  %v8753_v15 = vpop.eup %5287 }
 0x52c   : > { %v2955_v7 = vmul.f32 1.442695, %v10105_v34  ;;  %v2931_v55 = vmul.f32 1.442695, %v2440_v20  ;;  %5299 = vpow2.f32 %v2967_v48  ;;  %v3218_v45 = vadd.f32 %v8633_v62, %v3217_v3  ;;  %4301 = vmatpush.bf16.msra.mxu2 %v4239_v54  ;;  %v8756_v2 = vpop.eup %5289 }
 0x52d   : > { %5301 = vpow2.f32 %v2969_v13  ;;  %v3252_v39 = vadd.f32 %v8554_v17, %v3251_v57  ;;  %v4395_v11 = vperm.slane %v10106_v31, 1  ;;  %v8762_v60 = vpack.c.bf16 %v8689_v22, %v8682_v58  ;;  %v8764_v49 = vpop.eup %5291 }
 0x52e   : > { %5303 = vpow2.f32 %v2971_v9  ;;  %v3219_v18 = vadd.f32 %v8643_v21, %v3218_v45  ;;  %v8767_v30 = vpop.eup %5293  ;;  %v3469_v17 = vpack.c.bf16 %v8764_v49, %v8756_v2  ;;  %v8780_v33 = vpack.c.bf16 %v8715_v42, %v8707_v52 }
 0x52f   : > { %5305 = vpow2.f32 %v2955_v7  ;;  %v3253_v44 = vadd.f32 %v8582_v16, %v3252_v39  ;;  %v8771_v38 = vmul.f32 %v4395_v11, %v8552_v4  ;;  %v8775_v25 = vpop.eup %5295  ;;  %v4182_v36 = vunpack.c.h.b16 %v8705_v40 }
 0x530   : > { %5307 = vpow2.f32 %v2931_v55  ;;  %v3220_v6 = vadd.f32 %v8649_v50, %v3219_v18  ;;  %v3470_v4 = vpack.c.bf16 %v8775_v25, %v8767_v30  ;;  %v8790_v5 = vpack.c.bf16 %v8696_v46, %v8692_v1 }
 0x531   : > { %v8783_v20 = vpop.eup %5297  ;;  %v3254_v16 = vadd.f32 %v8612_v41, %v3253_v44  ;;  %v4225_v32 = vunpack.c.l.b16 %v3469_v17  ;;  %v4226_v0 = vunpack.c.h.b16 %v3469_v17  ;;  %v4184_v40 = vunpack.c.h.b16 %v8713_v27  ;;  %v10107_v41 = vld [vmem:[#allocation14_spill] sm:$0xff] }
 0x532   : > { %v8793_v48 = vpop.eup %5299  ;;  %v3221_v24 = vadd.f32 %v8655_v37, %v3220_v6  ;;  %v4227_v51 = vunpack.c.l.b16 %v3470_v4  ;;  %v4228_v9 = vunpack.c.h.b16 %v3470_v4  ;;  %v3466_v59 = vpack.c.bf16 %v8735_v61, %v8720_v26  ;;  %v10109_v4 = vld [vmem:[#allocation49_spill] sm:$0xff] }
 0x533   : > { %v8797_v13 = vpop.eup %5301  ;;  %v3255_v28 = vadd.f32 %v10107_v41, %v3254_v16  ;;  %v3471_v35 = vpack.c.bf16 %v8793_v48, %v8783_v20  ;;  %v4217_v34 = vunpack.c.l.b16 %v8780_v33  ;;  %v4240_v7 = vpack.c.b16 %v4184_v40, %v4182_v36 }
 0x534   : > { %v8802_v3 = vpop.eup %5303  ;;  %v3222_v54 = vadd.f32 %v8666_v47, %v3221_v24  ;;  %v4261_v18 = vpack.c.b16 %v4227_v51, %v4225_v32  ;;  %v4262_v44 = vpack.c.b16 %v4228_v9, %v4226_v0  ;;  %v3467_v17 = vpack.c.bf16 %v8747_v56, %v8741_v43  ;;  %v10110_v32 = vld [vmem:[#allocation84_spill] sm:$0xff] }
 0x535   : > { %10108 = vst [vmem:[#allocation38_spill] sm:$0xff] %v8802_v3  ;;  %v8808_v27 = vpop.eup %5305  ;;  %v3256_v57 = vadd.f32 %v8646_v8, %v3255_v28  ;;  %v3472_v55 = vpack.c.bf16 %v8802_v3, %v8797_v13  ;;  %v4229_v45 = vunpack.c.l.b16 %v3471_v35  ;;  %v4230_v39 = vunpack.c.h.b16 %v3471_v35  ;;  %4327 = vmatpush.bf16.msrb.mxu0 %v4240_v7 }
 0x536   : > { %v8813_v31 = vpop.eup %5307  ;;  %v3223_v11 = vadd.f32 %v8674_v12, %v3222_v54  ;;  %v3445_v24 = vpack.c.bf16 %v8396_v14, %v10109_v4  ;;  %v3468_v28 = vpack.c.bf16 %v8808_v27, %v8753_v15  ;;  %v4218_v35 = vunpack.c.h.b16 %v8780_v33 }
 0x537   : > { %v3257_v6 = vadd.f32 %v8652_v63, %v3256_v57  ;;  %v4231_v36 = vunpack.c.l.b16 %v3472_v55  ;;  %v4232_v16 = vunpack.c.h.b16 %v3472_v55  ;;  %v3446_v0 = vpack.c.bf16 %v8412_v53, %v10110_v32 }
 0x538   : > { %v3224_v40 = vadd.f32 %v8682_v58, %v3223_v11  ;;  %v4177_v7 = vunpack.c.l.b16 %v3445_v24  ;;  %v4219_v55 = vunpack.c.l.b16 %v3466_v59  ;;  %v4220_v10 = vunpack.c.h.b16 %v3466_v59  ;;  %v10113_v59 = vld [vmem:[#allocation18_spill] sm:$0xff] }
 0x539   : > { %v3258_v51 = vadd.f32 %v8660_v29, %v3257_v6  ;;  %v4263_v9 = vpack.c.b16 %v4231_v36, %v4229_v45  ;;  %v4264_v54 = vpack.c.b16 %v4232_v16, %v4230_v39  ;;  %v4179_v14 = vunpack.c.l.b16 %v3446_v0  ;;  %v10111_v36 = vld [vmem:[#allocation43_spill] sm:$0xff] }
 0x53a   : > { %v3225_v57 = vadd.f32 %v8692_v1, %v3224_v40  ;;  %v4221_v11 = vunpack.c.l.b16 %v3467_v17  ;;  %v4178_v4 = vunpack.c.h.b16 %v3445_v24  ;;  %v4180_v33 = vunpack.c.h.b16 %v3446_v0  ;;  %v10112_v1 = vld [vmem:[#allocation34_spill] sm:$0xff] }
 0x53b   : > { %v3259_v58 = vadd.f32 %v8670_v23, %v3258_v51  ;;  %4310 = vmatpush.bf16.msra.mxu3 %v4263_v9  ;;  %4336 = vmatpush.bf16.msrb.mxu1 %v4264_v54  ;;  %v4223_v53 = vunpack.c.l.b16 %v3468_v28  ;;  %v4222_v32 = vunpack.c.h.b16 %v3467_v17  ;;  %v4237_v6 = vpack.c.b16 %v4179_v14, %v4177_v7 }
 0x53c   : > { %v3226_v3 = vadd.f32 %v8707_v52, %v3225_v57  ;;  %v4224_v39 = vunpack.c.h.b16 %v3468_v28  ;;  %v3443_v16 = vpack.c.bf16 %v10112_v1, %v10111_v36  ;;  %v3444_v40 = vpack.c.bf16 %v8386_v19, %v10113_v59  ;;  %v4126_v36 = vpop.f32.mrf.mxu1 }
 0x53d   : > { %v3260_v45 = vadd.f32 %v8813_v31, %v3259_v58  ;;  %v4257_v9 = vpack.c.b16 %v4219_v55, %v4217_v34  ;;  %v4215_v24 = vunpack.c.l.b16 %v8790_v5  ;;  %4302 = vmatpush.bf16.msra.mxu2 %v4237_v6  ;;  %v4238_v0 = vpack.c.b16 %v4180_v33, %v4178_v4  ;;  %v10114_v58 = vld [vmem:[#allocation51_spill] sm:$0xff]  ;;  %v10115_v4 = vld [vmem:[#allocation52_spill] sm:$0xff] }
 0x53e   : > { %v3227_v51 = vadd.f32 %v8720_v26, %v3226_v3  ;;  %v4173_v17 = vunpack.c.l.b16 %v3443_v16  ;;  %v4175_v54 = vunpack.c.l.b16 %v3444_v40  ;;  %v4174_v28 = vunpack.c.h.b16 %v3443_v16  ;;  %v10116_v6 = vld [vmem:[#allocation35_spill] sm:$0xff] }
 0x53f   : > { %v3261_v52 = vadd.f32 %v8689_v22, %v3260_v45  ;;  %4311 = vmatpush.bf16.msra.mxu3 %v4261_v18  ;;  %4337 = vmatpush.bf16.msrb.mxu1 %v4262_v44  ;;  %v4259_v57 = vpack.c.b16 %v4223_v53, %v4221_v11  ;;  %v4258_v14 = vpack.c.b16 %v4220_v10, %v4218_v35  ;;  %v4176_v19 = vunpack.c.h.b16 %v3444_v40  ;;  %v10118_v11 = vld [vmem:[#allocation57_spill] sm:$0xff]  ;;  %v10119_v53 = vld [vmem:[#allocation23_spill] sm:$0xff]  ;;  %v4087_v40 = vpop.f32.mrf.mxu2 }
 0x540   : > { %v3228_v7 = vadd.f32 %v8741_v43, %v3227_v51  ;;  %4328 = vmatpush.bf16.msrb.mxu0 %v4238_v0  ;;  %v4260_v3 = vpack.c.b16 %v4224_v39, %v4222_v32  ;;  %v4214_v34 = vunpack.c.h.b16 %v8762_v60  ;;  %v4216_v55 = vunpack.c.h.b16 %v8790_v5  ;;  %v4100_v51 = vpop.f32.mrf.mxu3 }
 0x541   : > { %v3262_v26 = vadd.f32 %v8696_v46, %v3261_v52  ;;  %v4235_v18 = vpack.c.b16 %v4175_v54, %v4173_v17  ;;  %v4236_v44 = vpack.c.b16 %v4176_v19, %v4174_v28  ;;  %v3441_v33 = vpack.c.bf16 %v10115_v4, %v10114_v58 }
 0x542   : > { %v3229_v22 = vadd.f32 %v8753_v15, %v3228_v7  ;;  %v4131_v43 = vunpack.c.l.b16 %v10116_v6  ;;  %v10117_v46 = vunpack.c.l.b16 %v8762_v60  ;;  %v3442_v32 = vpack.c.bf16 %v10119_v53, %v10118_v11 }
 0x543   : > { %v3263_v10 = vadd.f32 %v8715_v42, %v3262_v26  ;;  %4312 = vmatpush.bf16.msra.mxu3 %v4259_v57  ;;  %4338 = vmatpush.bf16.msrb.mxu1 %v4260_v3  ;;  %v3461_v15 = vpack.c.bf16 %v8670_v23, %v8666_v47  ;;  %v3462_v45 = vpack.c.bf16 %v8813_v31, %v8674_v12  ;;  %v4169_v39 = vunpack.c.l.b16 %v3441_v33  ;;  %v4113_v42 = vpop.f32.mrf.mxu0  ;;  %v10120_v31 = vld [vmem:[#allocation85_spill] sm:$0xff] }
 0x544   : > { %v4255_v35 = vpack.c.b16 %v4215_v24, %v10117_v46  ;;  %v3230_v5 = vadd.f32 %v8756_v2, %v3229_v22  ;;  %4303 = vmatpush.bf16.msra.mxu2 %v4235_v18  ;;  %4329 = vmatpush.bf16.msrb.mxu0 %v4236_v44  ;;  %v4171_v60 = vunpack.c.l.b16 %v3442_v32  ;;  %v4170_v16 = vunpack.c.h.b16 %v3441_v33  ;;  %v4128_v22 = vpop.f32.mrf.mxu1 }
 0x545   : > { %v3264_v1 = vadd.f32 %v8735_v61, %v3263_v10  ;;  %v4172_v59 = vunpack.c.h.b16 %v3442_v32  ;;  %v4256_v24 = vpack.c.b16 %v4216_v55, %v4214_v34  ;;  %v3459_v47 = vpack.c.bf16 %v8652_v63, %v8649_v50 }
 0x546   : > { %v3231_v2 = vadd.f32 %v8767_v30, %v3230_v5  ;;  %v3460_v23 = vpack.c.bf16 %v8660_v29, %v8655_v37  ;;  %v4393_v0 = vperm.slane %v10120_v31, 1  ;;  %v4233_v61 = vpack.c.b16 %v4171_v60, %v4169_v39  ;;  %v10123_v5 = vld [vmem:[#allocation33_spill] sm:$0xff] }
 0x547   : > { %v3265_v12 = vadd.f32 %v8747_v56, %v3264_v1  ;;  %4313 = vmatpush.bf16.msra.mxu3 %v4257_v9  ;;  %4339 = vmatpush.bf16.msrb.mxu1 %v4258_v14  ;;  %v4234_v52 = vpack.c.b16 %v4172_v59, %v4170_v16  ;;  %v4209_v54 = vunpack.c.l.b16 %v3461_v15  ;;  %v8866_v28 = vadd.f32 %v4126_v36, %v4113_v42  ;;  %v10121_v9 = vld [vmem:[#allocation75_spill] sm:$0xff]  ;;  %v4089_v4 = vpop.f32.mrf.mxu2 }
 0x548   : > { %v3232_v17 = vadd.f32 %v8783_v20, %v3231_v2  ;;  %v8868_v30 = vadd.f32 %v4100_v51, %v4087_v40  ;;  %v4211_v63 = vunpack.c.l.b16 %v3462_v45  ;;  %v4210_v7 = vunpack.c.h.b16 %v3461_v15  ;;  %4304 = vmatpush.bf16.msra.mxu2 %v4233_v61  ;;  %v4102_v33 = vpop.f32.mrf.mxu3  ;;  %v10124_v15 = vld [vmem:[#allocation55_spill] sm:$0xff] }
 0x549   : > { %v3266_v50 = vadd.f32 %v8808_v27, %v3265_v12  ;;  %v4212_v37 = vunpack.c.h.b16 %v3462_v45  ;;  %4330 = vmatpush.bf16.msrb.mxu0 %v4234_v52  ;;  %v4133_v29 = vpack.c.b16 %v4131_v43, %v4131_v43  ;;  %v8873_v57 = vmul.f32 %v4393_v0, %v10121_v9 }
 0x54a   : > { %v3233_v56 = vadd.f32 %v8797_v13, %v3232_v17  ;;  %v4205_v14 = vunpack.c.l.b16 %v3459_v47  ;;  %v4207_v19 = vunpack.c.l.b16 %v3460_v23  ;;  %v4206_v26 = vunpack.c.h.b16 %v3459_v47  ;;  %v2976_v47 = vld [vmem:[#allocation6 + $0x6] sm:$0x3] }
 0x54b   : > { %v3267_v20 = vadd.f32 %v8764_v49, %v3266_v50  ;;  %4314 = vmatpush.bf16.msra.mxu3 %v4255_v35  ;;  %4340 = vmatpush.bf16.msrb.mxu1 %v4256_v24  ;;  %v4208_v27 = vunpack.c.h.b16 %v3460_v23  ;;  %v3457_v34 = vpack.c.bf16 %v10107_v41, %v8633_v62  ;;  %v4115_v55 = vpop.f32.mrf.mxu0  ;;  %v4417_v13 = vpack.c.bf16 %v8771_v38, %v8873_v57  ;;  %v10122_v35 = vld [vmem:[#allocation38_spill] sm:$0xff] }
 0x54c   : > { %v3234_v3 = vrot.slane %v3233_v56, 4  ;;  %4305 = vmatmul.bf16.vlgmr.msra.gmra.mxu2 %v4133_v29  ;;  %4331 = vmatmul.bf16.vlgmr.msrb.gmra.mxu0 %v4133_v29  ;;  %v4253_v49 = vpack.c.b16 %v4211_v63, %v4209_v54  ;;  %v4254_v44 = vpack.c.b16 %v4212_v37, %v4210_v7  ;;  %v3458_v58 = vpack.c.bf16 %v8646_v8, %v8643_v21  ;;  %v4374_v54 = vld [vmem:[#allocation6 + $0x4] sm:$0x3]  ;;  %v10127_v37 = vld [vmem:[#allocation56_spill] sm:$0xff] }
 0x54d   : > { %v3268_v18 = vadd.f32 %v8775_v25, %v3267_v20  ;;  %v4251_v62 = vpack.c.b16 %v4207_v19, %v4205_v14  ;;  %v4252_v41 = vpack.c.b16 %v4208_v27, %v4206_v26  ;;  %v4201_v46 = vunpack.c.l.b16 %v3457_v34 }
 0x54e   : > { %v3235_v43 = vadd.f32 %v3234_v3, %v3233_v56  ;;  %v4203_v53 = vunpack.c.l.b16 %v3458_v58  ;;  %v4202_v32 = vunpack.c.h.b16 %v3457_v34  ;;  %v4204_v25 = vunpack.c.h.b16 %v3458_v58 }
 0x54f   : > { %v3269_v10 = vadd.f32 %v8793_v48, %v3268_v18  ;;  %4315 = vmatpush.bf16.msra.mxu3 %v4253_v49  ;;  %4341 = vmatpush.bf16.msrb.mxu1 %v4254_v44  ;;  %v10125_v45 = vsub.f32 %v10123_v5, %v10124_v15  ;;  %v4132_v48 = vunpack.c.h.b16 %v10116_v6  ;;  %v3326_v29 = vperm.slane %v10127_v37, 1 }
 0x550   : > { %v3236_v8 = vrot.slane %v3235_v43, 2  ;;  %v4249_v36 = vpack.c.b16 %v4203_v53, %v4201_v46  ;;  %v4250_v1 = vpack.c.b16 %v4204_v25, %v4202_v32  ;;  %v3325_v27 = vperm.slane %v10127_v37, 0 }
 0x551   : > { %v3270_v11 = vadd.f32 %v10122_v35, %v3269_v10  ;;  %v2183_v39 = vmul.f32 1.442695, %v10125_v45  ;;  %v4134_v59 = vpack.c.b16 %v4132_v48, %v4132_v48  ;;  %v3342_v20 = vmul.f32 0.0, %v3326_v29  ;;  %v10128_v45 = vld [vmem:[#allocation12_spill] sm:$0xff]  ;;  %v4425_v48 = vpop.permute.xlu0 %4424 }
 0x552   : > { %v3237_v60 = vadd.f32 %v3236_v8, %v3235_v43  ;;  %v3341_v4 = vmul.f32 0.0, %v3325_v27 }
 0x553   : > { %v3271_v21 = vrot.slane %v3270_v11, 4  ;;  %4316 = vmatpush.bf16.msra.mxu3 %v4251_v62  ;;  %4342 = vmatpush.bf16.msrb.mxu1 %v4252_v41  ;;  %5309 = vpow2.f32 %v2183_v39  ;;  %v4354_v3 = vadd.f32 %v8866_v28, %v3342_v20  ;;  %v10129_v39 = vld [vmem:[#allocation82_spill] sm:$0xff] }
 0x554   : > { %v3238_v51 = vrot.slane %v3237_v60, 1  ;;  %5311 = vrcp.f32 %v4374_v54  ;;  %v4353_v10 = vadd.f32 %v8868_v30, %v3341_v4  ;;  %v4420_v30 = vld [vmem:[%s8927_s8] sm:$0x3]  ;;  %v10130_v8 = vpack.c.bf16 %v10128_v45, %v10129_v39 }
 0x555   : > { %v3272_v42 = vadd.f32 %v3271_v21, %v3270_v11 }
 0x556   : > { %v3239_v12 = vadd.f32 %v3238_v51, %v3237_v60 }
 0x557   : > { %v3273_v16 = vrot.slane %v3272_v42, 2  ;;  %4317 = vmatpush.bf16.msra.mxu3 %v4249_v36  ;;  %4343 = vmatpush.bf16.msrb.mxu1 %v4250_v1 }
 0x559   : > { %v3274_v40 = vadd.f32 %v3273_v16, %v3272_v42  ;;  %v5310_v24 = vpop.eup %5309 }
 0x55a   : > { %4318 = vmatmul.bf16.vlgmr.msra.gmra.mxu3 %v4134_v59  ;;  %4344 = vmatmul.bf16.vlgmr.msrb.gmra.mxu1 %v4134_v59  ;;  %v2980_v6 = vmul.f32 %v5310_v24, %v2976_v47  ;;  %v3328_v56 = vperm.slane %v5310_v24, 1  ;;  %v5312_v9 = vpop.eup %5311  ;;  %v3327_v44 = vperm.slane %v5310_v24, 0 }
 0x55b   : > { %v3275_v2 = vrot.slane %v3274_v40, 1  ;;  %v4397_v22 = vperm.slane %v5312_v9, 1  ;;  %v4396_v11 = vperm.slane %v5312_v9, 0 }
 0x55c   : > { %v3344_v34 = vmul.f32 0.0, %v3328_v56  ;;  %v3343_v41 = vmul.f32 0.0, %v3327_v44 }
 0x55d   : > { %v3276_v23 = vadd.f32 %v3275_v2, %v3274_v40  ;;  %v4413_v58 = vmul.f32 %v4397_v22, %v4354_v3  ;;  %v4412_v32 = vmul.f32 %v4396_v11, %v4353_v10 }
 0x55f   : > { %v3288_v31 = vrot.slane %v3276_v23, 7 }
 0x561   : > { %v3292_v0 = vsel %vm2160_vm5, %v3239_v12, %v3288_v31 }
 0x562   : > { %v3300_v61 = vadd.f32 %v3292_v0, %v2980_v6 }
 0x564   : > { %3308 = vst.msk [vmem:[#allocation6 + $0x6] sm:$0x3] %vm5906_vm4, %v3300_v61 }
 0x56b   : > { %v4375_v50 = vld [vmem:[#allocation6 + $0x6] sm:$0x3] }
 0x56c   : > { %5313 = vrcp.f32 %v4375_v50 }
 0x572   : > { %v5314_v14 = vpop.eup %5313 }
 0x573   : > { %v4399_v49 = vperm.slane %v5314_v14, 1  ;;  %v4398_v53 = vperm.slane %v5314_v14, 0 }
 0x5c9   : > { %v4332_v17 = vpop.f32.mrf.mxu0 }
 0x5cf   : > { %v4306_v63 = vpop.f32.mrf.mxu2 }
 0x5d1   : > { %v4334_v7 = vpop.f32.mrf.mxu0 }
 0x5d7   : > { %v4345_v19 = vpop.f32.mrf.mxu1  ;;  %v4308_v26 = vpop.f32.mrf.mxu2 }
 0x5d8   : > { %v4346_v55 = vadd.f32 %v4345_v19, %v4332_v17 }
 0x5da   : > { %v4356_v18 = vadd.f32 %v4346_v55, %v3344_v34 }
 0x5dc   : > { %v4415_v33 = vmul.f32 %v4399_v49, %v4356_v18 }
 0x5dd   : > { %v4319_v43 = vpop.f32.mrf.mxu3 }
 0x5de   : > { %v4419_v62 = vpack.c.bf16 %v4415_v33, %v4413_v58  ;;  %v4320_v46 = vadd.f32 %v4319_v43, %v4306_v63 }
 0x5df   : > { %v4347_v35 = vpop.f32.mrf.mxu1 }
 0x5e0   : > { %v4355_v28 = vadd.f32 %v4320_v46, %v3343_v41  ;;  %4450 = vmatpush.bf16.msrb.mxu3 %v4419_v62 }
 0x5e2   : > { %v4414_v25 = vmul.f32 %v4398_v53, %v4355_v28 }
 0x5e4   : > { %v4418_v5 = vpack.c.bf16 %v4414_v25, %v4412_v32  ;;  %4451 = vmatpush.bf16.msrb.mxu3 %v4417_v13 }
 0x5e5   : > { %v4321_v15 = vpop.f32.mrf.mxu3 }
 0x5e6   : > { %4437 = vmatpush.bf16.msrb.mxu2 %v4418_v5 }
 0x5e7   : > { %4745 = vmatmul.msk.bf16.vlgmr.msrb.gmra.mxu3 %vm4427_vm6, %v4420_v30 }
 0x5ea   : > { %4438 = vmatpush.bf16.msrb.mxu2 %v10130_v8 }
 0x5ed   : > { %4744 = vmatmul.msk.bf16.vlgmr.msrb.gmra.mxu2 %vm4427_vm6, %v4420_v30 }
 0x66a   : > { %v4453_v21 = vpop.f32.mrf.mxu3 }
 0x66b   : > { %v4454_v42 = vadd.f32 %v4453_v21, %v4425_v48 }
 0x66d   : > { %v4459_v38 = vrot.slane %v4454_v42, 4 }
 0x670   : > { %v4440_v36 = vpop.f32.mrf.mxu2 }
 0x671   : > { %v4441_v57 = vadd.f32 %v4440_v36, %v4425_v48 }
 0x672   : > { %v4455_v13 = vpop.f32.mrf.mxu3 }
 0x673   : > { %v4460_v1 = vsel %vm859_vm2, %v4441_v57, %v4459_v38 }
 0x674   : > { %4462 = vst [vmem:[%s424_s19] sm:$0xff] %v4460_v1 }
 0x678   : > { %v4442_v60 = vpop.f32.mrf.mxu2 }
 0x679 PF: > { %s20_s15 = sadd.s32 1, %s5337_s15   ;;  %s10131_s13 = smov %s5333_s14 }
 0x67a   : > { %p17_p5 = scmp.ge.s32.totalorder %s20_s15, 4   ;;  %s10132_s14 = smov %s10134_s16 }
 0x67c   :  { %19 = sbr.rel (!%p17_p5) target bundleno = 2 (0x2), region = 107 }

</bundles_post_ra>
